<compile_context>
chip_gen: v5e
topology: v5e:2x2
jax: 0.10.0
libtpu: 0.0.40
codegen_flags: <defaults>
</compile_context>

<pallas_src>
import functools

import jax
import jax.numpy as jnp
from jax import lax
from jax.experimental import pallas as pl
from jax.experimental.pallas import tpu as pltpu


# ---------------------------------------------------------------------------
# Shared in-kernel GRU step (PyTorch gate order r, z, n).
# GI (input projection) is precomputed by the caller; only gh = h @ W_hh
# stays on the serial critical path.
# ---------------------------------------------------------------------------
def _gru_step_hoisted(gi, h, w_hh, b_hh, H):
    gh = jnp.dot(h.astype(jnp.bfloat16), w_hh,
                 preferred_element_type=jnp.float32) + b_hh
    r = jax.nn.sigmoid(gi[:, 0 * H:1 * H] + gh[:, 0 * H:1 * H])
    z = jax.nn.sigmoid(gi[:, 1 * H:2 * H] + gh[:, 1 * H:2 * H])
    n = jnp.tanh(gi[:, 2 * H:3 * H] + r * gh[:, 2 * H:3 * H])
    return (1.0 - z) * n + z * h


# ---------------------------------------------------------------------------
# Kernel 1: ContentEncoder = bidirectional GRU (full output sequence + final
# hiddens) with the Linear(2H -> H) fused in.
#   x_flat : [T*B, E] time-major flattened embeddings
# Outputs:
#   out_f  : [T*B, H]  forward hidden at every step
#   out_b  : [T*B, H]  backward hidden at every step (row t = position t)
#   hidden : [B, H]    linear(cat(h_fwd_final, h_bwd_final))
# ---------------------------------------------------------------------------
def pallas_content_encoder(x_flat, w_ih_f, b_ih_f, w_hh_f, b_hh_f,
                           w_ih_b, b_ih_b, w_hh_b, b_hh_b,
                           w_lin_f, w_lin_b, b_lin, *, T, B):
    H = w_hh_f.shape[0]
    G = 3 * H
    TB = T * B

    def kernel(x_ref, wihf_ref, bihf_ref, whhf_ref, bhhf_ref,
               wihb_ref, bihb_ref, whhb_ref, bhhb_ref,
               wlinf_ref, wlinb_ref, blin_ref,
               outf_ref, outb_ref, hid_ref,
               gif_scr, gib_scr):
        # ---- hoisted input projections: two bulk MXU matmuls, done once ----
        x_bf = x_ref[...].astype(jnp.bfloat16)
        gif_scr[...] = jnp.dot(x_bf, wihf_ref[...],
                               preferred_element_type=jnp.float32) + bihf_ref[...]
        gib_scr[...] = jnp.dot(x_bf, wihb_ref[...],
                               preferred_element_type=jnp.float32) + bihb_ref[...]

        whh_f = whhf_ref[...]
        bhh_f = bhhf_ref[...]
        whh_b = whhb_ref[...]
        bhh_b = bhhb_ref[...]

        # ---- single fused fwd+bwd recurrence, hidden carried in vregs ----
        def body(t, carry):
            h_f, h_b = carry
            rf = pl.multiple_of(t * B, B)
            rb = pl.multiple_of((T - 1 - t) * B, B)
            h_f = _gru_step_hoisted(gif_scr[pl.ds(rf, B), :], h_f,
                                    whh_f, bhh_f, H)
            h_b = _gru_step_hoisted(gib_scr[pl.ds(rb, B), :], h_b,
                                    whh_b, bhh_b, H)
            outf_ref[pl.ds(rf, B), :] = h_f
            outb_ref[pl.ds(rb, B), :] = h_b
            return (h_f, h_b)

        h0 = jnp.zeros((B, H), jnp.float32)
        h_f, h_b = lax.fori_loop(0, T, body, (h0, h0), unroll=True)

        # ---- fused trailing Linear(2H -> H); W split so no lane concat ----
        hid_ref[...] = (
            jnp.dot(h_f.astype(jnp.bfloat16), wlinf_ref[...],
                    preferred_element_type=jnp.float32)
            + jnp.dot(h_b.astype(jnp.bfloat16), wlinb_ref[...],
                      preferred_element_type=jnp.float32)
            + blin_ref[...])

    vmem = pl.BlockSpec(memory_space=pltpu.MemorySpace.VMEM)
    return pl.pallas_call(
        kernel,
        out_shape=(jax.ShapeDtypeStruct((TB, H), jnp.float32),
                   jax.ShapeDtypeStruct((TB, H), jnp.float32),
                   jax.ShapeDtypeStruct((B, H), jnp.float32)),
        in_specs=[vmem] * 12,
        out_specs=(vmem, vmem, vmem),
        scratch_shapes=[pltpu.VMEM((TB, G), jnp.float32),
                        pltpu.VMEM((TB, G), jnp.float32)],
    )(x_flat, w_ih_f, b_ih_f, w_hh_f, b_hh_f,
      w_ih_b, b_ih_b, w_hh_b, b_hh_b, w_lin_f, w_lin_b, b_lin)


# ---------------------------------------------------------------------------
# Kernel 2: style linear + hidden concat + teacher-forced GRU decoder + fc.
#   x_flat : [(T-1)*B, E]  embedded decoder inputs (sos, tgt[1..T-2])
#   out    : [T*B, V]      logits, rows 0..B-1 are zero (torch.zeros init)
# ---------------------------------------------------------------------------
def pallas_decoder(x_flat, cont, pooled, style_w, style_b,
                   w_ih, w_hh, b_ih, b_hh, w_fc, b_fc, *, T, B):
    Tm = T - 1
    D = w_hh.shape[0]
    V = w_fc.shape[1]
    G = 3 * D

    def kernel(x_ref, cont_ref, pooled_ref, sw_ref, sb_ref,
               wih_ref, whh_ref, bih_ref, bhh_ref, wfc_ref, bfc_ref,
               out_ref, gi_scr, hseq_scr):
        # ---- fused style linear + one-time hidden concat ----
        style = (jnp.dot(pooled_ref[...].astype(jnp.bfloat16), sw_ref[...],
                         preferred_element_type=jnp.float32) + sb_ref[...])
        h0 = jnp.concatenate([cont_ref[...], style], axis=1)          # [B, D]

        # ---- hoisted input projection for all Tm steps at once ----
        gi_scr[...] = (jnp.dot(x_ref[...].astype(jnp.bfloat16), wih_ref[...],
                               preferred_element_type=jnp.float32)
                       + bih_ref[...])

        whh = whh_ref[...]
        bhh = bhh_ref[...]

        # ---- serial GRU recurrence, hidden carried in vregs ----
        def body(t, h):
            r = pl.multiple_of(t * B, B)
            h = _gru_step_hoisted(gi_scr[pl.ds(r, B), :], h, whh, bhh, D)
            hseq_scr[pl.ds(r, B), :] = h
            return h

        lax.fori_loop(0, Tm, body, h0, unroll=True)

        # ---- output projection hoisted out of the loop: one bulk matmul ----
        out_ref[0:B, :] = jnp.zeros((B, V), jnp.float32)
        logits = (jnp.dot(hseq_scr[...].astype(jnp.bfloat16), wfc_ref[...],
                          preferred_element_type=jnp.float32) + bfc_ref[...])
        out_ref[pl.ds(B, Tm * B), :] = logits

    vmem = pl.BlockSpec(memory_space=pltpu.MemorySpace.VMEM)
    return pl.pallas_call(
        kernel,
        out_shape=jax.ShapeDtypeStruct((T * B, V), jnp.float32),
        in_specs=[vmem] * 11,
        out_specs=vmem,
        scratch_shapes=[pltpu.VMEM((Tm * B, G), jnp.float32),
                        pltpu.VMEM((Tm * B, D), jnp.float32)],
    )(x_flat, cont, pooled, style_w, style_b,
      w_ih, w_hh, b_ih, b_hh, w_fc, b_fc)


# ---------------------------------------------------------------------------
# Parameter init (deterministic, synthetic) and kernel-side weight prep
# ---------------------------------------------------------------------------
def init_params(key, V, E, H, S, D, bert_vocab, Eb):
    ks = jax.random.split(key, 20)
    w = lambda k, shape: jax.random.normal(k, shape, jnp.float32) * 0.1
    return dict(
        embedding=w(ks[0], (V, E)),
        # content encoder: bidirectional GRU (weights stored transposed)
        enc_w_ih_f=w(ks[1], (E, 3 * H)), enc_w_hh_f=w(ks[2], (H, 3 * H)),
        enc_b_ih_f=w(ks[3], (1, 3 * H)), enc_b_hh_f=w(ks[4], (1, 3 * H)),
        enc_w_ih_b=w(ks[5], (E, 3 * H)), enc_w_hh_b=w(ks[6], (H, 3 * H)),
        enc_b_ih_b=w(ks[7], (1, 3 * H)), enc_b_hh_b=w(ks[8], (1, 3 * H)),
        enc_lin_w=w(ks[9], (2 * H, H)), enc_lin_b=w(ks[10], (1, H)),
        # style encoder stand-in
        bert_embedding=w(ks[11], (bert_vocab, Eb)),
        style_w=w(ks[12], (Eb, S)), style_b=w(ks[13], (1, S)),
        # decoder GRU + fc
        dec_w_ih=w(ks[14], (E, 3 * D)), dec_w_hh=w(ks[15], (D, 3 * D)),
        dec_b_ih=w(ks[16], (1, 3 * D)), dec_b_hh=w(ks[17], (1, 3 * D)),
        dec_fc_w=w(ks[18], (D, V)), dec_fc_b=w(ks[19], (1, V)),
    )


def prep_kernel_weights(params):
    """bf16 matmul operands (f32 accumulation); biases stay f32."""
    bf = lambda a: a.astype(jnp.bfloat16)
    H = params['enc_w_hh_f'].shape[0]
    return dict(
        enc_w_ih_f=bf(params['enc_w_ih_f']), enc_b_ih_f=params['enc_b_ih_f'],
        enc_w_hh_f=bf(params['enc_w_hh_f']), enc_b_hh_f=params['enc_b_hh_f'],
        enc_w_ih_b=bf(params['enc_w_ih_b']), enc_b_ih_b=params['enc_b_ih_b'],
        enc_w_hh_b=bf(params['enc_w_hh_b']), enc_b_hh_b=params['enc_b_hh_b'],
        enc_lin_w_f=bf(params['enc_lin_w'][:H]),
        enc_lin_w_b=bf(params['enc_lin_w'][H:]),
        enc_lin_b=params['enc_lin_b'],
        style_w=bf(params['style_w']), style_b=params['style_b'],
        dec_w_ih=bf(params['dec_w_ih']), dec_w_hh=bf(params['dec_w_hh']),
        dec_b_ih=params['dec_b_ih'], dec_b_hh=params['dec_b_hh'],
        dec_fc_w=bf(params['dec_fc_w']), dec_fc_b=params['dec_fc_b'],
    )


# ---------------------------------------------------------------------------
# Forward passes (glue in plain JAX: embedding gathers, transposes)
# ---------------------------------------------------------------------------
def content_encoder_forward(params, kw, tokens):
    """Mirrors ContentEncoder.forward: returns (output [B,T,2H], hidden [B,H])."""
    B, T = tokens.shape
    H = params['enc_w_hh_f'].shape[0]
    emb = params['embedding'][tokens]                                # [B,T,E]
    x_flat = jnp.transpose(emb, (1, 0, 2)).reshape(T * B, -1)        # [T*B,E]
    out_f, out_b, hidden = pallas_content_encoder(
        x_flat,
        kw['enc_w_ih_f'], kw['enc_b_ih_f'], kw['enc_w_hh_f'], kw['enc_b_hh_f'],
        kw['enc_w_ih_b'], kw['enc_b_ih_b'], kw['enc_w_hh_b'], kw['enc_b_hh_b'],
        kw['enc_lin_w_f'], kw['enc_lin_w_b'], kw['enc_lin_b'], T=T, B=B)
    output = jnp.concatenate([out_f.reshape(T, B, H),
                              out_b.reshape(T, B, H)], axis=-1)      # [T,B,2H]
    return jnp.transpose(output, (1, 0, 2)), hidden                  # [B,T,2H]


def seq2seq_forward(params, kw, load_source, load_target, load_target_sos,
                    load_bert_exmp):
    B, seq_len = load_target.shape

    # --- ContentEncoder (bi-GRU + Linear fused into one pallas_call) ---
    enc_output, cont_hidden = content_encoder_forward(params, kw, load_source)

    # --- StyleEncoder stand-in ---
    # TODO(synk): the real StyleEncoder wraps a pretrained BERT; stand-in is
    # embedding lookup + mean-pool; its Linear is fused into the decoder kernel.
    bert_emb = params['bert_embedding'][load_bert_exmp]              # [B,Tb,Eb]
    pooled = jnp.mean(bert_emb, axis=1)                              # [B,Eb]

    # --- Decoder (teacher forcing); style linear + concat fused in-kernel ---
    dec_tokens = jnp.concatenate(
        [load_target_sos[:, 0:1], load_target[:, 1:seq_len - 1]], axis=1)
    dec_emb = params['embedding'][dec_tokens]                        # [B,T-1,E]
    dec_flat = jnp.transpose(dec_emb, (1, 0, 2)).reshape((seq_len - 1) * B, -1)
    out_flat = pallas_decoder(
        dec_flat, cont_hidden, pooled,
        kw['style_w'], kw['style_b'],
        kw['dec_w_ih'], kw['dec_w_hh'], kw['dec_b_ih'], kw['dec_b_hh'],
        kw['dec_fc_w'], kw['dec_fc_b'], T=seq_len, B=B)              # [T*B,V]
    V = params['dec_fc_w'].shape[1]
    logits = jnp.transpose(out_flat.reshape(seq_len, B, V), (1, 0, 2))
    return logits, enc_output, cont_hidden


# ---------------------------------------------------------------------------
# Pure-JAX reference (same bf16-input / f32-accumulate matmul discipline)
# ---------------------------------------------------------------------------
def _ref_gru_dir(x_tm, w_ih, w_hh, b_ih, b_hh):
    H = w_hh.shape[0]
    bf = jnp.bfloat16

    def step(h, x_t):
        gi = jnp.dot(x_t.astype(bf), w_ih.astype(bf),
                     preferred_element_type=jnp.float32) + b_ih
        gh = jnp.dot(h.astype(bf), w_hh.astype(bf),
                     preferred_element_type=jnp.float32) + b_hh
        r = jax.nn.sigmoid(gi[:, :H] + gh[:, :H])
        z = jax.nn.sigmoid(gi[:, H:2 * H] + gh[:, H:2 * H])
        n = jnp.tanh(gi[:, 2 * H:] + r * gh[:, 2 * H:])
        h = (1.0 - z) * n + z * h
        return h, h

    h0 = jnp.zeros((x_tm.shape[1], H), jnp.float32)
    return lax.scan(step, h0, x_tm)


def ref_forward(params, load_source, load_target, load_target_sos,
                load_bert_exmp):
    bf = jnp.bfloat16
    B, seq_len = load_target.shape

    emb = params['embedding'][load_source]
    x_tm = jnp.transpose(emb, (1, 0, 2))
    h_f, hs_f = _ref_gru_dir(x_tm, params['enc_w_ih_f'], params['enc_w_hh_f'],
                             params['enc_b_ih_f'], params['enc_b_hh_f'])
    h_b, hs_b = _ref_gru_dir(x_tm[::-1], params['enc_w_ih_b'],
                             params['enc_w_hh_b'], params['enc_b_ih_b'],
                             params['enc_b_hh_b'])
    enc_out = jnp.transpose(
        jnp.concatenate([hs_f, hs_b[::-1]], axis=-1), (1, 0, 2))
    h_cat = jnp.concatenate([h_f, h_b], axis=1)
    cont_hidden = jnp.dot(h_cat.astype(bf), params['enc_lin_w'].astype(bf),
                          preferred_element_type=jnp.float32) + params['enc_lin_b']

    pooled = jnp.mean(params['bert_embedding'][load_bert_exmp], axis=1)
    style_hidden = jnp.dot(pooled.astype(bf), params['style_w'].astype(bf),
                           preferred_element_type=jnp.float32) + params['style_b']

    h0 = jnp.concatenate([cont_hidden, style_hidden], axis=1)
    D = h0.shape[1]
    dec_tokens = jnp.concatenate(
        [load_target_sos[:, 0:1], load_target[:, 1:seq_len - 1]], axis=1)
    dec_tm = jnp.transpose(params['embedding'][dec_tokens], (1, 0, 2))

    def dec_step(h, x_t):
        gi = jnp.dot(x_t.astype(bf), params['dec_w_ih'].astype(bf),
                     preferred_element_type=jnp.float32) + params['dec_b_ih']
        gh = jnp.dot(h.astype(bf), params['dec_w_hh'].astype(bf),
                     preferred_element_type=jnp.float32) + params['dec_b_hh']
        r = jax.nn.sigmoid(gi[:, :D] + gh[:, :D])
        z = jax.nn.sigmoid(gi[:, D:2 * D] + gh[:, D:2 * D])
        n = jnp.tanh(gi[:, 2 * D:] + r * gh[:, 2 * D:])
        h = (1.0 - z) * n + z * h
        return h, h

    _, hs = lax.scan(dec_step, h0, dec_tm)                           # [T-1,B,D]
    V = params['dec_fc_w'].shape[1]
    logits = jnp.dot(hs.astype(bf), params['dec_fc_w'].astype(bf),
                     preferred_element_type=jnp.float32) + params['dec_fc_b']
    logits = jnp.concatenate(
        [jnp.zeros((1, B, V), jnp.float32), logits], axis=0)
    return jnp.transpose(logits, (1, 0, 2)), enc_out, cont_hidden


if __name__ == "__main__":
    # small shapes consistent with the module's forward
    B, Ts, Tt, Tb = 8, 8, 8, 6
    V, E, H, S = 64, 32, 32, 32
    D = H + S                      # decoder hidden = content ++ style
    bert_vocab, Eb = 100, 32

    key = jax.random.PRNGKey(0)
    k_par, k_src, k_tgt, k_bert = jax.random.split(key, 4)

    params = init_params(k_par, V, E, H, S, D, bert_vocab, Eb)
    kw = prep_kernel_weights(params)

    load_source = jax.random.randint(k_src, (B, Ts), 0, V, dtype=jnp.int32)
    load_target = jax.random.randint(k_tgt, (B, Tt), 0, V, dtype=jnp.int32)
    load_target_sos = jnp.full((B, 1), 2, dtype=jnp.int32)      # <SOS> = 2
    load_bert_exmp = jax.random.randint(k_bert, (B, Tb), 0, bert_vocab,
                                        dtype=jnp.int32)

    fwd = jax.jit(functools.partial(seq2seq_forward, params, kw))
    logits, enc_out, cont_hidden = fwd(load_source, load_target,
                                       load_target_sos, load_bert_exmp)
    logits = jax.block_until_ready(logits)

    # structural checks
    assert logits.shape == (B, Tt, V)
    assert enc_out.shape == (B, Ts, 2 * H)
    assert cont_hidden.shape == (B, H)
    assert bool(jnp.all(logits[:, 0, :] == 0.0))   # row 0 stays zero

    # numeric check against a pure-JAX reference using the same bf16 matmuls
    ref = jax.jit(functools.partial(ref_forward, params))
    ref_logits, ref_enc_out, ref_hidden = ref(load_source, load_target,
                                              load_target_sos, load_bert_exmp)
    assert jnp.allclose(enc_out, ref_enc_out, atol=5e-2, rtol=5e-2)
    assert jnp.allclose(cont_hidden, ref_hidden, atol=5e-2, rtol=5e-2)
    assert jnp.allclose(logits, ref_logits, atol=5e-2, rtol=5e-2)

    print("KERNEL_OK")
</pallas_src>

<mosaic_0001>
module attributes {stable_mosaic.version = 11 : i64} {
  func.func @kernel(%arg0: memref<64x32xf32, #tpu.memory_space<vmem>>, %arg1: memref<32x96xbf16, #tpu.memory_space<vmem>>, %arg2: memref<1x96xf32, #tpu.memory_space<vmem>>, %arg3: memref<32x96xbf16, #tpu.memory_space<vmem>>, %arg4: memref<1x96xf32, #tpu.memory_space<vmem>>, %arg5: memref<32x96xbf16, #tpu.memory_space<vmem>>, %arg6: memref<1x96xf32, #tpu.memory_space<vmem>>, %arg7: memref<32x96xbf16, #tpu.memory_space<vmem>>, %arg8: memref<1x96xf32, #tpu.memory_space<vmem>>, %arg9: memref<32x32xbf16, #tpu.memory_space<vmem>>, %arg10: memref<32x32xbf16, #tpu.memory_space<vmem>>, %arg11: memref<1x32xf32, #tpu.memory_space<vmem>>, %arg12: memref<64x32xf32, #tpu.memory_space<vmem>>, %arg13: memref<64x32xf32, #tpu.memory_space<vmem>>, %arg14: memref<8x32xf32, #tpu.memory_space<vmem>>, %arg15: memref<64x96xf32, #tpu.memory_space<vmem>>, %arg16: memref<64x96xf32, #tpu.memory_space<vmem>>) attributes {dimension_semantics = [], scalar_prefetch = 0 : i64, scratch_operands = 2 : i64, tpu.core_type = #tpu.core_type<tc>} {
    %c0 = arith.constant 0 : index
    %c0_0 = arith.constant 0 : index
    %0 = vector.load %arg0[%c0, %c0_0] : memref<64x32xf32, #tpu.memory_space<vmem>>, vector<64x32xf32>
    %1 = arith.truncf %0 : vector<64x32xf32> to vector<64x32xbf16>
    %c0_1 = arith.constant 0 : index
    %c0_2 = arith.constant 0 : index
    %2 = vector.load %arg1[%c0_1, %c0_2] : memref<32x96xbf16, #tpu.memory_space<vmem>>, vector<32x96xbf16>
    %cst = arith.constant dense<0.000000e+00> : vector<64x96xf32>
    %3 = tpu.matmul %1, %2, %cst {dimension_numbers = #tpu.dot_dimension_numbers<[1], [0], [0], [1], [0, 0, 1, 1], [], []>} : vector<64x32xbf16>, vector<32x96xbf16>, vector<64x96xf32> -> vector<64x96xf32>
    %c0_3 = arith.constant 0 : index
    %c0_4 = arith.constant 0 : index
    %4 = vector.load %arg2[%c0_3, %c0_4] : memref<1x96xf32, #tpu.memory_space<vmem>>, vector<1x96xf32>
    %5 = vector.broadcast %4 : vector<1x96xf32> to vector<64x96xf32>
    %6 = arith.addf %3, %5 : vector<64x96xf32>
    %c0_5 = arith.constant 0 : index
    %c0_6 = arith.constant 0 : index
    %7 = vector.load %arg15[%c0_5, %c0_6] : memref<64x96xf32, #tpu.memory_space<vmem>>, vector<64x96xf32>
    tpu.vector_store %arg15[%c0_5, %c0_6], %6 {strides = array<i32>} : memref<64x96xf32, #tpu.memory_space<vmem>>, vector<64x96xf32>,
    %c0_7 = arith.constant 0 : index
    %c0_8 = arith.constant 0 : index
    %8 = vector.load %arg5[%c0_7, %c0_8] : memref<32x96xbf16, #tpu.memory_space<vmem>>, vector<32x96xbf16>
    %cst_9 = arith.constant dense<0.000000e+00> : vector<64x96xf32>
    %9 = tpu.matmul %1, %8, %cst_9 {dimension_numbers = #tpu.dot_dimension_numbers<[1], [0], [0], [1], [0, 0, 1, 1], [], []>} : vector<64x32xbf16>, vector<32x96xbf16>, vector<64x96xf32> -> vector<64x96xf32>
    %c0_10 = arith.constant 0 : index
    %c0_11 = arith.constant 0 : index
    %10 = vector.load %arg6[%c0_10, %c0_11] : memref<1x96xf32, #tpu.memory_space<vmem>>, vector<1x96xf32>
    %11 = vector.broadcast %10 : vector<1x96xf32> to vector<64x96xf32>
    %12 = arith.addf %9, %11 : vector<64x96xf32>
    %c0_12 = arith.constant 0 : index
    %c0_13 = arith.constant 0 : index
    %13 = vector.load %arg16[%c0_12, %c0_13] : memref<64x96xf32, #tpu.memory_space<vmem>>, vector<64x96xf32>
    tpu.vector_store %arg16[%c0_12, %c0_13], %12 {strides = array<i32>} : memref<64x96xf32, #tpu.memory_space<vmem>>, vector<64x96xf32>,
    %c0_14 = arith.constant 0 : index
    %c0_15 = arith.constant 0 : index
    %14 = vector.load %arg3[%c0_14, %c0_15] : memref<32x96xbf16, #tpu.memory_space<vmem>>, vector<32x96xbf16>
    %c0_16 = arith.constant 0 : index
    %c0_17 = arith.constant 0 : index
    %15 = vector.load %arg4[%c0_16, %c0_17] : memref<1x96xf32, #tpu.memory_space<vmem>>, vector<1x96xf32>
    %c0_18 = arith.constant 0 : index
    %c0_19 = arith.constant 0 : index
    %16 = vector.load %arg7[%c0_18, %c0_19] : memref<32x96xbf16, #tpu.memory_space<vmem>>, vector<32x96xbf16>
    %c0_20 = arith.constant 0 : index
    %c0_21 = arith.constant 0 : index
    %17 = vector.load %arg8[%c0_20, %c0_21] : memref<1x96xf32, #tpu.memory_space<vmem>>, vector<1x96xf32>
    %cst_22 = arith.constant 0.000000e+00 : f32
    %18 = vector.broadcast %cst_22 : f32 to vector<8x32xf32>
    %c0_i32 = arith.constant 0 : i32
    %c8_i32 = arith.constant 8 : i32
    %19 = arith.muli %c0_i32, %c8_i32 : i32
    %20 = tpu.assume_multiple %19, 8 : i32
    %c7_i32 = arith.constant 7 : i32
    %21 = arith.subi %c7_i32, %c0_i32 : i32
    %c8_i32_23 = arith.constant 8 : i32
    %22 = arith.muli %21, %c8_i32_23 : i32
    %23 = tpu.assume_multiple %22, 8 : i32
    %24 = arith.index_cast %20 : i32 to index
    %c0_24 = arith.constant 0 : index
    %25 = vector.load %arg15[%24, %c0_24] : memref<64x96xf32, #tpu.memory_space<vmem>>, vector<8x96xf32>
    %26 = arith.truncf %18 : vector<8x32xf32> to vector<8x32xbf16>
    %cst_25 = arith.constant dense<0.000000e+00> : vector<8x96xf32>
    %27 = tpu.matmul %26, %14, %cst_25 {dimension_numbers = #tpu.dot_dimension_numbers<[1], [0], [0], [1], [0, 0, 1, 1], [], []>} : vector<8x32xbf16>, vector<32x96xbf16>, vector<8x96xf32> -> vector<8x96xf32>
    %28 = vector.broadcast %15 : vector<1x96xf32> to vector<8x96xf32>
    %29 = arith.addf %27, %28 : vector<8x96xf32>
    %30 = vector.extract_strided_slice %25 {offsets = [0, 0], sizes = [8, 32], strides = [1, 1]} : vector<8x96xf32> to vector<8x32xf32>
    %31 = vector.extract_strided_slice %29 {offsets = [0, 0], sizes = [8, 32], strides = [1, 1]} : vector<8x96xf32> to vector<8x32xf32>
    %32 = arith.addf %30, %31 : vector<8x32xf32>
    %33 = arith.negf %32 : vector<8x32xf32>
    %34 = math.exp %33 : vector<8x32xf32>
    %cst_26 = arith.constant 1.000000e+00 : f32
    %35 = vector.broadcast %cst_26 : f32 to vector<8x32xf32>
    %36 = arith.addf %35, %34 : vector<8x32xf32>
    %37 = arith.divf %35, %36 : vector<8x32xf32>
    %38 = vector.extract_strided_slice %25 {offsets = [0, 32], sizes = [8, 32], strides = [1, 1]} : vector<8x96xf32> to vector<8x32xf32>
    %39 = vector.extract_strided_slice %29 {offsets = [0, 32], sizes = [8, 32], strides = [1, 1]} : vector<8x96xf32> to vector<8x32xf32>
    %40 = arith.addf %38, %39 : vector<8x32xf32>
    %41 = arith.negf %40 : vector<8x32xf32>
    %42 = math.exp %41 : vector<8x32xf32>
    %cst_27 = arith.constant 1.000000e+00 : f32
    %43 = vector.broadcast %cst_27 : f32 to vector<8x32xf32>
    %44 = arith.addf %43, %42 : vector<8x32xf32>
    %45 = arith.divf %43, %44 : vector<8x32xf32>
    %46 = vector.extract_strided_slice %25 {offsets = [0, 64], sizes = [8, 32], strides = [1, 1]} : vector<8x96xf32> to vector<8x32xf32>
    %47 = vector.extract_strided_slice %29 {offsets = [0, 64], sizes = [8, 32], strides = [1, 1]} : vector<8x96xf32> to vector<8x32xf32>
    %48 = arith.mulf %37, %47 : vector<8x32xf32>
    %49 = arith.addf %46, %48 : vector<8x32xf32>
    %50 = math.tanh %49 : vector<8x32xf32>
    %cst_28 = arith.constant 1.000000e+00 : f32
    %51 = vector.broadcast %cst_28 : f32 to vector<8x32xf32>
    %52 = arith.subf %51, %45 : vector<8x32xf32>
    %53 = arith.mulf %52, %50 : vector<8x32xf32>
    %54 = arith.mulf %45, %18 : vector<8x32xf32>
    %55 = arith.addf %53, %54 : vector<8x32xf32>
    %56 = arith.index_cast %23 : i32 to index
    %c0_29 = arith.constant 0 : index
    %57 = vector.load %arg16[%56, %c0_29] : memref<64x96xf32, #tpu.memory_space<vmem>>, vector<8x96xf32>
    %58 = arith.truncf %18 : vector<8x32xf32> to vector<8x32xbf16>
    %cst_30 = arith.constant dense<0.000000e+00> : vector<8x96xf32>
    %59 = tpu.matmul %58, %16, %cst_30 {dimension_numbers = #tpu.dot_dimension_numbers<[1], [0], [0], [1], [0, 0, 1, 1], [], []>} : vector<8x32xbf16>, vector<32x96xbf16>, vector<8x96xf32> -> vector<8x96xf32>
    %60 = vector.broadcast %17 : vector<1x96xf32> to vector<8x96xf32>
    %61 = arith.addf %59, %60 : vector<8x96xf32>
    %62 = vector.extract_strided_slice %57 {offsets = [0, 0], sizes = [8, 32], strides = [1, 1]} : vector<8x96xf32> to vector<8x32xf32>
    %63 = vector.extract_strided_slice %61 {offsets = [0, 0], sizes = [8, 32], strides = [1, 1]} : vector<8x96xf32> to vector<8x32xf32>
    %64 = arith.addf %62, %63 : vector<8x32xf32>
    %65 = arith.negf %64 : vector<8x32xf32>
    %66 = math.exp %65 : vector<8x32xf32>
    %cst_31 = arith.constant 1.000000e+00 : f32
    %67 = vector.broadcast %cst_31 : f32 to vector<8x32xf32>
    %68 = arith.addf %67, %66 : vector<8x32xf32>
    %69 = arith.divf %67, %68 : vector<8x32xf32>
    %70 = vector.extract_strided_slice %57 {offsets = [0, 32], sizes = [8, 32], strides = [1, 1]} : vector<8x96xf32> to vector<8x32xf32>
    %71 = vector.extract_strided_slice %61 {offsets = [0, 32], sizes = [8, 32], strides = [1, 1]} : vector<8x96xf32> to vector<8x32xf32>
    %72 = arith.addf %70, %71 : vector<8x32xf32>
    %73 = arith.negf %72 : vector<8x32xf32>
    %74 = math.exp %73 : vector<8x32xf32>
    %cst_32 = arith.constant 1.000000e+00 : f32
    %75 = vector.broadcast %cst_32 : f32 to vector<8x32xf32>
    %76 = arith.addf %75, %74 : vector<8x32xf32>
    %77 = arith.divf %75, %76 : vector<8x32xf32>
    %78 = vector.extract_strided_slice %57 {offsets = [0, 64], sizes = [8, 32], strides = [1, 1]} : vector<8x96xf32> to vector<8x32xf32>
    %79 = vector.extract_strided_slice %61 {offsets = [0, 64], sizes = [8, 32], strides = [1, 1]} : vector<8x96xf32> to vector<8x32xf32>
    %80 = arith.mulf %69, %79 : vector<8x32xf32>
    %81 = arith.addf %78, %80 : vector<8x32xf32>
    %82 = math.tanh %81 : vector<8x32xf32>
    %cst_33 = arith.constant 1.000000e+00 : f32
    %83 = vector.broadcast %cst_33 : f32 to vector<8x32xf32>
    %84 = arith.subf %83, %77 : vector<8x32xf32>
    %85 = arith.mulf %84, %82 : vector<8x32xf32>
    %86 = arith.mulf %77, %18 : vector<8x32xf32>
    %87 = arith.addf %85, %86 : vector<8x32xf32>
    %88 = arith.index_cast %20 : i32 to index
    %c0_34 = arith.constant 0 : index
    %89 = vector.load %arg12[%88, %c0_34] : memref<64x32xf32, #tpu.memory_space<vmem>>, vector<8x32xf32>
    tpu.vector_store %arg12[%88, %c0_34], %55 {strides = array<i32>} : memref<64x32xf32, #tpu.memory_space<vmem>>, vector<8x32xf32>,
    %90 = arith.index_cast %23 : i32 to index
    %c0_35 = arith.constant 0 : index
    %91 = vector.load %arg13[%90, %c0_35] : memref<64x32xf32, #tpu.memory_space<vmem>>, vector<8x32xf32>
    tpu.vector_store %arg13[%90, %c0_35], %87 {strides = array<i32>} : memref<64x32xf32, #tpu.memory_space<vmem>>, vector<8x32xf32>,
    %c1_i32 = arith.constant 1 : i32
    %c8_i32_36 = arith.constant 8 : i32
    %92 = arith.muli %c1_i32, %c8_i32_36 : i32
    %93 = tpu.assume_multiple %92, 8 : i32
    %c7_i32_37 = arith.constant 7 : i32
    %94 = arith.subi %c7_i32_37, %c1_i32 : i32
    %c8_i32_38 = arith.constant 8 : i32
    %95 = arith.muli %94, %c8_i32_38 : i32
    %96 = tpu.assume_multiple %95, 8 : i32
    %97 = arith.index_cast %93 : i32 to index
    %c0_39 = arith.constant 0 : index
    %98 = vector.load %arg15[%97, %c0_39] : memref<64x96xf32, #tpu.memory_space<vmem>>, vector<8x96xf32>
    %99 = arith.truncf %55 : vector<8x32xf32> to vector<8x32xbf16>
    %cst_40 = arith.constant dense<0.000000e+00> : vector<8x96xf32>
    %100 = tpu.matmul %99, %14, %cst_40 {dimension_numbers = #tpu.dot_dimension_numbers<[1], [0], [0], [1], [0, 0, 1, 1], [], []>} : vector<8x32xbf16>, vector<32x96xbf16>, vector<8x96xf32> -> vector<8x96xf32>
    %101 = vector.broadcast %15 : vector<1x96xf32> to vector<8x96xf32>
    %102 = arith.addf %100, %101 : vector<8x96xf32>
    %103 = vector.extract_strided_slice %98 {offsets = [0, 0], sizes = [8, 32], strides = [1, 1]} : vector<8x96xf32> to vector<8x32xf32>
    %104 = vector.extract_strided_slice %102 {offsets = [0, 0], sizes = [8, 32], strides = [1, 1]} : vector<8x96xf32> to vector<8x32xf32>
    %105 = arith.addf %103, %104 : vector<8x32xf32>
    %106 = arith.negf %105 : vector<8x32xf32>
    %107 = math.exp %106 : vector<8x32xf32>
    %cst_41 = arith.constant 1.000000e+00 : f32
    %108 = vector.broadcast %cst_41 : f32 to vector<8x32xf32>
    %109 = arith.addf %108, %107 : vector<8x32xf32>
    %110 = arith.divf %108, %109 : vector<8x32xf32>
    %111 = vector.extract_strided_slice %98 {offsets = [0, 32], sizes = [8, 32], strides = [1, 1]} : vector<8x96xf32> to vector<8x32xf32>
    %112 = vector.extract_strided_slice %102 {offsets = [0, 32], sizes = [8, 32], strides = [1, 1]} : vector<8x96xf32> to vector<8x32xf32>
    %113 = arith.addf %111, %112 : vector<8x32xf32>
    %114 = arith.negf %113 : vector<8x32xf32>
    %115 = math.exp %114 : vector<8x32xf32>
    %cst_42 = arith.constant 1.000000e+00 : f32
    %116 = vector.broadcast %cst_42 : f32 to vector<8x32xf32>
    %117 = arith.addf %116, %115 : vector<8x32xf32>
    %118 = arith.divf %116, %117 : vector<8x32xf32>
    %119 = vector.extract_strided_slice %98 {offsets = [0, 64], sizes = [8, 32], strides = [1, 1]} : vector<8x96xf32> to vector<8x32xf32>
    %120 = vector.extract_strided_slice %102 {offsets = [0, 64], sizes = [8, 32], strides = [1, 1]} : vector<8x96xf32> to vector<8x32xf32>
    %121 = arith.mulf %110, %120 : vector<8x32xf32>
    %122 = arith.addf %119, %121 : vector<8x32xf32>
    %123 = math.tanh %122 : vector<8x32xf32>
    %cst_43 = arith.constant 1.000000e+00 : f32
    %124 = vector.broadcast %cst_43 : f32 to vector<8x32xf32>
    %125 = arith.subf %124, %118 : vector<8x32xf32>
    %126 = arith.mulf %125, %123 : vector<8x32xf32>
    %127 = arith.mulf %118, %55 : vector<8x32xf32>
    %128 = arith.addf %126, %127 : vector<8x32xf32>
    %129 = arith.index_cast %96 : i32 to index
    %c0_44 = arith.constant 0 : index
    %130 = vector.load %arg16[%129, %c0_44] : memref<64x96xf32, #tpu.memory_space<vmem>>, vector<8x96xf32>
    %131 = arith.truncf %87 : vector<8x32xf32> to vector<8x32xbf16>
    %cst_45 = arith.constant dense<0.000000e+00> : vector<8x96xf32>
    %132 = tpu.matmul %131, %16, %cst_45 {dimension_numbers = #tpu.dot_dimension_numbers<[1], [0], [0], [1], [0, 0, 1, 1], [], []>} : vector<8x32xbf16>, vector<32x96xbf16>, vector<8x96xf32> -> vector<8x96xf32>
    %133 = vector.broadcast %17 : vector<1x96xf32> to vector<8x96xf32>
    %134 = arith.addf %132, %133 : vector<8x96xf32>
    %135 = vector.extract_strided_slice %130 {offsets = [0, 0], sizes = [8, 32], strides = [1, 1]} : vector<8x96xf32> to vector<8x32xf32>
    %136 = vector.extract_strided_slice %134 {offsets = [0, 0], sizes = [8, 32], strides = [1, 1]} : vector<8x96xf32> to vector<8x32xf32>
    %137 = arith.addf %135, %136 : vector<8x32xf32>
    %138 = arith.negf %137 : vector<8x32xf32>
    %139 = math.exp %138 : vector<8x32xf32>
    %cst_46 = arith.constant 1.000000e+00 : f32
    %140 = vector.broadcast %cst_46 : f32 to vector<8x32xf32>
    %141 = arith.addf %140, %139 : vector<8x32xf32>
    %142 = arith.divf %140, %141 : vector<8x32xf32>
    %143 = vector.extract_strided_slice %130 {offsets = [0, 32], sizes = [8, 32], strides = [1, 1]} : vector<8x96xf32> to vector<8x32xf32>
    %144 = vector.extract_strided_slice %134 {offsets = [0, 32], sizes = [8, 32], strides = [1, 1]} : vector<8x96xf32> to vector<8x32xf32>
    %145 = arith.addf %143, %144 : vector<8x32xf32>
    %146 = arith.negf %145 : vector<8x32xf32>
    %147 = math.exp %146 : vector<8x32xf32>
    %cst_47 = arith.constant 1.000000e+00 : f32
    %148 = vector.broadcast %cst_47 : f32 to vector<8x32xf32>
    %149 = arith.addf %148, %147 : vector<8x32xf32>
    %150 = arith.divf %148, %149 : vector<8x32xf32>
    %151 = vector.extract_strided_slice %130 {offsets = [0, 64], sizes = [8, 32], strides = [1, 1]} : vector<8x96xf32> to vector<8x32xf32>
    %152 = vector.extract_strided_slice %134 {offsets = [0, 64], sizes = [8, 32], strides = [1, 1]} : vector<8x96xf32> to vector<8x32xf32>
    %153 = arith.mulf %142, %152 : vector<8x32xf32>
    %154 = arith.addf %151, %153 : vector<8x32xf32>
    %155 = math.tanh %154 : vector<8x32xf32>
    %cst_48 = arith.constant 1.000000e+00 : f32
    %156 = vector.broadcast %cst_48 : f32 to vector<8x32xf32>
    %157 = arith.subf %156, %150 : vector<8x32xf32>
    %158 = arith.mulf %157, %155 : vector<8x32xf32>
    %159 = arith.mulf %150, %87 : vector<8x32xf32>
    %160 = arith.addf %158, %159 : vector<8x32xf32>
    %161 = arith.index_cast %93 : i32 to index
    %c0_49 = arith.constant 0 : index
    %162 = vector.load %arg12[%161, %c0_49] : memref<64x32xf32, #tpu.memory_space<vmem>>, vector<8x32xf32>
    tpu.vector_store %arg12[%161, %c0_49], %128 {strides = array<i32>} : memref<64x32xf32, #tpu.memory_space<vmem>>, vector<8x32xf32>,
    %163 = arith.index_cast %96 : i32 to index
    %c0_50 = arith.constant 0 : index
    %164 = vector.load %arg13[%163, %c0_50] : memref<64x32xf32, #tpu.memory_space<vmem>>, vector<8x32xf32>
    tpu.vector_store %arg13[%163, %c0_50], %160 {strides = array<i32>} : memref<64x32xf32, #tpu.memory_space<vmem>>, vector<8x32xf32>,
    %c2_i32 = arith.constant 2 : i32
    %c8_i32_51 = arith.constant 8 : i32
    %165 = arith.muli %c2_i32, %c8_i32_51 : i32
    %166 = tpu.assume_multiple %165, 8 : i32
    %c7_i32_52 = arith.constant 7 : i32
    %167 = arith.subi %c7_i32_52, %c2_i32 : i32
    %c8_i32_53 = arith.constant 8 : i32
    %168 = arith.muli %167, %c8_i32_53 : i32
    %169 = tpu.assume_multiple %168, 8 : i32
    %170 = arith.index_cast %166 : i32 to index
    %c0_54 = arith.constant 0 : index
    %171 = vector.load %arg15[%170, %c0_54] : memref<64x96xf32, #tpu.memory_space<vmem>>, vector<8x96xf32>
    %172 = arith.truncf %128 : vector<8x32xf32> to vector<8x32xbf16>
    %cst_55 = arith.constant dense<0.000000e+00> : vector<8x96xf32>
    %173 = tpu.matmul %172, %14, %cst_55 {dimension_numbers = #tpu.dot_dimension_numbers<[1], [0], [0], [1], [0, 0, 1, 1], [], []>} : vector<8x32xbf16>, vector<32x96xbf16>, vector<8x96xf32> -> vector<8x96xf32>
    %174 = vector.broadcast %15 : vector<1x96xf32> to vector<8x96xf32>
    %175 = arith.addf %173, %174 : vector<8x96xf32>
    %176 = vector.extract_strided_slice %171 {offsets = [0, 0], sizes = [8, 32], strides = [1, 1]} : vector<8x96xf32> to vector<8x32xf32>
    %177 = vector.extract_strided_slice %175 {offsets = [0, 0], sizes = [8, 32], strides = [1, 1]} : vector<8x96xf32> to vector<8x32xf32>
    %178 = arith.addf %176, %177 : vector<8x32xf32>
    %179 = arith.negf %178 : vector<8x32xf32>
    %180 = math.exp %179 : vector<8x32xf32>
    %cst_56 = arith.constant 1.000000e+00 : f32
    %181 = vector.broadcast %cst_56 : f32 to vector<8x32xf32>
    %182 = arith.addf %181, %180 : vector<8x32xf32>
    %183 = arith.divf %181, %182 : vector<8x32xf32>
    %184 = vector.extract_strided_slice %171 {offsets = [0, 32], sizes = [8, 32], strides = [1, 1]} : vector<8x96xf32> to vector<8x32xf32>
    %185 = vector.extract_strided_slice %175 {offsets = [0, 32], sizes = [8, 32], strides = [1, 1]} : vector<8x96xf32> to vector<8x32xf32>
    %186 = arith.addf %184, %185 : vector<8x32xf32>
    %187 = arith.negf %186 : vector<8x32xf32>
    %188 = math.exp %187 : vector<8x32xf32>
    %cst_57 = arith.constant 1.000000e+00 : f32
    %189 = vector.broadcast %cst_57 : f32 to vector<8x32xf32>
    %190 = arith.addf %189, %188 : vector<8x32xf32>
    %191 = arith.divf %189, %190 : vector<8x32xf32>
    %192 = vector.extract_strided_slice %171 {offsets = [0, 64], sizes = [8, 32], strides = [1, 1]} : vector<8x96xf32> to vector<8x32xf32>
    %193 = vector.extract_strided_slice %175 {offsets = [0, 64], sizes = [8, 32], strides = [1, 1]} : vector<8x96xf32> to vector<8x32xf32>
    %194 = arith.mulf %183, %193 : vector<8x32xf32>
    %195 = arith.addf %192, %194 : vector<8x32xf32>
    %196 = math.tanh %195 : vector<8x32xf32>
    %cst_58 = arith.constant 1.000000e+00 : f32
    %197 = vector.broadcast %cst_58 : f32 to vector<8x32xf32>
    %198 = arith.subf %197, %191 : vector<8x32xf32>
    %199 = arith.mulf %198, %196 : vector<8x32xf32>
    %200 = arith.mulf %191, %128 : vector<8x32xf32>
    %201 = arith.addf %199, %200 : vector<8x32xf32>
    %202 = arith.index_cast %169 : i32 to index
    %c0_59 = arith.constant 0 : index
    %203 = vector.load %arg16[%202, %c0_59] : memref<64x96xf32, #tpu.memory_space<vmem>>, vector<8x96xf32>
    %204 = arith.truncf %160 : vector<8x32xf32> to vector<8x32xbf16>
    %cst_60 = arith.constant dense<0.000000e+00> : vector<8x96xf32>
    %205 = tpu.matmul %204, %16, %cst_60 {dimension_numbers = #tpu.dot_dimension_numbers<[1], [0], [0], [1], [0, 0, 1, 1], [], []>} : vector<8x32xbf16>, vector<32x96xbf16>, vector<8x96xf32> -> vector<8x96xf32>
    %206 = vector.broadcast %17 : vector<1x96xf32> to vector<8x96xf32>
    %207 = arith.addf %205, %206 : vector<8x96xf32>
    %208 = vector.extract_strided_slice %203 {offsets = [0, 0], sizes = [8, 32], strides = [1, 1]} : vector<8x96xf32> to vector<8x32xf32>
    %209 = vector.extract_strided_slice %207 {offsets = [0, 0], sizes = [8, 32], strides = [1, 1]} : vector<8x96xf32> to vector<8x32xf32>
    %210 = arith.addf %208, %209 : vector<8x32xf32>
    %211 = arith.negf %210 : vector<8x32xf32>
    %212 = math.exp %211 : vector<8x32xf32>
    %cst_61 = arith.constant 1.000000e+00 : f32
    %213 = vector.broadcast %cst_61 : f32 to vector<8x32xf32>
    %214 = arith.addf %213, %212 : vector<8x32xf32>
    %215 = arith.divf %213, %214 : vector<8x32xf32>
    %216 = vector.extract_strided_slice %203 {offsets = [0, 32], sizes = [8, 32], strides = [1, 1]} : vector<8x96xf32> to vector<8x32xf32>
    %217 = vector.extract_strided_slice %207 {offsets = [0, 32], sizes = [8, 32], strides = [1, 1]} : vector<8x96xf32> to vector<8x32xf32>
    %218 = arith.addf %216, %217 : vector<8x32xf32>
    %219 = arith.negf %218 : vector<8x32xf32>
    %220 = math.exp %219 : vector<8x32xf32>
    %cst_62 = arith.constant 1.000000e+00 : f32
    %221 = vector.broadcast %cst_62 : f32 to vector<8x32xf32>
    %222 = arith.addf %221, %220 : vector<8x32xf32>
    %223 = arith.divf %221, %222 : vector<8x32xf32>
    %224 = vector.extract_strided_slice %203 {offsets = [0, 64], sizes = [8, 32], strides = [1, 1]} : vector<8x96xf32> to vector<8x32xf32>
    %225 = vector.extract_strided_slice %207 {offsets = [0, 64], sizes = [8, 32], strides = [1, 1]} : vector<8x96xf32> to vector<8x32xf32>
    %226 = arith.mulf %215, %225 : vector<8x32xf32>
    %227 = arith.addf %224, %226 : vector<8x32xf32>
    %228 = math.tanh %227 : vector<8x32xf32>
    %cst_63 = arith.constant 1.000000e+00 : f32
    %229 = vector.broadcast %cst_63 : f32 to vector<8x32xf32>
    %230 = arith.subf %229, %223 : vector<8x32xf32>
    %231 = arith.mulf %230, %228 : vector<8x32xf32>
    %232 = arith.mulf %223, %160 : vector<8x32xf32>
    %233 = arith.addf %231, %232 : vector<8x32xf32>
    %234 = arith.index_cast %166 : i32 to index
    %c0_64 = arith.constant 0 : index
    %235 = vector.load %arg12[%234, %c0_64] : memref<64x32xf32, #tpu.memory_space<vmem>>, vector<8x32xf32>
    tpu.vector_store %arg12[%234, %c0_64], %201 {strides = array<i32>} : memref<64x32xf32, #tpu.memory_space<vmem>>, vector<8x32xf32>,
    %236 = arith.index_cast %169 : i32 to index
    %c0_65 = arith.constant 0 : index
    %237 = vector.load %arg13[%236, %c0_65] : memref<64x32xf32, #tpu.memory_space<vmem>>, vector<8x32xf32>
    tpu.vector_store %arg13[%236, %c0_65], %233 {strides = array<i32>} : memref<64x32xf32, #tpu.memory_space<vmem>>, vector<8x32xf32>,
    %c3_i32 = arith.constant 3 : i32
    %c8_i32_66 = arith.constant 8 : i32
    %238 = arith.muli %c3_i32, %c8_i32_66 : i32
    %239 = tpu.assume_multiple %238, 8 : i32
    %c7_i32_67 = arith.constant 7 : i32
    %240 = arith.subi %c7_i32_67, %c3_i32 : i32
    %c8_i32_68 = arith.constant 8 : i32
    %241 = arith.muli %240, %c8_i32_68 : i32
    %242 = tpu.assume_multiple %241, 8 : i32
    %243 = arith.index_cast %239 : i32 to index
    %c0_69 = arith.constant 0 : index
    %244 = vector.load %arg15[%243, %c0_69] : memref<64x96xf32, #tpu.memory_space<vmem>>, vector<8x96xf32>
    %245 = arith.truncf %201 : vector<8x32xf32> to vector<8x32xbf16>
    %cst_70 = arith.constant dense<0.000000e+00> : vector<8x96xf32>
    %246 = tpu.matmul %245, %14, %cst_70 {dimension_numbers = #tpu.dot_dimension_numbers<[1], [0], [0], [1], [0, 0, 1, 1], [], []>} : vector<8x32xbf16>, vector<32x96xbf16>, vector<8x96xf32> -> vector<8x96xf32>
    %247 = vector.broadcast %15 : vector<1x96xf32> to vector<8x96xf32>
    %248 = arith.addf %246, %247 : vector<8x96xf32>
    %249 = vector.extract_strided_slice %244 {offsets = [0, 0], sizes = [8, 32], strides = [1, 1]} : vector<8x96xf32> to vector<8x32xf32>
    %250 = vector.extract_strided_slice %248 {offsets = [0, 0], sizes = [8, 32], strides = [1, 1]} : vector<8x96xf32> to vector<8x32xf32>
    %251 = arith.addf %249, %250 : vector<8x32xf32>
    %252 = arith.negf %251 : vector<8x32xf32>
    %253 = math.exp %252 : vector<8x32xf32>
    %cst_71 = arith.constant 1.000000e+00 : f32
    %254 = vector.broadcast %cst_71 : f32 to vector<8x32xf32>
    %255 = arith.addf %254, %253 : vector<8x32xf32>
    %256 = arith.divf %254, %255 : vector<8x32xf32>
    %257 = vector.extract_strided_slice %244 {offsets = [0, 32], sizes = [8, 32], strides = [1, 1]} : vector<8x96xf32> to vector<8x32xf32>
    %258 = vector.extract_strided_slice %248 {offsets = [0, 32], sizes = [8, 32], strides = [1, 1]} : vector<8x96xf32> to vector<8x32xf32>
    %259 = arith.addf %257, %258 : vector<8x32xf32>
    %260 = arith.negf %259 : vector<8x32xf32>
    %261 = math.exp %260 : vector<8x32xf32>
    %cst_72 = arith.constant 1.000000e+00 : f32
    %262 = vector.broadcast %cst_72 : f32 to vector<8x32xf32>
    %263 = arith.addf %262, %261 : vector<8x32xf32>
    %264 = arith.divf %262, %263 : vector<8x32xf32>
    %265 = vector.extract_strided_slice %244 {offsets = [0, 64], sizes = [8, 32], strides = [1, 1]} : vector<8x96xf32> to vector<8x32xf32>
    %266 = vector.extract_strided_slice %248 {offsets = [0, 64], sizes = [8, 32], strides = [1, 1]} : vector<8x96xf32> to vector<8x32xf32>
    %267 = arith.mulf %256, %266 : vector<8x32xf32>
    %268 = arith.addf %265, %267 : vector<8x32xf32>
    %269 = math.tanh %268 : vector<8x32xf32>
    %cst_73 = arith.constant 1.000000e+00 : f32
    %270 = vector.broadcast %cst_73 : f32 to vector<8x32xf32>
    %271 = arith.subf %270, %264 : vector<8x32xf32>
    %272 = arith.mulf %271, %269 : vector<8x32xf32>
    %273 = arith.mulf %264, %201 : vector<8x32xf32>
    %274 = arith.addf %272, %273 : vector<8x32xf32>
    %275 = arith.index_cast %242 : i32 to index
    %c0_74 = arith.constant 0 : index
    %276 = vector.load %arg16[%275, %c0_74] : memref<64x96xf32, #tpu.memory_space<vmem>>, vector<8x96xf32>
    %277 = arith.truncf %233 : vector<8x32xf32> to vector<8x32xbf16>
    %cst_75 = arith.constant dense<0.000000e+00> : vector<8x96xf32>
    %278 = tpu.matmul %277, %16, %cst_75 {dimension_numbers = #tpu.dot_dimension_numbers<[1], [0], [0], [1], [0, 0, 1, 1], [], []>} : vector<8x32xbf16>, vector<32x96xbf16>, vector<8x96xf32> -> vector<8x96xf32>
    %279 = vector.broadcast %17 : vector<1x96xf32> to vector<8x96xf32>
    %280 = arith.addf %278, %279 : vector<8x96xf32>
    %281 = vector.extract_strided_slice %276 {offsets = [0, 0], sizes = [8, 32], strides = [1, 1]} : vector<8x96xf32> to vector<8x32xf32>
    %282 = vector.extract_strided_slice %280 {offsets = [0, 0], sizes = [8, 32], strides = [1, 1]} : vector<8x96xf32> to vector<8x32xf32>
    %283 = arith.addf %281, %282 : vector<8x32xf32>
    %284 = arith.negf %283 : vector<8x32xf32>
    %285 = math.exp %284 : vector<8x32xf32>
    %cst_76 = arith.constant 1.000000e+00 : f32
    %286 = vector.broadcast %cst_76 : f32 to vector<8x32xf32>
    %287 = arith.addf %286, %285 : vector<8x32xf32>
    %288 = arith.divf %286, %287 : vector<8x32xf32>
    %289 = vector.extract_strided_slice %276 {offsets = [0, 32], sizes = [8, 32], strides = [1, 1]} : vector<8x96xf32> to vector<8x32xf32>
    %290 = vector.extract_strided_slice %280 {offsets = [0, 32], sizes = [8, 32], strides = [1, 1]} : vector<8x96xf32> to vector<8x32xf32>
    %291 = arith.addf %289, %290 : vector<8x32xf32>
    %292 = arith.negf %291 : vector<8x32xf32>
    %293 = math.exp %292 : vector<8x32xf32>
    %cst_77 = arith.constant 1.000000e+00 : f32
    %294 = vector.broadcast %cst_77 : f32 to vector<8x32xf32>
    %295 = arith.addf %294, %293 : vector<8x32xf32>
    %296 = arith.divf %294, %295 : vector<8x32xf32>
    %297 = vector.extract_strided_slice %276 {offsets = [0, 64], sizes = [8, 32], strides = [1, 1]} : vector<8x96xf32> to vector<8x32xf32>
    %298 = vector.extract_strided_slice %280 {offsets = [0, 64], sizes = [8, 32], strides = [1, 1]} : vector<8x96xf32> to vector<8x32xf32>
    %299 = arith.mulf %288, %298 : vector<8x32xf32>
    %300 = arith.addf %297, %299 : vector<8x32xf32>
    %301 = math.tanh %300 : vector<8x32xf32>
    %cst_78 = arith.constant 1.000000e+00 : f32
    %302 = vector.broadcast %cst_78 : f32 to vector<8x32xf32>
    %303 = arith.subf %302, %296 : vector<8x32xf32>
    %304 = arith.mulf %303, %301 : vector<8x32xf32>
    %305 = arith.mulf %296, %233 : vector<8x32xf32>
    %306 = arith.addf %304, %305 : vector<8x32xf32>
    %307 = arith.index_cast %239 : i32 to index
    %c0_79 = arith.constant 0 : index
    %308 = vector.load %arg12[%307, %c0_79] : memref<64x32xf32, #tpu.memory_space<vmem>>, vector<8x32xf32>
    tpu.vector_store %arg12[%307, %c0_79], %274 {strides = array<i32>} : memref<64x32xf32, #tpu.memory_space<vmem>>, vector<8x32xf32>,
    %309 = arith.index_cast %242 : i32 to index
    %c0_80 = arith.constant 0 : index
    %310 = vector.load %arg13[%309, %c0_80] : memref<64x32xf32, #tpu.memory_space<vmem>>, vector<8x32xf32>
    tpu.vector_store %arg13[%309, %c0_80], %306 {strides = array<i32>} : memref<64x32xf32, #tpu.memory_space<vmem>>, vector<8x32xf32>,
    %c4_i32 = arith.constant 4 : i32
    %c8_i32_81 = arith.constant 8 : i32
    %311 = arith.muli %c4_i32, %c8_i32_81 : i32
    %312 = tpu.assume_multiple %311, 8 : i32
    %c7_i32_82 = arith.constant 7 : i32
    %313 = arith.subi %c7_i32_82, %c4_i32 : i32
    %c8_i32_83 = arith.constant 8 : i32
    %314 = arith.muli %313, %c8_i32_83 : i32
    %315 = tpu.assume_multiple %314, 8 : i32
    %316 = arith.index_cast %312 : i32 to index
    %c0_84 = arith.constant 0 : index
    %317 = vector.load %arg15[%316, %c0_84] : memref<64x96xf32, #tpu.memory_space<vmem>>, vector<8x96xf32>
    %318 = arith.truncf %274 : vector<8x32xf32> to vector<8x32xbf16>
    %cst_85 = arith.constant dense<0.000000e+00> : vector<8x96xf32>
    %319 = tpu.matmul %318, %14, %cst_85 {dimension_numbers = #tpu.dot_dimension_numbers<[1], [0], [0], [1], [0, 0, 1, 1], [], []>} : vector<8x32xbf16>, vector<32x96xbf16>, vector<8x96xf32> -> vector<8x96xf32>
    %320 = vector.broadcast %15 : vector<1x96xf32> to vector<8x96xf32>
    %321 = arith.addf %319, %320 : vector<8x96xf32>
    %322 = vector.extract_strided_slice %317 {offsets = [0, 0], sizes = [8, 32], strides = [1, 1]} : vector<8x96xf32> to vector<8x32xf32>
    %323 = vector.extract_strided_slice %321 {offsets = [0, 0], sizes = [8, 32], strides = [1, 1]} : vector<8x96xf32> to vector<8x32xf32>
    %324 = arith.addf %322, %323 : vector<8x32xf32>
    %325 = arith.negf %324 : vector<8x32xf32>
    %326 = math.exp %325 : vector<8x32xf32>
    %cst_86 = arith.constant 1.000000e+00 : f32
    %327 = vector.broadcast %cst_86 : f32 to vector<8x32xf32>
    %328 = arith.addf %327, %326 : vector<8x32xf32>
    %329 = arith.divf %327, %328 : vector<8x32xf32>
    %330 = vector.extract_strided_slice %317 {offsets = [0, 32], sizes = [8, 32], strides = [1, 1]} : vector<8x96xf32> to vector<8x32xf32>
    %331 = vector.extract_strided_slice %321 {offsets = [0, 32], sizes = [8, 32], strides = [1, 1]} : vector<8x96xf32> to vector<8x32xf32>
    %332 = arith.addf %330, %331 : vector<8x32xf32>
    %333 = arith.negf %332 : vector<8x32xf32>
    %334 = math.exp %333 : vector<8x32xf32>
    %cst_87 = arith.constant 1.000000e+00 : f32
    %335 = vector.broadcast %cst_87 : f32 to vector<8x32xf32>
    %336 = arith.addf %335, %334 : vector<8x32xf32>
    %337 = arith.divf %335, %336 : vector<8x32xf32>
    %338 = vector.extract_strided_slice %317 {offsets = [0, 64], sizes = [8, 32], strides = [1, 1]} : vector<8x96xf32> to vector<8x32xf32>
    %339 = vector.extract_strided_slice %321 {offsets = [0, 64], sizes = [8, 32], strides = [1, 1]} : vector<8x96xf32> to vector<8x32xf32>
    %340 = arith.mulf %329, %339 : vector<8x32xf32>
    %341 = arith.addf %338, %340 : vector<8x32xf32>
    %342 = math.tanh %341 : vector<8x32xf32>
    %cst_88 = arith.constant 1.000000e+00 : f32
    %343 = vector.broadcast %cst_88 : f32 to vector<8x32xf32>
    %344 = arith.subf %343, %337 : vector<8x32xf32>
    %345 = arith.mulf %344, %342 : vector<8x32xf32>
    %346 = arith.mulf %337, %274 : vector<8x32xf32>
    %347 = arith.addf %345, %346 : vector<8x32xf32>
    %348 = arith.index_cast %315 : i32 to index
    %c0_89 = arith.constant 0 : index
    %349 = vector.load %arg16[%348, %c0_89] : memref<64x96xf32, #tpu.memory_space<vmem>>, vector<8x96xf32>
    %350 = arith.truncf %306 : vector<8x32xf32> to vector<8x32xbf16>
    %cst_90 = arith.constant dense<0.000000e+00> : vector<8x96xf32>
    %351 = tpu.matmul %350, %16, %cst_90 {dimension_numbers = #tpu.dot_dimension_numbers<[1], [0], [0], [1], [0, 0, 1, 1], [], []>} : vector<8x32xbf16>, vector<32x96xbf16>, vector<8x96xf32> -> vector<8x96xf32>
    %352 = vector.broadcast %17 : vector<1x96xf32> to vector<8x96xf32>
    %353 = arith.addf %351, %352 : vector<8x96xf32>
    %354 = vector.extract_strided_slice %349 {offsets = [0, 0], sizes = [8, 32], strides = [1, 1]} : vector<8x96xf32> to vector<8x32xf32>
    %355 = vector.extract_strided_slice %353 {offsets = [0, 0], sizes = [8, 32], strides = [1, 1]} : vector<8x96xf32> to vector<8x32xf32>
    %356 = arith.addf %354, %355 : vector<8x32xf32>
    %357 = arith.negf %356 : vector<8x32xf32>
    %358 = math.exp %357 : vector<8x32xf32>
    %cst_91 = arith.constant 1.000000e+00 : f32
    %359 = vector.broadcast %cst_91 : f32 to vector<8x32xf32>
    %360 = arith.addf %359, %358 : vector<8x32xf32>
    %361 = arith.divf %359, %360 : vector<8x32xf32>
    %362 = vector.extract_strided_slice %349 {offsets = [0, 32], sizes = [8, 32], strides = [1, 1]} : vector<8x96xf32> to vector<8x32xf32>
    %363 = vector.extract_strided_slice %353 {offsets = [0, 32], sizes = [8, 32], strides = [1, 1]} : vector<8x96xf32> to vector<8x32xf32>
    %364 = arith.addf %362, %363 : vector<8x32xf32>
    %365 = arith.negf %364 : vector<8x32xf32>
    %366 = math.exp %365 : vector<8x32xf32>
    %cst_92 = arith.constant 1.000000e+00 : f32
    %367 = vector.broadcast %cst_92 : f32 to vector<8x32xf32>
    %368 = arith.addf %367, %366 : vector<8x32xf32>
    %369 = arith.divf %367, %368 : vector<8x32xf32>
    %370 = vector.extract_strided_slice %349 {offsets = [0, 64], sizes = [8, 32], strides = [1, 1]} : vector<8x96xf32> to vector<8x32xf32>
    %371 = vector.extract_strided_slice %353 {offsets = [0, 64], sizes = [8, 32], strides = [1, 1]} : vector<8x96xf32> to vector<8x32xf32>
    %372 = arith.mulf %361, %371 : vector<8x32xf32>
    %373 = arith.addf %370, %372 : vector<8x32xf32>
    %374 = math.tanh %373 : vector<8x32xf32>
    %cst_93 = arith.constant 1.000000e+00 : f32
    %375 = vector.broadcast %cst_93 : f32 to vector<8x32xf32>
    %376 = arith.subf %375, %369 : vector<8x32xf32>
    %377 = arith.mulf %376, %374 : vector<8x32xf32>
    %378 = arith.mulf %369, %306 : vector<8x32xf32>
    %379 = arith.addf %377, %378 : vector<8x32xf32>
    %380 = arith.index_cast %312 : i32 to index
    %c0_94 = arith.constant 0 : index
    %381 = vector.load %arg12[%380, %c0_94] : memref<64x32xf32, #tpu.memory_space<vmem>>, vector<8x32xf32>
    tpu.vector_store %arg12[%380, %c0_94], %347 {strides = array<i32>} : memref<64x32xf32, #tpu.memory_space<vmem>>, vector<8x32xf32>,
    %382 = arith.index_cast %315 : i32 to index
    %c0_95 = arith.constant 0 : index
    %383 = vector.load %arg13[%382, %c0_95] : memref<64x32xf32, #tpu.memory_space<vmem>>, vector<8x32xf32>
    tpu.vector_store %arg13[%382, %c0_95], %379 {strides = array<i32>} : memref<64x32xf32, #tpu.memory_space<vmem>>, vector<8x32xf32>,
    %c5_i32 = arith.constant 5 : i32
    %c8_i32_96 = arith.constant 8 : i32
    %384 = arith.muli %c5_i32, %c8_i32_96 : i32
    %385 = tpu.assume_multiple %384, 8 : i32
    %c7_i32_97 = arith.constant 7 : i32
    %386 = arith.subi %c7_i32_97, %c5_i32 : i32
    %c8_i32_98 = arith.constant 8 : i32
    %387 = arith.muli %386, %c8_i32_98 : i32
    %388 = tpu.assume_multiple %387, 8 : i32
    %389 = arith.index_cast %385 : i32 to index
    %c0_99 = arith.constant 0 : index
    %390 = vector.load %arg15[%389, %c0_99] : memref<64x96xf32, #tpu.memory_space<vmem>>, vector<8x96xf32>
    %391 = arith.truncf %347 : vector<8x32xf32> to vector<8x32xbf16>
    %cst_100 = arith.constant dense<0.000000e+00> : vector<8x96xf32>
    %392 = tpu.matmul %391, %14, %cst_100 {dimension_numbers = #tpu.dot_dimension_numbers<[1], [0], [0], [1], [0, 0, 1, 1], [], []>} : vector<8x32xbf16>, vector<32x96xbf16>, vector<8x96xf32> -> vector<8x96xf32>
    %393 = vector.broadcast %15 : vector<1x96xf32> to vector<8x96xf32>
    %394 = arith.addf %392, %393 : vector<8x96xf32>
    %395 = vector.extract_strided_slice %390 {offsets = [0, 0], sizes = [8, 32], strides = [1, 1]} : vector<8x96xf32> to vector<8x32xf32>
    %396 = vector.extract_strided_slice %394 {offsets = [0, 0], sizes = [8, 32], strides = [1, 1]} : vector<8x96xf32> to vector<8x32xf32>
    %397 = arith.addf %395, %396 : vector<8x32xf32>
    %398 = arith.negf %397 : vector<8x32xf32>
    %399 = math.exp %398 : vector<8x32xf32>
    %cst_101 = arith.constant 1.000000e+00 : f32
    %400 = vector.broadcast %cst_101 : f32 to vector<8x32xf32>
    %401 = arith.addf %400, %399 : vector<8x32xf32>
    %402 = arith.divf %400, %401 : vector<8x32xf32>
    %403 = vector.extract_strided_slice %390 {offsets = [0, 32], sizes = [8, 32], strides = [1, 1]} : vector<8x96xf32> to vector<8x32xf32>
    %404 = vector.extract_strided_slice %394 {offsets = [0, 32], sizes = [8, 32], strides = [1, 1]} : vector<8x96xf32> to vector<8x32xf32>
    %405 = arith.addf %403, %404 : vector<8x32xf32>
    %406 = arith.negf %405 : vector<8x32xf32>
    %407 = math.exp %406 : vector<8x32xf32>
    %cst_102 = arith.constant 1.000000e+00 : f32
    %408 = vector.broadcast %cst_102 : f32 to vector<8x32xf32>
    %409 = arith.addf %408, %407 : vector<8x32xf32>
    %410 = arith.divf %408, %409 : vector<8x32xf32>
    %411 = vector.extract_strided_slice %390 {offsets = [0, 64], sizes = [8, 32], strides = [1, 1]} : vector<8x96xf32> to vector<8x32xf32>
    %412 = vector.extract_strided_slice %394 {offsets = [0, 64], sizes = [8, 32], strides = [1, 1]} : vector<8x96xf32> to vector<8x32xf32>
    %413 = arith.mulf %402, %412 : vector<8x32xf32>
    %414 = arith.addf %411, %413 : vector<8x32xf32>
    %415 = math.tanh %414 : vector<8x32xf32>
    %cst_103 = arith.constant 1.000000e+00 : f32
    %416 = vector.broadcast %cst_103 : f32 to vector<8x32xf32>
    %417 = arith.subf %416, %410 : vector<8x32xf32>
    %418 = arith.mulf %417, %415 : vector<8x32xf32>
    %419 = arith.mulf %410, %347 : vector<8x32xf32>
    %420 = arith.addf %418, %419 : vector<8x32xf32>
    %421 = arith.index_cast %388 : i32 to index
    %c0_104 = arith.constant 0 : index
    %422 = vector.load %arg16[%421, %c0_104] : memref<64x96xf32, #tpu.memory_space<vmem>>, vector<8x96xf32>
    %423 = arith.truncf %379 : vector<8x32xf32> to vector<8x32xbf16>
    %cst_105 = arith.constant dense<0.000000e+00> : vector<8x96xf32>
    %424 = tpu.matmul %423, %16, %cst_105 {dimension_numbers = #tpu.dot_dimension_numbers<[1], [0], [0], [1], [0, 0, 1, 1], [], []>} : vector<8x32xbf16>, vector<32x96xbf16>, vector<8x96xf32> -> vector<8x96xf32>
    %425 = vector.broadcast %17 : vector<1x96xf32> to vector<8x96xf32>
    %426 = arith.addf %424, %425 : vector<8x96xf32>
    %427 = vector.extract_strided_slice %422 {offsets = [0, 0], sizes = [8, 32], strides = [1, 1]} : vector<8x96xf32> to vector<8x32xf32>
    %428 = vector.extract_strided_slice %426 {offsets = [0, 0], sizes = [8, 32], strides = [1, 1]} : vector<8x96xf32> to vector<8x32xf32>
    %429 = arith.addf %427, %428 : vector<8x32xf32>
    %430 = arith.negf %429 : vector<8x32xf32>
    %431 = math.exp %430 : vector<8x32xf32>
    %cst_106 = arith.constant 1.000000e+00 : f32
    %432 = vector.broadcast %cst_106 : f32 to vector<8x32xf32>
    %433 = arith.addf %432, %431 : vector<8x32xf32>
    %434 = arith.divf %432, %433 : vector<8x32xf32>
    %435 = vector.extract_strided_slice %422 {offsets = [0, 32], sizes = [8, 32], strides = [1, 1]} : vector<8x96xf32> to vector<8x32xf32>
    %436 = vector.extract_strided_slice %426 {offsets = [0, 32], sizes = [8, 32], strides = [1, 1]} : vector<8x96xf32> to vector<8x32xf32>
    %437 = arith.addf %435, %436 : vector<8x32xf32>
    %438 = arith.negf %437 : vector<8x32xf32>
    %439 = math.exp %438 : vector<8x32xf32>
    %cst_107 = arith.constant 1.000000e+00 : f32
    %440 = vector.broadcast %cst_107 : f32 to vector<8x32xf32>
    %441 = arith.addf %440, %439 : vector<8x32xf32>
    %442 = arith.divf %440, %441 : vector<8x32xf32>
    %443 = vector.extract_strided_slice %422 {offsets = [0, 64], sizes = [8, 32], strides = [1, 1]} : vector<8x96xf32> to vector<8x32xf32>
    %444 = vector.extract_strided_slice %426 {offsets = [0, 64], sizes = [8, 32], strides = [1, 1]} : vector<8x96xf32> to vector<8x32xf32>
    %445 = arith.mulf %434, %444 : vector<8x32xf32>
    %446 = arith.addf %443, %445 : vector<8x32xf32>
    %447 = math.tanh %446 : vector<8x32xf32>
    %cst_108 = arith.constant 1.000000e+00 : f32
    %448 = vector.broadcast %cst_108 : f32 to vector<8x32xf32>
    %449 = arith.subf %448, %442 : vector<8x32xf32>
    %450 = arith.mulf %449, %447 : vector<8x32xf32>
    %451 = arith.mulf %442, %379 : vector<8x32xf32>
    %452 = arith.addf %450, %451 : vector<8x32xf32>
    %453 = arith.index_cast %385 : i32 to index
    %c0_109 = arith.constant 0 : index
    %454 = vector.load %arg12[%453, %c0_109] : memref<64x32xf32, #tpu.memory_space<vmem>>, vector<8x32xf32>
    tpu.vector_store %arg12[%453, %c0_109], %420 {strides = array<i32>} : memref<64x32xf32, #tpu.memory_space<vmem>>, vector<8x32xf32>,
    %455 = arith.index_cast %388 : i32 to index
    %c0_110 = arith.constant 0 : index
    %456 = vector.load %arg13[%455, %c0_110] : memref<64x32xf32, #tpu.memory_space<vmem>>, vector<8x32xf32>
    tpu.vector_store %arg13[%455, %c0_110], %452 {strides = array<i32>} : memref<64x32xf32, #tpu.memory_space<vmem>>, vector<8x32xf32>,
    %c6_i32 = arith.constant 6 : i32
    %c8_i32_111 = arith.constant 8 : i32
    %457 = arith.muli %c6_i32, %c8_i32_111 : i32
    %458 = tpu.assume_multiple %457, 8 : i32
    %c7_i32_112 = arith.constant 7 : i32
    %459 = arith.subi %c7_i32_112, %c6_i32 : i32
    %c8_i32_113 = arith.constant 8 : i32
    %460 = arith.muli %459, %c8_i32_113 : i32
    %461 = tpu.assume_multiple %460, 8 : i32
    %462 = arith.index_cast %458 : i32 to index
    %c0_114 = arith.constant 0 : index
    %463 = vector.load %arg15[%462, %c0_114] : memref<64x96xf32, #tpu.memory_space<vmem>>, vector<8x96xf32>
    %464 = arith.truncf %420 : vector<8x32xf32> to vector<8x32xbf16>
    %cst_115 = arith.constant dense<0.000000e+00> : vector<8x96xf32>
    %465 = tpu.matmul %464, %14, %cst_115 {dimension_numbers = #tpu.dot_dimension_numbers<[1], [0], [0], [1], [0, 0, 1, 1], [], []>} : vector<8x32xbf16>, vector<32x96xbf16>, vector<8x96xf32> -> vector<8x96xf32>
    %466 = vector.broadcast %15 : vector<1x96xf32> to vector<8x96xf32>
    %467 = arith.addf %465, %466 : vector<8x96xf32>
    %468 = vector.extract_strided_slice %463 {offsets = [0, 0], sizes = [8, 32], strides = [1, 1]} : vector<8x96xf32> to vector<8x32xf32>
    %469 = vector.extract_strided_slice %467 {offsets = [0, 0], sizes = [8, 32], strides = [1, 1]} : vector<8x96xf32> to vector<8x32xf32>
    %470 = arith.addf %468, %469 : vector<8x32xf32>
    %471 = arith.negf %470 : vector<8x32xf32>
    %472 = math.exp %471 : vector<8x32xf32>
    %cst_116 = arith.constant 1.000000e+00 : f32
    %473 = vector.broadcast %cst_116 : f32 to vector<8x32xf32>
    %474 = arith.addf %473, %472 : vector<8x32xf32>
    %475 = arith.divf %473, %474 : vector<8x32xf32>
    %476 = vector.extract_strided_slice %463 {offsets = [0, 32], sizes = [8, 32], strides = [1, 1]} : vector<8x96xf32> to vector<8x32xf32>
    %477 = vector.extract_strided_slice %467 {offsets = [0, 32], sizes = [8, 32], strides = [1, 1]} : vector<8x96xf32> to vector<8x32xf32>
    %478 = arith.addf %476, %477 : vector<8x32xf32>
    %479 = arith.negf %478 : vector<8x32xf32>
    %480 = math.exp %479 : vector<8x32xf32>
    %cst_117 = arith.constant 1.000000e+00 : f32
    %481 = vector.broadcast %cst_117 : f32 to vector<8x32xf32>
    %482 = arith.addf %481, %480 : vector<8x32xf32>
    %483 = arith.divf %481, %482 : vector<8x32xf32>
    %484 = vector.extract_strided_slice %463 {offsets = [0, 64], sizes = [8, 32], strides = [1, 1]} : vector<8x96xf32> to vector<8x32xf32>
    %485 = vector.extract_strided_slice %467 {offsets = [0, 64], sizes = [8, 32], strides = [1, 1]} : vector<8x96xf32> to vector<8x32xf32>
    %486 = arith.mulf %475, %485 : vector<8x32xf32>
    %487 = arith.addf %484, %486 : vector<8x32xf32>
    %488 = math.tanh %487 : vector<8x32xf32>
    %cst_118 = arith.constant 1.000000e+00 : f32
    %489 = vector.broadcast %cst_118 : f32 to vector<8x32xf32>
    %490 = arith.subf %489, %483 : vector<8x32xf32>
    %491 = arith.mulf %490, %488 : vector<8x32xf32>
    %492 = arith.mulf %483, %420 : vector<8x32xf32>
    %493 = arith.addf %491, %492 : vector<8x32xf32>
    %494 = arith.index_cast %461 : i32 to index
    %c0_119 = arith.constant 0 : index
    %495 = vector.load %arg16[%494, %c0_119] : memref<64x96xf32, #tpu.memory_space<vmem>>, vector<8x96xf32>
    %496 = arith.truncf %452 : vector<8x32xf32> to vector<8x32xbf16>
    %cst_120 = arith.constant dense<0.000000e+00> : vector<8x96xf32>
    %497 = tpu.matmul %496, %16, %cst_120 {dimension_numbers = #tpu.dot_dimension_numbers<[1], [0], [0], [1], [0, 0, 1, 1], [], []>} : vector<8x32xbf16>, vector<32x96xbf16>, vector<8x96xf32> -> vector<8x96xf32>
    %498 = vector.broadcast %17 : vector<1x96xf32> to vector<8x96xf32>
    %499 = arith.addf %497, %498 : vector<8x96xf32>
    %500 = vector.extract_strided_slice %495 {offsets = [0, 0], sizes = [8, 32], strides = [1, 1]} : vector<8x96xf32> to vector<8x32xf32>
    %501 = vector.extract_strided_slice %499 {offsets = [0, 0], sizes = [8, 32], strides = [1, 1]} : vector<8x96xf32> to vector<8x32xf32>
    %502 = arith.addf %500, %501 : vector<8x32xf32>
    %503 = arith.negf %502 : vector<8x32xf32>
    %504 = math.exp %503 : vector<8x32xf32>
    %cst_121 = arith.constant 1.000000e+00 : f32
    %505 = vector.broadcast %cst_121 : f32 to vector<8x32xf32>
    %506 = arith.addf %505, %504 : vector<8x32xf32>
    %507 = arith.divf %505, %506 : vector<8x32xf32>
    %508 = vector.extract_strided_slice %495 {offsets = [0, 32], sizes = [8, 32], strides = [1, 1]} : vector<8x96xf32> to vector<8x32xf32>
    %509 = vector.extract_strided_slice %499 {offsets = [0, 32], sizes = [8, 32], strides = [1, 1]} : vector<8x96xf32> to vector<8x32xf32>
    %510 = arith.addf %508, %509 : vector<8x32xf32>
    %511 = arith.negf %510 : vector<8x32xf32>
    %512 = math.exp %511 : vector<8x32xf32>
    %cst_122 = arith.constant 1.000000e+00 : f32
    %513 = vector.broadcast %cst_122 : f32 to vector<8x32xf32>
    %514 = arith.addf %513, %512 : vector<8x32xf32>
    %515 = arith.divf %513, %514 : vector<8x32xf32>
    %516 = vector.extract_strided_slice %495 {offsets = [0, 64], sizes = [8, 32], strides = [1, 1]} : vector<8x96xf32> to vector<8x32xf32>
    %517 = vector.extract_strided_slice %499 {offsets = [0, 64], sizes = [8, 32], strides = [1, 1]} : vector<8x96xf32> to vector<8x32xf32>
    %518 = arith.mulf %507, %517 : vector<8x32xf32>
    %519 = arith.addf %516, %518 : vector<8x32xf32>
    %520 = math.tanh %519 : vector<8x32xf32>
    %cst_123 = arith.constant 1.000000e+00 : f32
    %521 = vector.broadcast %cst_123 : f32 to vector<8x32xf32>
    %522 = arith.subf %521, %515 : vector<8x32xf32>
    %523 = arith.mulf %522, %520 : vector<8x32xf32>
    %524 = arith.mulf %515, %452 : vector<8x32xf32>
    %525 = arith.addf %523, %524 : vector<8x32xf32>
    %526 = arith.index_cast %458 : i32 to index
    %c0_124 = arith.constant 0 : index
    %527 = vector.load %arg12[%526, %c0_124] : memref<64x32xf32, #tpu.memory_space<vmem>>, vector<8x32xf32>
    tpu.vector_store %arg12[%526, %c0_124], %493 {strides = array<i32>} : memref<64x32xf32, #tpu.memory_space<vmem>>, vector<8x32xf32>,
    %528 = arith.index_cast %461 : i32 to index
    %c0_125 = arith.constant 0 : index
    %529 = vector.load %arg13[%528, %c0_125] : memref<64x32xf32, #tpu.memory_space<vmem>>, vector<8x32xf32>
    tpu.vector_store %arg13[%528, %c0_125], %525 {strides = array<i32>} : memref<64x32xf32, #tpu.memory_space<vmem>>, vector<8x32xf32>,
    %c7_i32_126 = arith.constant 7 : i32
    %c8_i32_127 = arith.constant 8 : i32
    %530 = arith.muli %c7_i32_126, %c8_i32_127 : i32
    %531 = tpu.assume_multiple %530, 8 : i32
    %c7_i32_128 = arith.constant 7 : i32
    %532 = arith.subi %c7_i32_128, %c7_i32_126 : i32
    %c8_i32_129 = arith.constant 8 : i32
    %533 = arith.muli %532, %c8_i32_129 : i32
    %534 = tpu.assume_multiple %533, 8 : i32
    %535 = arith.index_cast %531 : i32 to index
    %c0_130 = arith.constant 0 : index
    %536 = vector.load %arg15[%535, %c0_130] : memref<64x96xf32, #tpu.memory_space<vmem>>, vector<8x96xf32>
    %537 = arith.truncf %493 : vector<8x32xf32> to vector<8x32xbf16>
    %cst_131 = arith.constant dense<0.000000e+00> : vector<8x96xf32>
    %538 = tpu.matmul %537, %14, %cst_131 {dimension_numbers = #tpu.dot_dimension_numbers<[1], [0], [0], [1], [0, 0, 1, 1], [], []>} : vector<8x32xbf16>, vector<32x96xbf16>, vector<8x96xf32> -> vector<8x96xf32>
    %539 = vector.broadcast %15 : vector<1x96xf32> to vector<8x96xf32>
    %540 = arith.addf %538, %539 : vector<8x96xf32>
    %541 = vector.extract_strided_slice %536 {offsets = [0, 0], sizes = [8, 32], strides = [1, 1]} : vector<8x96xf32> to vector<8x32xf32>
    %542 = vector.extract_strided_slice %540 {offsets = [0, 0], sizes = [8, 32], strides = [1, 1]} : vector<8x96xf32> to vector<8x32xf32>
    %543 = arith.addf %541, %542 : vector<8x32xf32>
    %544 = arith.negf %543 : vector<8x32xf32>
    %545 = math.exp %544 : vector<8x32xf32>
    %cst_132 = arith.constant 1.000000e+00 : f32
    %546 = vector.broadcast %cst_132 : f32 to vector<8x32xf32>
    %547 = arith.addf %546, %545 : vector<8x32xf32>
    %548 = arith.divf %546, %547 : vector<8x32xf32>
    %549 = vector.extract_strided_slice %536 {offsets = [0, 32], sizes = [8, 32], strides = [1, 1]} : vector<8x96xf32> to vector<8x32xf32>
    %550 = vector.extract_strided_slice %540 {offsets = [0, 32], sizes = [8, 32], strides = [1, 1]} : vector<8x96xf32> to vector<8x32xf32>
    %551 = arith.addf %549, %550 : vector<8x32xf32>
    %552 = arith.negf %551 : vector<8x32xf32>
    %553 = math.exp %552 : vector<8x32xf32>
    %cst_133 = arith.constant 1.000000e+00 : f32
    %554 = vector.broadcast %cst_133 : f32 to vector<8x32xf32>
    %555 = arith.addf %554, %553 : vector<8x32xf32>
    %556 = arith.divf %554, %555 : vector<8x32xf32>
    %557 = vector.extract_strided_slice %536 {offsets = [0, 64], sizes = [8, 32], strides = [1, 1]} : vector<8x96xf32> to vector<8x32xf32>
    %558 = vector.extract_strided_slice %540 {offsets = [0, 64], sizes = [8, 32], strides = [1, 1]} : vector<8x96xf32> to vector<8x32xf32>
    %559 = arith.mulf %548, %558 : vector<8x32xf32>
    %560 = arith.addf %557, %559 : vector<8x32xf32>
    %561 = math.tanh %560 : vector<8x32xf32>
    %cst_134 = arith.constant 1.000000e+00 : f32
    %562 = vector.broadcast %cst_134 : f32 to vector<8x32xf32>
    %563 = arith.subf %562, %556 : vector<8x32xf32>
    %564 = arith.mulf %563, %561 : vector<8x32xf32>
    %565 = arith.mulf %556, %493 : vector<8x32xf32>
    %566 = arith.addf %564, %565 : vector<8x32xf32>
    %567 = arith.index_cast %534 : i32 to index
    %c0_135 = arith.constant 0 : index
    %568 = vector.load %arg16[%567, %c0_135] : memref<64x96xf32, #tpu.memory_space<vmem>>, vector<8x96xf32>
    %569 = arith.truncf %525 : vector<8x32xf32> to vector<8x32xbf16>
    %cst_136 = arith.constant dense<0.000000e+00> : vector<8x96xf32>
    %570 = tpu.matmul %569, %16, %cst_136 {dimension_numbers = #tpu.dot_dimension_numbers<[1], [0], [0], [1], [0, 0, 1, 1], [], []>} : vector<8x32xbf16>, vector<32x96xbf16>, vector<8x96xf32> -> vector<8x96xf32>
    %571 = vector.broadcast %17 : vector<1x96xf32> to vector<8x96xf32>
    %572 = arith.addf %570, %571 : vector<8x96xf32>
    %573 = vector.extract_strided_slice %568 {offsets = [0, 0], sizes = [8, 32], strides = [1, 1]} : vector<8x96xf32> to vector<8x32xf32>
    %574 = vector.extract_strided_slice %572 {offsets = [0, 0], sizes = [8, 32], strides = [1, 1]} : vector<8x96xf32> to vector<8x32xf32>
    %575 = arith.addf %573, %574 : vector<8x32xf32>
    %576 = arith.negf %575 : vector<8x32xf32>
    %577 = math.exp %576 : vector<8x32xf32>
    %cst_137 = arith.constant 1.000000e+00 : f32
    %578 = vector.broadcast %cst_137 : f32 to vector<8x32xf32>
    %579 = arith.addf %578, %577 : vector<8x32xf32>
    %580 = arith.divf %578, %579 : vector<8x32xf32>
    %581 = vector.extract_strided_slice %568 {offsets = [0, 32], sizes = [8, 32], strides = [1, 1]} : vector<8x96xf32> to vector<8x32xf32>
    %582 = vector.extract_strided_slice %572 {offsets = [0, 32], sizes = [8, 32], strides = [1, 1]} : vector<8x96xf32> to vector<8x32xf32>
    %583 = arith.addf %581, %582 : vector<8x32xf32>
    %584 = arith.negf %583 : vector<8x32xf32>
    %585 = math.exp %584 : vector<8x32xf32>
    %cst_138 = arith.constant 1.000000e+00 : f32
    %586 = vector.broadcast %cst_138 : f32 to vector<8x32xf32>
    %587 = arith.addf %586, %585 : vector<8x32xf32>
    %588 = arith.divf %586, %587 : vector<8x32xf32>
    %589 = vector.extract_strided_slice %568 {offsets = [0, 64], sizes = [8, 32], strides = [1, 1]} : vector<8x96xf32> to vector<8x32xf32>
    %590 = vector.extract_strided_slice %572 {offsets = [0, 64], sizes = [8, 32], strides = [1, 1]} : vector<8x96xf32> to vector<8x32xf32>
    %591 = arith.mulf %580, %590 : vector<8x32xf32>
    %592 = arith.addf %589, %591 : vector<8x32xf32>
    %593 = math.tanh %592 : vector<8x32xf32>
    %cst_139 = arith.constant 1.000000e+00 : f32
    %594 = vector.broadcast %cst_139 : f32 to vector<8x32xf32>
    %595 = arith.subf %594, %588 : vector<8x32xf32>
    %596 = arith.mulf %595, %593 : vector<8x32xf32>
    %597 = arith.mulf %588, %525 : vector<8x32xf32>
    %598 = arith.addf %596, %597 : vector<8x32xf32>
    %599 = arith.index_cast %531 : i32 to index
    %c0_140 = arith.constant 0 : index
    %600 = vector.load %arg12[%599, %c0_140] : memref<64x32xf32, #tpu.memory_space<vmem>>, vector<8x32xf32>
    tpu.vector_store %arg12[%599, %c0_140], %566 {strides = array<i32>} : memref<64x32xf32, #tpu.memory_space<vmem>>, vector<8x32xf32>,
    %601 = arith.index_cast %534 : i32 to index
    %c0_141 = arith.constant 0 : index
    %602 = vector.load %arg13[%601, %c0_141] : memref<64x32xf32, #tpu.memory_space<vmem>>, vector<8x32xf32>
    tpu.vector_store %arg13[%601, %c0_141], %598 {strides = array<i32>} : memref<64x32xf32, #tpu.memory_space<vmem>>, vector<8x32xf32>,
    %c8_i32_142 = arith.constant 8 : i32
    %603 = arith.truncf %566 : vector<8x32xf32> to vector<8x32xbf16>
    %c0_143 = arith.constant 0 : index
    %c0_144 = arith.constant 0 : index
    %604 = vector.load %arg9[%c0_143, %c0_144] : memref<32x32xbf16, #tpu.memory_space<vmem>>, vector<32x32xbf16>
    %cst_145 = arith.constant dense<0.000000e+00> : vector<8x32xf32>
    %605 = tpu.matmul %603, %604, %cst_145 {dimension_numbers = #tpu.dot_dimension_numbers<[1], [0], [0], [1], [0, 0, 1, 1], [], []>} : vector<8x32xbf16>, vector<32x32xbf16>, vector<8x32xf32> -> vector<8x32xf32>
    %606 = arith.truncf %598 : vector<8x32xf32> to vector<8x32xbf16>
    %c0_146 = arith.constant 0 : index
    %c0_147 = arith.constant 0 : index
    %607 = vector.load %arg10[%c0_146, %c0_147] : memref<32x32xbf16, #tpu.memory_space<vmem>>, vector<32x32xbf16>
    %cst_148 = arith.constant dense<0.000000e+00> : vector<8x32xf32>
    %608 = tpu.matmul %606, %607, %cst_148 {dimension_numbers = #tpu.dot_dimension_numbers<[1], [0], [0], [1], [0, 0, 1, 1], [], []>} : vector<8x32xbf16>, vector<32x32xbf16>, vector<8x32xf32> -> vector<8x32xf32>
    %609 = arith.addf %605, %608 : vector<8x32xf32>
    %c0_149 = arith.constant 0 : index
    %c0_150 = arith.constant 0 : index
    %610 = vector.load %arg11[%c0_149, %c0_150] : memref<1x32xf32, #tpu.memory_space<vmem>>, vector<1x32xf32>
    %611 = vector.broadcast %610 : vector<1x32xf32> to vector<8x32xf32>
    %612 = arith.addf %609, %611 : vector<8x32xf32>
    %c0_151 = arith.constant 0 : index
    %c0_152 = arith.constant 0 : index
    %613 = vector.load %arg14[%c0_151, %c0_152] : memref<8x32xf32, #tpu.memory_space<vmem>>, vector<8x32xf32>
    tpu.vector_store %arg14[%c0_151, %c0_152], %612 {strides = array<i32>} : memref<8x32xf32, #tpu.memory_space<vmem>>, vector<8x32xf32>,
    return
  }
}

module attributes {stable_mosaic.version = 11 : i64} {
  func.func @kernel(%arg0: memref<56x32xf32, #tpu.memory_space<vmem>>, %arg1: memref<8x32xf32, #tpu.memory_space<vmem>>, %arg2: memref<8x32xf32, #tpu.memory_space<vmem>>, %arg3: memref<32x32xbf16, #tpu.memory_space<vmem>>, %arg4: memref<1x32xf32, #tpu.memory_space<vmem>>, %arg5: memref<32x192xbf16, #tpu.memory_space<vmem>>, %arg6: memref<64x192xbf16, #tpu.memory_space<vmem>>, %arg7: memref<1x192xf32, #tpu.memory_space<vmem>>, %arg8: memref<1x192xf32, #tpu.memory_space<vmem>>, %arg9: memref<64x64xbf16, #tpu.memory_space<vmem>>, %arg10: memref<1x64xf32, #tpu.memory_space<vmem>>, %arg11: memref<64x64xf32, #tpu.memory_space<vmem>>, %arg12: memref<56x192xf32, #tpu.memory_space<vmem>>, %arg13: memref<56x64xf32, #tpu.memory_space<vmem>>) attributes {dimension_semantics = [], scalar_prefetch = 0 : i64, scratch_operands = 2 : i64, tpu.core_type = #tpu.core_type<tc>} {
    %c0 = arith.constant 0 : index
    %c0_0 = arith.constant 0 : index
    %0 = vector.load %arg2[%c0, %c0_0] : memref<8x32xf32, #tpu.memory_space<vmem>>, vector<8x32xf32>
    %1 = arith.truncf %0 : vector<8x32xf32> to vector<8x32xbf16>
    %c0_1 = arith.constant 0 : index
    %c0_2 = arith.constant 0 : index
    %2 = vector.load %arg3[%c0_1, %c0_2] : memref<32x32xbf16, #tpu.memory_space<vmem>>, vector<32x32xbf16>
    %cst = arith.constant dense<0.000000e+00> : vector<8x32xf32>
    %3 = tpu.matmul %1, %2, %cst {dimension_numbers = #tpu.dot_dimension_numbers<[1], [0], [0], [1], [0, 0, 1, 1], [], []>} : vector<8x32xbf16>, vector<32x32xbf16>, vector<8x32xf32> -> vector<8x32xf32>
    %c0_3 = arith.constant 0 : index
    %c0_4 = arith.constant 0 : index
    %4 = vector.load %arg4[%c0_3, %c0_4] : memref<1x32xf32, #tpu.memory_space<vmem>>, vector<1x32xf32>
    %5 = vector.broadcast %4 : vector<1x32xf32> to vector<8x32xf32>
    %6 = arith.addf %3, %5 : vector<8x32xf32>
    %c0_5 = arith.constant 0 : index
    %c0_6 = arith.constant 0 : index
    %7 = vector.load %arg1[%c0_5, %c0_6] : memref<8x32xf32, #tpu.memory_space<vmem>>, vector<8x32xf32>
    %8 = tpu.concatenate %7, %6 in 1 : vector<8x32xf32>, vector<8x32xf32> -> vector<8x64xf32>
    %c0_7 = arith.constant 0 : index
    %c0_8 = arith.constant 0 : index
    %9 = vector.load %arg0[%c0_7, %c0_8] : memref<56x32xf32, #tpu.memory_space<vmem>>, vector<56x32xf32>
    %10 = arith.truncf %9 : vector<56x32xf32> to vector<56x32xbf16>
    %c0_9 = arith.constant 0 : index
    %c0_10 = arith.constant 0 : index
    %11 = vector.load %arg5[%c0_9, %c0_10] : memref<32x192xbf16, #tpu.memory_space<vmem>>, vector<32x192xbf16>
    %cst_11 = arith.constant dense<0.000000e+00> : vector<56x192xf32>
    %12 = tpu.matmul %10, %11, %cst_11 {dimension_numbers = #tpu.dot_dimension_numbers<[1], [0], [0], [1], [0, 0, 1, 1], [], []>} : vector<56x32xbf16>, vector<32x192xbf16>, vector<56x192xf32> -> vector<56x192xf32>
    %c0_12 = arith.constant 0 : index
    %c0_13 = arith.constant 0 : index
    %13 = vector.load %arg7[%c0_12, %c0_13] : memref<1x192xf32, #tpu.memory_space<vmem>>, vector<1x192xf32>
    %14 = vector.broadcast %13 : vector<1x192xf32> to vector<56x192xf32>
    %15 = arith.addf %12, %14 : vector<56x192xf32>
    %c0_14 = arith.constant 0 : index
    %c0_15 = arith.constant 0 : index
    %16 = vector.load %arg12[%c0_14, %c0_15] : memref<56x192xf32, #tpu.memory_space<vmem>>, vector<56x192xf32>
    tpu.vector_store %arg12[%c0_14, %c0_15], %15 {strides = array<i32>} : memref<56x192xf32, #tpu.memory_space<vmem>>, vector<56x192xf32>,
    %c0_16 = arith.constant 0 : index
    %c0_17 = arith.constant 0 : index
    %17 = vector.load %arg6[%c0_16, %c0_17] : memref<64x192xbf16, #tpu.memory_space<vmem>>, vector<64x192xbf16>
    %c0_18 = arith.constant 0 : index
    %c0_19 = arith.constant 0 : index
    %18 = vector.load %arg8[%c0_18, %c0_19] : memref<1x192xf32, #tpu.memory_space<vmem>>, vector<1x192xf32>
    %c0_i32 = arith.constant 0 : i32
    %c8_i32 = arith.constant 8 : i32
    %19 = arith.muli %c0_i32, %c8_i32 : i32
    %20 = tpu.assume_multiple %19, 8 : i32
    %21 = arith.index_cast %20 : i32 to index
    %c0_20 = arith.constant 0 : index
    %22 = vector.load %arg12[%21, %c0_20] : memref<56x192xf32, #tpu.memory_space<vmem>>, vector<8x192xf32>
    %23 = arith.truncf %8 : vector<8x64xf32> to vector<8x64xbf16>
    %cst_21 = arith.constant dense<0.000000e+00> : vector<8x192xf32>
    %24 = tpu.matmul %23, %17, %cst_21 {dimension_numbers = #tpu.dot_dimension_numbers<[1], [0], [0], [1], [0, 0, 1, 1], [], []>} : vector<8x64xbf16>, vector<64x192xbf16>, vector<8x192xf32> -> vector<8x192xf32>
    %25 = vector.broadcast %18 : vector<1x192xf32> to vector<8x192xf32>
    %26 = arith.addf %24, %25 : vector<8x192xf32>
    %27 = vector.extract_strided_slice %22 {offsets = [0, 0], sizes = [8, 64], strides = [1, 1]} : vector<8x192xf32> to vector<8x64xf32>
    %28 = vector.extract_strided_slice %26 {offsets = [0, 0], sizes = [8, 64], strides = [1, 1]} : vector<8x192xf32> to vector<8x64xf32>
    %29 = arith.addf %27, %28 : vector<8x64xf32>
    %30 = arith.negf %29 : vector<8x64xf32>
    %31 = math.exp %30 : vector<8x64xf32>
    %cst_22 = arith.constant 1.000000e+00 : f32
    %32 = vector.broadcast %cst_22 : f32 to vector<8x64xf32>
    %33 = arith.addf %32, %31 : vector<8x64xf32>
    %34 = arith.divf %32, %33 : vector<8x64xf32>
    %35 = vector.extract_strided_slice %22 {offsets = [0, 64], sizes = [8, 64], strides = [1, 1]} : vector<8x192xf32> to vector<8x64xf32>
    %36 = vector.extract_strided_slice %26 {offsets = [0, 64], sizes = [8, 64], strides = [1, 1]} : vector<8x192xf32> to vector<8x64xf32>
    %37 = arith.addf %35, %36 : vector<8x64xf32>
    %38 = arith.negf %37 : vector<8x64xf32>
    %39 = math.exp %38 : vector<8x64xf32>
    %cst_23 = arith.constant 1.000000e+00 : f32
    %40 = vector.broadcast %cst_23 : f32 to vector<8x64xf32>
    %41 = arith.addf %40, %39 : vector<8x64xf32>
    %42 = arith.divf %40, %41 : vector<8x64xf32>
    %43 = vector.extract_strided_slice %22 {offsets = [0, 128], sizes = [8, 64], strides = [1, 1]} : vector<8x192xf32> to vector<8x64xf32>
    %44 = vector.extract_strided_slice %26 {offsets = [0, 128], sizes = [8, 64], strides = [1, 1]} : vector<8x192xf32> to vector<8x64xf32>
    %45 = arith.mulf %34, %44 : vector<8x64xf32>
    %46 = arith.addf %43, %45 : vector<8x64xf32>
    %47 = math.tanh %46 : vector<8x64xf32>
    %cst_24 = arith.constant 1.000000e+00 : f32
    %48 = vector.broadcast %cst_24 : f32 to vector<8x64xf32>
    %49 = arith.subf %48, %42 : vector<8x64xf32>
    %50 = arith.mulf %49, %47 : vector<8x64xf32>
    %51 = arith.mulf %42, %8 : vector<8x64xf32>
    %52 = arith.addf %50, %51 : vector<8x64xf32>
    %53 = arith.index_cast %20 : i32 to index
    %c0_25 = arith.constant 0 : index
    %54 = vector.load %arg13[%53, %c0_25] : memref<56x64xf32, #tpu.memory_space<vmem>>, vector<8x64xf32>
    tpu.vector_store %arg13[%53, %c0_25], %52 {strides = array<i32>} : memref<56x64xf32, #tpu.memory_space<vmem>>, vector<8x64xf32>,
    %c1_i32 = arith.constant 1 : i32
    %c8_i32_26 = arith.constant 8 : i32
    %55 = arith.muli %c1_i32, %c8_i32_26 : i32
    %56 = tpu.assume_multiple %55, 8 : i32
    %57 = arith.index_cast %56 : i32 to index
    %c0_27 = arith.constant 0 : index
    %58 = vector.load %arg12[%57, %c0_27] : memref<56x192xf32, #tpu.memory_space<vmem>>, vector<8x192xf32>
    %59 = arith.truncf %52 : vector<8x64xf32> to vector<8x64xbf16>
    %cst_28 = arith.constant dense<0.000000e+00> : vector<8x192xf32>
    %60 = tpu.matmul %59, %17, %cst_28 {dimension_numbers = #tpu.dot_dimension_numbers<[1], [0], [0], [1], [0, 0, 1, 1], [], []>} : vector<8x64xbf16>, vector<64x192xbf16>, vector<8x192xf32> -> vector<8x192xf32>
    %61 = vector.broadcast %18 : vector<1x192xf32> to vector<8x192xf32>
    %62 = arith.addf %60, %61 : vector<8x192xf32>
    %63 = vector.extract_strided_slice %58 {offsets = [0, 0], sizes = [8, 64], strides = [1, 1]} : vector<8x192xf32> to vector<8x64xf32>
    %64 = vector.extract_strided_slice %62 {offsets = [0, 0], sizes = [8, 64], strides = [1, 1]} : vector<8x192xf32> to vector<8x64xf32>
    %65 = arith.addf %63, %64 : vector<8x64xf32>
    %66 = arith.negf %65 : vector<8x64xf32>
    %67 = math.exp %66 : vector<8x64xf32>
    %cst_29 = arith.constant 1.000000e+00 : f32
    %68 = vector.broadcast %cst_29 : f32 to vector<8x64xf32>
    %69 = arith.addf %68, %67 : vector<8x64xf32>
    %70 = arith.divf %68, %69 : vector<8x64xf32>
    %71 = vector.extract_strided_slice %58 {offsets = [0, 64], sizes = [8, 64], strides = [1, 1]} : vector<8x192xf32> to vector<8x64xf32>
    %72 = vector.extract_strided_slice %62 {offsets = [0, 64], sizes = [8, 64], strides = [1, 1]} : vector<8x192xf32> to vector<8x64xf32>
    %73 = arith.addf %71, %72 : vector<8x64xf32>
    %74 = arith.negf %73 : vector<8x64xf32>
    %75 = math.exp %74 : vector<8x64xf32>
    %cst_30 = arith.constant 1.000000e+00 : f32
    %76 = vector.broadcast %cst_30 : f32 to vector<8x64xf32>
    %77 = arith.addf %76, %75 : vector<8x64xf32>
    %78 = arith.divf %76, %77 : vector<8x64xf32>
    %79 = vector.extract_strided_slice %58 {offsets = [0, 128], sizes = [8, 64], strides = [1, 1]} : vector<8x192xf32> to vector<8x64xf32>
    %80 = vector.extract_strided_slice %62 {offsets = [0, 128], sizes = [8, 64], strides = [1, 1]} : vector<8x192xf32> to vector<8x64xf32>
    %81 = arith.mulf %70, %80 : vector<8x64xf32>
    %82 = arith.addf %79, %81 : vector<8x64xf32>
    %83 = math.tanh %82 : vector<8x64xf32>
    %cst_31 = arith.constant 1.000000e+00 : f32
    %84 = vector.broadcast %cst_31 : f32 to vector<8x64xf32>
    %85 = arith.subf %84, %78 : vector<8x64xf32>
    %86 = arith.mulf %85, %83 : vector<8x64xf32>
    %87 = arith.mulf %78, %52 : vector<8x64xf32>
    %88 = arith.addf %86, %87 : vector<8x64xf32>
    %89 = arith.index_cast %56 : i32 to index
    %c0_32 = arith.constant 0 : index
    %90 = vector.load %arg13[%89, %c0_32] : memref<56x64xf32, #tpu.memory_space<vmem>>, vector<8x64xf32>
    tpu.vector_store %arg13[%89, %c0_32], %88 {strides = array<i32>} : memref<56x64xf32, #tpu.memory_space<vmem>>, vector<8x64xf32>,
    %c2_i32 = arith.constant 2 : i32
    %c8_i32_33 = arith.constant 8 : i32
    %91 = arith.muli %c2_i32, %c8_i32_33 : i32
    %92 = tpu.assume_multiple %91, 8 : i32
    %93 = arith.index_cast %92 : i32 to index
    %c0_34 = arith.constant 0 : index
    %94 = vector.load %arg12[%93, %c0_34] : memref<56x192xf32, #tpu.memory_space<vmem>>, vector<8x192xf32>
    %95 = arith.truncf %88 : vector<8x64xf32> to vector<8x64xbf16>
    %cst_35 = arith.constant dense<0.000000e+00> : vector<8x192xf32>
    %96 = tpu.matmul %95, %17, %cst_35 {dimension_numbers = #tpu.dot_dimension_numbers<[1], [0], [0], [1], [0, 0, 1, 1], [], []>} : vector<8x64xbf16>, vector<64x192xbf16>, vector<8x192xf32> -> vector<8x192xf32>
    %97 = vector.broadcast %18 : vector<1x192xf32> to vector<8x192xf32>
    %98 = arith.addf %96, %97 : vector<8x192xf32>
    %99 = vector.extract_strided_slice %94 {offsets = [0, 0], sizes = [8, 64], strides = [1, 1]} : vector<8x192xf32> to vector<8x64xf32>
    %100 = vector.extract_strided_slice %98 {offsets = [0, 0], sizes = [8, 64], strides = [1, 1]} : vector<8x192xf32> to vector<8x64xf32>
    %101 = arith.addf %99, %100 : vector<8x64xf32>
    %102 = arith.negf %101 : vector<8x64xf32>
    %103 = math.exp %102 : vector<8x64xf32>
    %cst_36 = arith.constant 1.000000e+00 : f32
    %104 = vector.broadcast %cst_36 : f32 to vector<8x64xf32>
    %105 = arith.addf %104, %103 : vector<8x64xf32>
    %106 = arith.divf %104, %105 : vector<8x64xf32>
    %107 = vector.extract_strided_slice %94 {offsets = [0, 64], sizes = [8, 64], strides = [1, 1]} : vector<8x192xf32> to vector<8x64xf32>
    %108 = vector.extract_strided_slice %98 {offsets = [0, 64], sizes = [8, 64], strides = [1, 1]} : vector<8x192xf32> to vector<8x64xf32>
    %109 = arith.addf %107, %108 : vector<8x64xf32>
    %110 = arith.negf %109 : vector<8x64xf32>
    %111 = math.exp %110 : vector<8x64xf32>
    %cst_37 = arith.constant 1.000000e+00 : f32
    %112 = vector.broadcast %cst_37 : f32 to vector<8x64xf32>
    %113 = arith.addf %112, %111 : vector<8x64xf32>
    %114 = arith.divf %112, %113 : vector<8x64xf32>
    %115 = vector.extract_strided_slice %94 {offsets = [0, 128], sizes = [8, 64], strides = [1, 1]} : vector<8x192xf32> to vector<8x64xf32>
    %116 = vector.extract_strided_slice %98 {offsets = [0, 128], sizes = [8, 64], strides = [1, 1]} : vector<8x192xf32> to vector<8x64xf32>
    %117 = arith.mulf %106, %116 : vector<8x64xf32>
    %118 = arith.addf %115, %117 : vector<8x64xf32>
    %119 = math.tanh %118 : vector<8x64xf32>
    %cst_38 = arith.constant 1.000000e+00 : f32
    %120 = vector.broadcast %cst_38 : f32 to vector<8x64xf32>
    %121 = arith.subf %120, %114 : vector<8x64xf32>
    %122 = arith.mulf %121, %119 : vector<8x64xf32>
    %123 = arith.mulf %114, %88 : vector<8x64xf32>
    %124 = arith.addf %122, %123 : vector<8x64xf32>
    %125 = arith.index_cast %92 : i32 to index
    %c0_39 = arith.constant 0 : index
    %126 = vector.load %arg13[%125, %c0_39] : memref<56x64xf32, #tpu.memory_space<vmem>>, vector<8x64xf32>
    tpu.vector_store %arg13[%125, %c0_39], %124 {strides = array<i32>} : memref<56x64xf32, #tpu.memory_space<vmem>>, vector<8x64xf32>,
    %c3_i32 = arith.constant 3 : i32
    %c8_i32_40 = arith.constant 8 : i32
    %127 = arith.muli %c3_i32, %c8_i32_40 : i32
    %128 = tpu.assume_multiple %127, 8 : i32
    %129 = arith.index_cast %128 : i32 to index
    %c0_41 = arith.constant 0 : index
    %130 = vector.load %arg12[%129, %c0_41] : memref<56x192xf32, #tpu.memory_space<vmem>>, vector<8x192xf32>
    %131 = arith.truncf %124 : vector<8x64xf32> to vector<8x64xbf16>
    %cst_42 = arith.constant dense<0.000000e+00> : vector<8x192xf32>
    %132 = tpu.matmul %131, %17, %cst_42 {dimension_numbers = #tpu.dot_dimension_numbers<[1], [0], [0], [1], [0, 0, 1, 1], [], []>} : vector<8x64xbf16>, vector<64x192xbf16>, vector<8x192xf32> -> vector<8x192xf32>
    %133 = vector.broadcast %18 : vector<1x192xf32> to vector<8x192xf32>
    %134 = arith.addf %132, %133 : vector<8x192xf32>
    %135 = vector.extract_strided_slice %130 {offsets = [0, 0], sizes = [8, 64], strides = [1, 1]} : vector<8x192xf32> to vector<8x64xf32>
    %136 = vector.extract_strided_slice %134 {offsets = [0, 0], sizes = [8, 64], strides = [1, 1]} : vector<8x192xf32> to vector<8x64xf32>
    %137 = arith.addf %135, %136 : vector<8x64xf32>
    %138 = arith.negf %137 : vector<8x64xf32>
    %139 = math.exp %138 : vector<8x64xf32>
    %cst_43 = arith.constant 1.000000e+00 : f32
    %140 = vector.broadcast %cst_43 : f32 to vector<8x64xf32>
    %141 = arith.addf %140, %139 : vector<8x64xf32>
    %142 = arith.divf %140, %141 : vector<8x64xf32>
    %143 = vector.extract_strided_slice %130 {offsets = [0, 64], sizes = [8, 64], strides = [1, 1]} : vector<8x192xf32> to vector<8x64xf32>
    %144 = vector.extract_strided_slice %134 {offsets = [0, 64], sizes = [8, 64], strides = [1, 1]} : vector<8x192xf32> to vector<8x64xf32>
    %145 = arith.addf %143, %144 : vector<8x64xf32>
    %146 = arith.negf %145 : vector<8x64xf32>
    %147 = math.exp %146 : vector<8x64xf32>
    %cst_44 = arith.constant 1.000000e+00 : f32
    %148 = vector.broadcast %cst_44 : f32 to vector<8x64xf32>
    %149 = arith.addf %148, %147 : vector<8x64xf32>
    %150 = arith.divf %148, %149 : vector<8x64xf32>
    %151 = vector.extract_strided_slice %130 {offsets = [0, 128], sizes = [8, 64], strides = [1, 1]} : vector<8x192xf32> to vector<8x64xf32>
    %152 = vector.extract_strided_slice %134 {offsets = [0, 128], sizes = [8, 64], strides = [1, 1]} : vector<8x192xf32> to vector<8x64xf32>
    %153 = arith.mulf %142, %152 : vector<8x64xf32>
    %154 = arith.addf %151, %153 : vector<8x64xf32>
    %155 = math.tanh %154 : vector<8x64xf32>
    %cst_45 = arith.constant 1.000000e+00 : f32
    %156 = vector.broadcast %cst_45 : f32 to vector<8x64xf32>
    %157 = arith.subf %156, %150 : vector<8x64xf32>
    %158 = arith.mulf %157, %155 : vector<8x64xf32>
    %159 = arith.mulf %150, %124 : vector<8x64xf32>
    %160 = arith.addf %158, %159 : vector<8x64xf32>
    %161 = arith.index_cast %128 : i32 to index
    %c0_46 = arith.constant 0 : index
    %162 = vector.load %arg13[%161, %c0_46] : memref<56x64xf32, #tpu.memory_space<vmem>>, vector<8x64xf32>
    tpu.vector_store %arg13[%161, %c0_46], %160 {strides = array<i32>} : memref<56x64xf32, #tpu.memory_space<vmem>>, vector<8x64xf32>,
    %c4_i32 = arith.constant 4 : i32
    %c8_i32_47 = arith.constant 8 : i32
    %163 = arith.muli %c4_i32, %c8_i32_47 : i32
    %164 = tpu.assume_multiple %163, 8 : i32
    %165 = arith.index_cast %164 : i32 to index
    %c0_48 = arith.constant 0 : index
    %166 = vector.load %arg12[%165, %c0_48] : memref<56x192xf32, #tpu.memory_space<vmem>>, vector<8x192xf32>
    %167 = arith.truncf %160 : vector<8x64xf32> to vector<8x64xbf16>
    %cst_49 = arith.constant dense<0.000000e+00> : vector<8x192xf32>
    %168 = tpu.matmul %167, %17, %cst_49 {dimension_numbers = #tpu.dot_dimension_numbers<[1], [0], [0], [1], [0, 0, 1, 1], [], []>} : vector<8x64xbf16>, vector<64x192xbf16>, vector<8x192xf32> -> vector<8x192xf32>
    %169 = vector.broadcast %18 : vector<1x192xf32> to vector<8x192xf32>
    %170 = arith.addf %168, %169 : vector<8x192xf32>
    %171 = vector.extract_strided_slice %166 {offsets = [0, 0], sizes = [8, 64], strides = [1, 1]} : vector<8x192xf32> to vector<8x64xf32>
    %172 = vector.extract_strided_slice %170 {offsets = [0, 0], sizes = [8, 64], strides = [1, 1]} : vector<8x192xf32> to vector<8x64xf32>
    %173 = arith.addf %171, %172 : vector<8x64xf32>
    %174 = arith.negf %173 : vector<8x64xf32>
    %175 = math.exp %174 : vector<8x64xf32>
    %cst_50 = arith.constant 1.000000e+00 : f32
    %176 = vector.broadcast %cst_50 : f32 to vector<8x64xf32>
    %177 = arith.addf %176, %175 : vector<8x64xf32>
    %178 = arith.divf %176, %177 : vector<8x64xf32>
    %179 = vector.extract_strided_slice %166 {offsets = [0, 64], sizes = [8, 64], strides = [1, 1]} : vector<8x192xf32> to vector<8x64xf32>
    %180 = vector.extract_strided_slice %170 {offsets = [0, 64], sizes = [8, 64], strides = [1, 1]} : vector<8x192xf32> to vector<8x64xf32>
    %181 = arith.addf %179, %180 : vector<8x64xf32>
    %182 = arith.negf %181 : vector<8x64xf32>
    %183 = math.exp %182 : vector<8x64xf32>
    %cst_51 = arith.constant 1.000000e+00 : f32
    %184 = vector.broadcast %cst_51 : f32 to vector<8x64xf32>
    %185 = arith.addf %184, %183 : vector<8x64xf32>
    %186 = arith.divf %184, %185 : vector<8x64xf32>
    %187 = vector.extract_strided_slice %166 {offsets = [0, 128], sizes = [8, 64], strides = [1, 1]} : vector<8x192xf32> to vector<8x64xf32>
    %188 = vector.extract_strided_slice %170 {offsets = [0, 128], sizes = [8, 64], strides = [1, 1]} : vector<8x192xf32> to vector<8x64xf32>
    %189 = arith.mulf %178, %188 : vector<8x64xf32>
    %190 = arith.addf %187, %189 : vector<8x64xf32>
    %191 = math.tanh %190 : vector<8x64xf32>
    %cst_52 = arith.constant 1.000000e+00 : f32
    %192 = vector.broadcast %cst_52 : f32 to vector<8x64xf32>
    %193 = arith.subf %192, %186 : vector<8x64xf32>
    %194 = arith.mulf %193, %191 : vector<8x64xf32>
    %195 = arith.mulf %186, %160 : vector<8x64xf32>
    %196 = arith.addf %194, %195 : vector<8x64xf32>
    %197 = arith.index_cast %164 : i32 to index
    %c0_53 = arith.constant 0 : index
    %198 = vector.load %arg13[%197, %c0_53] : memref<56x64xf32, #tpu.memory_space<vmem>>, vector<8x64xf32>
    tpu.vector_store %arg13[%197, %c0_53], %196 {strides = array<i32>} : memref<56x64xf32, #tpu.memory_space<vmem>>, vector<8x64xf32>,
    %c5_i32 = arith.constant 5 : i32
    %c8_i32_54 = arith.constant 8 : i32
    %199 = arith.muli %c5_i32, %c8_i32_54 : i32
    %200 = tpu.assume_multiple %199, 8 : i32
    %201 = arith.index_cast %200 : i32 to index
    %c0_55 = arith.constant 0 : index
    %202 = vector.load %arg12[%201, %c0_55] : memref<56x192xf32, #tpu.memory_space<vmem>>, vector<8x192xf32>
    %203 = arith.truncf %196 : vector<8x64xf32> to vector<8x64xbf16>
    %cst_56 = arith.constant dense<0.000000e+00> : vector<8x192xf32>
    %204 = tpu.matmul %203, %17, %cst_56 {dimension_numbers = #tpu.dot_dimension_numbers<[1], [0], [0], [1], [0, 0, 1, 1], [], []>} : vector<8x64xbf16>, vector<64x192xbf16>, vector<8x192xf32> -> vector<8x192xf32>
    %205 = vector.broadcast %18 : vector<1x192xf32> to vector<8x192xf32>
    %206 = arith.addf %204, %205 : vector<8x192xf32>
    %207 = vector.extract_strided_slice %202 {offsets = [0, 0], sizes = [8, 64], strides = [1, 1]} : vector<8x192xf32> to vector<8x64xf32>
    %208 = vector.extract_strided_slice %206 {offsets = [0, 0], sizes = [8, 64], strides = [1, 1]} : vector<8x192xf32> to vector<8x64xf32>
    %209 = arith.addf %207, %208 : vector<8x64xf32>
    %210 = arith.negf %209 : vector<8x64xf32>
    %211 = math.exp %210 : vector<8x64xf32>
    %cst_57 = arith.constant 1.000000e+00 : f32
    %212 = vector.broadcast %cst_57 : f32 to vector<8x64xf32>
    %213 = arith.addf %212, %211 : vector<8x64xf32>
    %214 = arith.divf %212, %213 : vector<8x64xf32>
    %215 = vector.extract_strided_slice %202 {offsets = [0, 64], sizes = [8, 64], strides = [1, 1]} : vector<8x192xf32> to vector<8x64xf32>
    %216 = vector.extract_strided_slice %206 {offsets = [0, 64], sizes = [8, 64], strides = [1, 1]} : vector<8x192xf32> to vector<8x64xf32>
    %217 = arith.addf %215, %216 : vector<8x64xf32>
    %218 = arith.negf %217 : vector<8x64xf32>
    %219 = math.exp %218 : vector<8x64xf32>
    %cst_58 = arith.constant 1.000000e+00 : f32
    %220 = vector.broadcast %cst_58 : f32 to vector<8x64xf32>
    %221 = arith.addf %220, %219 : vector<8x64xf32>
    %222 = arith.divf %220, %221 : vector<8x64xf32>
    %223 = vector.extract_strided_slice %202 {offsets = [0, 128], sizes = [8, 64], strides = [1, 1]} : vector<8x192xf32> to vector<8x64xf32>
    %224 = vector.extract_strided_slice %206 {offsets = [0, 128], sizes = [8, 64], strides = [1, 1]} : vector<8x192xf32> to vector<8x64xf32>
    %225 = arith.mulf %214, %224 : vector<8x64xf32>
    %226 = arith.addf %223, %225 : vector<8x64xf32>
    %227 = math.tanh %226 : vector<8x64xf32>
    %cst_59 = arith.constant 1.000000e+00 : f32
    %228 = vector.broadcast %cst_59 : f32 to vector<8x64xf32>
    %229 = arith.subf %228, %222 : vector<8x64xf32>
    %230 = arith.mulf %229, %227 : vector<8x64xf32>
    %231 = arith.mulf %222, %196 : vector<8x64xf32>
    %232 = arith.addf %230, %231 : vector<8x64xf32>
    %233 = arith.index_cast %200 : i32 to index
    %c0_60 = arith.constant 0 : index
    %234 = vector.load %arg13[%233, %c0_60] : memref<56x64xf32, #tpu.memory_space<vmem>>, vector<8x64xf32>
    tpu.vector_store %arg13[%233, %c0_60], %232 {strides = array<i32>} : memref<56x64xf32, #tpu.memory_space<vmem>>, vector<8x64xf32>,
    %c6_i32 = arith.constant 6 : i32
    %c8_i32_61 = arith.constant 8 : i32
    %235 = arith.muli %c6_i32, %c8_i32_61 : i32
    %236 = tpu.assume_multiple %235, 8 : i32
    %237 = arith.index_cast %236 : i32 to index
    %c0_62 = arith.constant 0 : index
    %238 = vector.load %arg12[%237, %c0_62] : memref<56x192xf32, #tpu.memory_space<vmem>>, vector<8x192xf32>
    %239 = arith.truncf %232 : vector<8x64xf32> to vector<8x64xbf16>
    %cst_63 = arith.constant dense<0.000000e+00> : vector<8x192xf32>
    %240 = tpu.matmul %239, %17, %cst_63 {dimension_numbers = #tpu.dot_dimension_numbers<[1], [0], [0], [1], [0, 0, 1, 1], [], []>} : vector<8x64xbf16>, vector<64x192xbf16>, vector<8x192xf32> -> vector<8x192xf32>
    %241 = vector.broadcast %18 : vector<1x192xf32> to vector<8x192xf32>
    %242 = arith.addf %240, %241 : vector<8x192xf32>
    %243 = vector.extract_strided_slice %238 {offsets = [0, 0], sizes = [8, 64], strides = [1, 1]} : vector<8x192xf32> to vector<8x64xf32>
    %244 = vector.extract_strided_slice %242 {offsets = [0, 0], sizes = [8, 64], strides = [1, 1]} : vector<8x192xf32> to vector<8x64xf32>
    %245 = arith.addf %243, %244 : vector<8x64xf32>
    %246 = arith.negf %245 : vector<8x64xf32>
    %247 = math.exp %246 : vector<8x64xf32>
    %cst_64 = arith.constant 1.000000e+00 : f32
    %248 = vector.broadcast %cst_64 : f32 to vector<8x64xf32>
    %249 = arith.addf %248, %247 : vector<8x64xf32>
    %250 = arith.divf %248, %249 : vector<8x64xf32>
    %251 = vector.extract_strided_slice %238 {offsets = [0, 64], sizes = [8, 64], strides = [1, 1]} : vector<8x192xf32> to vector<8x64xf32>
    %252 = vector.extract_strided_slice %242 {offsets = [0, 64], sizes = [8, 64], strides = [1, 1]} : vector<8x192xf32> to vector<8x64xf32>
    %253 = arith.addf %251, %252 : vector<8x64xf32>
    %254 = arith.negf %253 : vector<8x64xf32>
    %255 = math.exp %254 : vector<8x64xf32>
    %cst_65 = arith.constant 1.000000e+00 : f32
    %256 = vector.broadcast %cst_65 : f32 to vector<8x64xf32>
    %257 = arith.addf %256, %255 : vector<8x64xf32>
    %258 = arith.divf %256, %257 : vector<8x64xf32>
    %259 = vector.extract_strided_slice %238 {offsets = [0, 128], sizes = [8, 64], strides = [1, 1]} : vector<8x192xf32> to vector<8x64xf32>
    %260 = vector.extract_strided_slice %242 {offsets = [0, 128], sizes = [8, 64], strides = [1, 1]} : vector<8x192xf32> to vector<8x64xf32>
    %261 = arith.mulf %250, %260 : vector<8x64xf32>
    %262 = arith.addf %259, %261 : vector<8x64xf32>
    %263 = math.tanh %262 : vector<8x64xf32>
    %cst_66 = arith.constant 1.000000e+00 : f32
    %264 = vector.broadcast %cst_66 : f32 to vector<8x64xf32>
    %265 = arith.subf %264, %258 : vector<8x64xf32>
    %266 = arith.mulf %265, %263 : vector<8x64xf32>
    %267 = arith.mulf %258, %232 : vector<8x64xf32>
    %268 = arith.addf %266, %267 : vector<8x64xf32>
    %269 = arith.index_cast %236 : i32 to index
    %c0_67 = arith.constant 0 : index
    %270 = vector.load %arg13[%269, %c0_67] : memref<56x64xf32, #tpu.memory_space<vmem>>, vector<8x64xf32>
    tpu.vector_store %arg13[%269, %c0_67], %268 {strides = array<i32>} : memref<56x64xf32, #tpu.memory_space<vmem>>, vector<8x64xf32>,
    %c7_i32 = arith.constant 7 : i32
    %cst_68 = arith.constant 0.000000e+00 : f32
    %271 = vector.broadcast %cst_68 : f32 to vector<8x64xf32>
    %c0_69 = arith.constant 0 : index
    %c0_70 = arith.constant 0 : index
    %272 = vector.load %arg11[%c0_69, %c0_70] : memref<64x64xf32, #tpu.memory_space<vmem>>, vector<8x64xf32>
    tpu.vector_store %arg11[%c0_69, %c0_70], %271 {strides = array<i32>} : memref<64x64xf32, #tpu.memory_space<vmem>>, vector<8x64xf32>,
    %c0_71 = arith.constant 0 : index
    %c0_72 = arith.constant 0 : index
    %273 = vector.load %arg13[%c0_71, %c0_72] : memref<56x64xf32, #tpu.memory_space<vmem>>, vector<56x64xf32>
    %274 = arith.truncf %273 : vector<56x64xf32> to vector<56x64xbf16>
    %c0_73 = arith.constant 0 : index
    %c0_74 = arith.constant 0 : index
    %275 = vector.load %arg9[%c0_73, %c0_74] : memref<64x64xbf16, #tpu.memory_space<vmem>>, vector<64x64xbf16>
    %cst_75 = arith.constant dense<0.000000e+00> : vector<56x64xf32>
    %276 = tpu.matmul %274, %275, %cst_75 {dimension_numbers = #tpu.dot_dimension_numbers<[1], [0], [0], [1], [0, 0, 1, 1], [], []>} : vector<56x64xbf16>, vector<64x64xbf16>, vector<56x64xf32> -> vector<56x64xf32>
    %c0_76 = arith.constant 0 : index
    %c0_77 = arith.constant 0 : index
    %277 = vector.load %arg10[%c0_76, %c0_77] : memref<1x64xf32, #tpu.memory_space<vmem>>, vector<1x64xf32>
    %278 = vector.broadcast %277 : vector<1x64xf32> to vector<56x64xf32>
    %279 = arith.addf %276, %278 : vector<56x64xf32>
    %c8 = arith.constant 8 : index
    %c0_78 = arith.constant 0 : index
    %280 = vector.load %arg11[%c8, %c0_78] : memref<64x64xf32, #tpu.memory_space<vmem>>, vector<56x64xf32>
    tpu.vector_store %arg11[%c8, %c0_78], %279 {strides = array<i32>} : memref<64x64xf32, #tpu.memory_space<vmem>>, vector<56x64xf32>,
    return
  }
}

</mosaic_0001>

<bundles_post_ra>
// kernel: seq2seq_forward.2
= control target key start
LH: loop header
LB: loop body
LE: loop exit
PB: predicated region body
PF: predicated region fallthrough
CT: control target
= control target key end

     0   :  { %vm77_vm0 = vcmask 261120   ;;  %v1592_v11 = vmov 0   ;;  %vm119_vm1 = vcmask 785408   ;;  %s2097_s1 = inlined_call_operand.vmem [shape: bf16[32,96], index: 1, kind: input, shape index: {}]   ;;  %s2098_s5 = inlined_call_operand.vmem [shape: bf16[32,96], index: 5, kind: input, shape index: {}]   ;;  %s2099_s3 = inlined_call_operand.vmem [shape: bf16[32,96], index: 3, kind: input, shape index: {}]   ;;  %s2100_s0 = inlined_call_operand.vmem [shape: f32[64,32], index: 0, kind: input, shape index: {}]   ;;  %s2101_s7 = inlined_call_operand.vmem [shape: bf16[32,96], index: 7, kind: input, shape index: {}]   ;;  %s2102_s2 = inlined_call_operand.vmem [shape: f32[1,96], index: 2, kind: input, shape index: {}]   ;;  %s2103_s6 = inlined_call_operand.vmem [shape: f32[1,96], index: 6, kind: input, shape index: {}]   ;;  %s2104_s4 = inlined_call_operand.vmem [shape: f32[1,96], index: 4, kind: input, shape index: {}]   ;;  %s2105_s8 = inlined_call_operand.vmem [shape: f32[1,96], index: 8, kind: input, shape index: {}]   ;;  %s2106_s12 = inlined_call_operand.vmem [shape: f32[64,32], index: 12, kind: output, shape index: {0}]   ;;  %s2107_s10 = inlined_call_operand.vmem [shape: bf16[32,32], index: 10, kind: input, shape index: {}]   ;;  %s2108_s13 = inlined_call_operand.vmem [shape: f32[64,32], index: 13, kind: output, shape index: {1}]   ;;  %s2109_s9 = inlined_call_operand.vmem [shape: bf16[32,32], index: 9, kind: input, shape index: {}]   ;;  %s2110_s11 = inlined_call_operand.vmem [shape: f32[1,32], index: 11, kind: input, shape index: {}]   ;;  %s2111_s14 = inlined_call_operand.vmem [shape: f32[8,32], index: 14, kind: output, shape index: {2}]  }
   0x1   :  { %v1475_v0 = vld [vmem:[%s2097_s1 + $0x8] sm:$0xff]  ;;  %v1474_v3 = vld [vmem:[%s2097_s1] sm:$0xff]  ;;  %v47_v12 = vld [vmem:[%s2100_s0 + $0x10] sm:$0xff] }
   0x2   :  { %v1477_v1 = vld [vmem:[%s2098_s5 + $0x8] sm:$0xff]  ;;  %v1476_v4 = vld [vmem:[%s2098_s5] sm:$0xff]  ;;  %96 = vmatpush.bf16.msra.mxu0 %v1475_v0  ;;  %v48_v13 = vld [vmem:[%s2100_s0 + $0x18] sm:$0xff]  ;;  %s1594_s5 = smov 96  }
   0x3   :  { %v1679_v2 = vld [vmem:[%s2099_s3 + $0x8] sm:$0xff]  ;;  %154 = vmatpush.bf16.msra.mxu1 %v1477_v1  ;;  %v45_v5 = vld [vmem:[%s2100_s0] sm:$0xff]  ;;  %v54_v14 = vpack.c.bf16 %v48_v13, %v47_v12  ;;  %v51_v18 = vld [vmem:[%s2100_s0 + $0x30] sm:$0xff] }
   0x4   :  { %v46_v6 = vld [vmem:[%s2100_s0 + $0x8] sm:$0xff]  ;;  %220 = vmatpush.bf16.msra.mxu2 %v1679_v2  ;;  %v1702_v8 = vld [vmem:[%s2099_s3] sm:$0xff]  ;;  %v52_v19 = vld [vmem:[%s2100_s0 + $0x38] sm:$0xff] }
   0x5   :  { %v1696_v7 = vld [vmem:[%s2101_s7 + $0x8] sm:$0xff]  ;;  %v1708_v9 = vld [vmem:[%s2101_s7] sm:$0xff]  ;;  %v53_v10 = vpack.c.bf16 %v46_v6, %v45_v5  ;;  %v56_v20 = vpack.c.bf16 %v52_v19, %v51_v18 }
   0x6   :  { %289 = vmatpush.bf16.msra.mxu3 %v1696_v7  ;;  %97 = vmatpush.bf16.msra.mxu0 %v1474_v3  ;;  %v49_v15 = vld [vmem:[%s2100_s0 + $0x20] sm:$0xff]  ;;  %v50_v16 = vld [vmem:[%s2100_s0 + $0x28] sm:$0xff] }
   0x7   :  { %155 = vmatpush.bf16.msra.mxu1 %v1476_v4  ;;  %v55_v17 = vpack.c.bf16 %v50_v16, %v49_v15  ;;  %v1757_v21 = vld [vmem:[%s2102_s2] ss:$0 sm:$0xff]  ;;  %s1593_s2 = smov 64  }
   0x8   :  { %221 = vmatpush.bf16.msra.mxu2 %v1702_v8  ;;  %v1490_v22 = vld [vmem:[%s2103_s6] ss:$0 sm:$0xff] }
   0x9   :  { %1380 = vmatmul.msk.bf16.vlgmr.msra.gmra.mxu0 %vm77_vm0, %v53_v10  ;;  %v1768_v27 = vld [vmem:[%s2104_s4] ss:$0 sm:$0xff] }
   0xa   :  { %763 = vmatpush.bf16.msrb.mxu0 %v1679_v2  ;;  %290 = vmatpush.bf16.msra.mxu3 %v1708_v9  ;;  %v1775_v33 = vld [vmem:[%s2105_s8] ss:$0 sm:$0xff] }
   0xb   :  { %1392 = vmatmul.msk.bf16.vlgmr.msra.gmra.mxu1 %vm77_vm0, %v53_v10  ;;  %222 = vmatmul.bf16.vlgmr.msra.gmra.mxu2 %v1592_v11 }
   0xc   :  { %361 = vmatpush.bf16.msrb.mxu2 %v1679_v2  ;;  %824 = vmatpush.bf16.msrb.mxu1 %v1696_v7 }
   0xd   :  { %291 = vmatmul.bf16.vlgmr.msra.gmra.mxu3 %v1592_v11 }
   0xe   :  { %422 = vmatpush.bf16.msrb.mxu3 %v1696_v7  ;;  %764 = vmatpush.bf16.msrb.mxu0 %v1702_v8 }
  0x10   :  { %362 = vmatpush.bf16.msrb.mxu2 %v1702_v8  ;;  %825 = vmatpush.bf16.msrb.mxu1 %v1708_v9 }
  0x12   :  { %1031 = vmatpush.bf16.msra.mxu0 %v1679_v2  ;;  %423 = vmatpush.bf16.msrb.mxu3 %v1708_v9 }
  0x14   :  { %495 = vmatpush.bf16.msra.mxu2 %v1679_v2  ;;  %1092 = vmatpush.bf16.msra.mxu1 %v1696_v7 }
  0x16   :  { %556 = vmatpush.bf16.msra.mxu3 %v1696_v7  ;;  %1032 = vmatpush.bf16.msra.mxu0 %v1702_v8 }
  0x18   :  { %496 = vmatpush.bf16.msra.mxu2 %v1702_v8  ;;  %1093 = vmatpush.bf16.msra.mxu1 %v1708_v9 }
  0x19   :  { %1381 = vmatmul.msk.bf16.gmra.mxu0 %vm77_vm0, %v54_v14 }
  0x1a   :  { %557 = vmatpush.bf16.msra.mxu3 %v1708_v9 }
  0x1b   :  { %1393 = vmatmul.msk.bf16.gmra.mxu1 %vm77_vm0, %v54_v14 }
  0x29   :  { %1382 = vmatmul.msk.bf16.gmra.mxu0 %vm77_vm0, %v55_v17 }
  0x2b   :  { %1394 = vmatmul.msk.bf16.gmra.mxu1 %vm77_vm0, %v55_v17 }
  0x39   :  { %1383 = vmatmul.msk.bf16.gmra.mxu0 %vm77_vm0, %v56_v20 }
  0x3b   :  { %1395 = vmatmul.msk.bf16.gmra.mxu1 %vm77_vm0, %v56_v20 }
  0x86   :  { %v99_v23 = vpop.f32.mrf.mxu0 }
  0x87   :  { %v100_v25 = vadd.f32 %v1757_v21, %v99_v23 }
  0x88   :  { %v157_v24 = vpop.f32.mrf.mxu1 }
  0x89   :  { %v158_v26 = vadd.f32 %v1490_v22, %v157_v24  ;;  %120 = vst.msk [vmem:[#allocation2] sm:$0xff] %vm119_vm1, %v100_v25 }
  0x8b   :  { %177 = vst.msk [vmem:[#allocation3] sm:$0xff] %vm119_vm1, %v158_v26 }
  0x8e   :  { %v223_v28 = vpop.f32.mrf.mxu2  ;;  %v101_v41 = vpop.f32.mrf.mxu0 }
  0x8f   :  { %v224_v29 = vadd.f32 %v1768_v27, %v223_v28  ;;  %v102_v42 = vadd.f32 %v1757_v21, %v101_v41 }
  0x90   :  { %v159_v30 = vpop.f32.mrf.mxu1  ;;  %v292_v31 = vpop.f32.mrf.mxu3  ;;  %v195_v51 = vld [vmem:[#allocation2] sm:$0xff] }
  0x91   :  { %v160_v32 = vadd.f32 %v1490_v22, %v159_v30  ;;  %248 = vrot.lane.b32.xlu0 %v224_v29, %s1593_s2  ;;  %v293_v34 = vadd.f32 %v1775_v33, %v292_v31  ;;  %121 = vst.msk [vmem:[#allocation2 + $0x8] sm:$0xff] %vm119_vm1, %v102_v42  ;;  %v227_v52 = vadd.f32 %v224_v29, %v195_v51 }
  0x93   :  { %178 = vst.msk [vmem:[#allocation3 + $0x8] sm:$0xff] %vm119_vm1, %v160_v32  ;;  %v1404_v53 = vmul.f32 -1.442695, %v227_v52 }
  0x95   :  { %1494 = vpow2.f32 %v1404_v53 }
  0x96   :  { %v225_v35 = vpop.f32.mrf.mxu2 }
  0x98   :  { %v162_v36 = vpop.f32.mrf.mxu1  ;;  %v294_v37 = vpop.f32.mrf.mxu3 }
  0x99   :  { %v163_v38 = vadd.f32 %v1490_v22, %v162_v36  ;;  %317 = vrot.lane.b32.xlu0 %v293_v34, %s1593_s2 }
  0x9b   :  { %179 = vst.msk [vmem:[#allocation3 + $0x10] sm:$0xff] %vm119_vm1, %v163_v38  ;;  %v1495_v57 = vpop.eup %1494 }
  0x9c   :  { %v231_v58 = vadd.f32 1.0, %v1495_v57 }
  0x9e   :  { %v243_v6 = vand.u32 2147483648, %v231_v58  ;;  %vm237_vm3 = vweird.f32 %v231_v58  ;;  %v241_v10 = vand.u32 2147483647, %v231_v58 }
  0xa0   :  { %v164_v39 = vpop.f32.mrf.mxu1  ;;  %v244_v13 = vor.u32 1.1754944e-38, %v243_v6  ;;  %vm242_vm5 = vcmp.eq.f32.partialorder %v241_v10, 8.507059e+37 }
  0xa1   :  { %v165_v40 = vadd.f32 %v1490_v22, %v164_v39 }
  0xa3   :  { %180 = vst.msk [vmem:[#allocation3 + $0x18] sm:$0xff] %vm119_vm1, %v165_v40 }
  0xa8   :  { %v167_v43 = vpop.f32.mrf.mxu1 }
  0xa9   :  { %v168_v44 = vadd.f32 %v1490_v22, %v167_v43 }
  0xab   :  { %181 = vst.msk [vmem:[#allocation3 + $0x20] sm:$0xff] %vm119_vm1, %v168_v44 }
  0xb0   :  { %v169_v45 = vpop.f32.mrf.mxu1 }
  0xb1   :  { %v170_v46 = vadd.f32 %v1490_v22, %v169_v45 }
  0xb3   :  { %182 = vst.msk [vmem:[#allocation3 + $0x28] sm:$0xff] %vm119_vm1, %v170_v46 }
  0xb8   :  { %v172_v47 = vpop.f32.mrf.mxu1 }
  0xb9   :  { %v173_v48 = vadd.f32 %v1490_v22, %v172_v47 }
  0xbb   :  { %183 = vst.msk [vmem:[#allocation3 + $0x30] sm:$0xff] %vm119_vm1, %v173_v48 }
  0xc0   :  { %v174_v49 = vpop.f32.mrf.mxu1 }
  0xc1   :  { %v175_v50 = vadd.f32 %v1490_v22, %v174_v49 }
  0xc3   :  { %184 = vst.msk [vmem:[#allocation3 + $0x38] sm:$0xff] %vm119_vm1, %v175_v50 }
  0xca   :  { %v267_v54 = vld [vmem:[#allocation3 + $0x38] sm:$0xff] }
  0xcb   :  { %v296_v55 = vadd.f32 %v293_v34, %v267_v54 }
  0xcd   :  { %v1413_v56 = vmul.f32 -1.442695, %v296_v55 }
  0xcf   :  { %1496 = vpow2.f32 %v1413_v56 }
  0xd0   :  { %1498 = vrcp.f32 %v231_v58 }
  0xd5   :  { %v1497_v59 = vpop.eup %1496 }
  0xd6   :  { %v300_v60 = vadd.f32 1.0, %v1497_v59  ;;  %v1499_v61 = vpop.eup %1498 }
  0xd7   :  { %v233_v62 = vmul.f32 %v1499_v61, %v231_v58  ;;  %vm238_vm2 = vweird.f32 %v1499_v61 }
  0xd8   :  { %1500 = vrcp.f32 %v300_v60  ;;  %vm239_vm4 = vmor %vm237_vm3, %vm238_vm2  ;;  %v312_v18 = vand.u32 2147483648, %v300_v60  ;;  %vm306_vm7 = vweird.f32 %v300_v60  ;;  %v310_v19 = vand.u32 2147483647, %v300_v60 }
  0xd9   :  { %v234_v63 = vsub.f32 1.0, %v233_v62 }
  0xda   :  { %v313_v22 = vor.u32 1.1754944e-38, %v312_v18  ;;  %vm311_vm9 = vcmp.eq.f32.partialorder %v310_v19, 8.507059e+37 }
  0xdb   :  { %v235_v1 = vmul.f32 %v1499_v61, %v234_v63 }
  0xdd   :  { %v236_v4 = vadd.f32 %v1499_v61, %v235_v1 }
  0xde   :  { %v1501_v0 = vpop.eup %1500 }
  0xdf   :  { %v302_v3 = vmul.f32 %v1501_v0, %v300_v60  ;;  %v240_v11 = vsel %vm239_vm4, %v1499_v61, %v236_v4  ;;  %vm307_vm6 = vweird.f32 %v1501_v0  ;;  %v408_v61 = vld [vmem:[#allocation3 + $0x30] sm:$0xff] }
  0xe0   :  { %v245_v15 = vsel %vm242_vm5, %v244_v13, %v240_v11  ;;  %vm308_vm8 = vmor %vm306_vm7, %vm307_vm6 }
  0xe1   :  { %v303_v5 = vsub.f32 1.0, %v302_v3  ;;  %v258_v34 = vsub.f32 1.0, %v245_v15  ;;  %v264_v36 = vmul.f32 0.0, %v245_v15 }
  0xe3   :  { %v304_v12 = vmul.f32 %v1501_v0, %v303_v5 }
  0xe5   :  { %v305_v17 = vadd.f32 %v1501_v0, %v304_v12 }
  0xe7   :  { %v309_v20 = vsel %vm308_vm8, %v1501_v0, %v305_v17 }
  0xe8   :  { %v314_v24 = vsel %vm311_vm9, %v313_v22, %v309_v20 }
  0xe9   :  { %v327_v40 = vsub.f32 1.0, %v314_v24  ;;  %v333_v42 = vmul.f32 0.0, %v314_v24 }
 0x103   :  { %v249_v14 = vpop.permute.xlu0 %248 }
 0x104   :  { %v251_v16 = vmul.f32 %v249_v14, %v245_v15 }
 0x106   :  { %253 = vrot.lane.b32.xlu1 %v251_v16, %s1593_s2 }
 0x10b   :  { %v318_v23 = vpop.permute.xlu0 %317 }
 0x10c   :  { %v320_v25 = vmul.f32 %v318_v23, %v314_v24 }
 0x10e   :  { %322 = vrot.lane.b32.xlu1 %v320_v25, %s1593_s2 }
 0x178   :  { %v254_v26 = vpop.permute.xlu1 %253 }
 0x179   :  { %v256_v28 = vadd.f32 %v254_v26, %v195_v51 }
 0x17b   :  { %1502 = vtanh.f32 %v256_v28 }
 0x180   :  { %v323_v29 = vpop.permute.xlu1 %322 }
 0x181   :  { %v1503_v30 = vpop.eup %1502  ;;  %v325_v31 = vadd.f32 %v323_v29, %v267_v54  ;;  %v347_v54 = vld [vmem:[#allocation2 + $0x8] sm:$0xff] }
 0x182   :  { %260 = vrot.lane.b32.xlu2 %v1503_v30, %s1594_s5 }
 0x183   :  { %1504 = vtanh.f32 %v325_v31 }
 0x189   :  { %v1505_v32 = vpop.eup %1504 }
 0x18a   :  { %329 = vrot.lane.b32.xlu2 %v1505_v32, %s1594_s5 }
 0x1dc   :  { %v261_v35 = vpop.permute.xlu2 %260 }
 0x1dd   :  { %v263_v37 = vmul.f32 %v261_v35, %v258_v34 }
 0x1df   :  { %v1792_v38 = vadd.f32 %v264_v36, %v263_v37 }
 0x1e1   :  { %v348_v39 = vpack.c.bf16 %v1792_v38, %v1792_v38 }
 0x1e3   :  { %350 = vrot.lane.b32.xlu0 %v348_v39, %s1594_s5 }
 0x1e4   :  { %v330_v41 = vpop.permute.xlu2 %329 }
 0x1e5   :  { %v332_v43 = vmul.f32 %v330_v41, %v327_v40 }
 0x1e7   :  { %v1797_v44 = vadd.f32 %v333_v42, %v332_v43 }
 0x1e9   :  { %v409_v45 = vpack.c.bf16 %v1797_v44, %v1797_v44 }
 0x1eb   :  { %411 = vrot.lane.b32.xlu1 %v409_v45, %s1594_s5 }
 0x255   :  { %v351_v46 = vpop.permute.xlu0 %350 }
 0x256   :  { %1415 = vmatmul.msk.bf16.vlgmr.msrb.gmra.mxu2 %vm77_vm0, %v351_v46 }
 0x257   :  { %629 = vmatpush.bf16.msrb.mxu2 %v1679_v2 }
 0x25b   :  { %630 = vmatpush.bf16.msrb.mxu2 %v1702_v8 }
 0x25d   :  { %v412_v47 = vpop.permute.xlu1 %411 }
 0x25e   :  { %1417 = vmatmul.msk.bf16.vlgmr.msrb.gmra.mxu3 %vm77_vm0, %v412_v47 }
 0x25f   :  { %690 = vmatpush.bf16.msrb.mxu3 %v1696_v7 }
 0x263   :  { %691 = vmatpush.bf16.msrb.mxu3 %v1708_v9 }
 0x2d9   :  { %v364_v48 = vpop.f32.mrf.mxu2 }
 0x2da   :  { %v365_v49 = vadd.f32 %v1768_v27, %v364_v48 }
 0x2dc   :  { %389 = vrot.lane.b32.xlu2 %v365_v49, %s1593_s2  ;;  %v368_v55 = vadd.f32 %v365_v49, %v347_v54 }
 0x2de   :  { %v1416_v56 = vmul.f32 -1.442695, %v368_v55 }
 0x2e0   :  { %1506 = vpow2.f32 %v1416_v56 }
 0x2e1   :  { %v366_v50 = vpop.f32.mrf.mxu2  ;;  %v425_v51 = vpop.f32.mrf.mxu3 }
 0x2e2   :  { %v426_v52 = vadd.f32 %v1775_v33, %v425_v51 }
 0x2e4   :  { %450 = vrot.lane.b32.xlu0 %v426_v52, %s1593_s2  ;;  %v429_v62 = vadd.f32 %v426_v52, %v408_v61  ;;  %v104_v52 = vpop.f32.mrf.mxu0 }
 0x2e6   :  { %v1507_v57 = vpop.eup %1506  ;;  %v1418_v0 = vmul.f32 -1.442695, %v429_v62 }
 0x2e7   :  { %v372_v58 = vadd.f32 1.0, %v1507_v57 }
 0x2e9   :  { %v427_v53 = vpop.f32.mrf.mxu3  ;;  %1508 = vrcp.f32 %v372_v58  ;;  %v384_v4 = vand.u32 2147483648, %v372_v58  ;;  %vm378_vm11 = vweird.f32 %v372_v58  ;;  %v382_v5 = vand.u32 2147483647, %v372_v58 }
 0x2ea   :  { %1510 = vpow2.f32 %v1418_v0  ;;  %v105_v53 = vadd.f32 %v1757_v21, %v104_v52 }
 0x2eb   :  { %v385_v11 = vor.u32 1.1754944e-38, %v384_v4  ;;  %vm383_vm13 = vcmp.eq.f32.partialorder %v382_v5, 8.507059e+37 }
 0x2ec   :  { %122 = vst.msk [vmem:[#allocation2 + $0x10] sm:$0xff] %vm119_vm1, %v105_v53 }
 0x2ef   :  { %v1509_v59 = vpop.eup %1508 }
 0x2f0   :  { %v374_v60 = vmul.f32 %v1509_v59, %v372_v58  ;;  %vm379_vm10 = vweird.f32 %v1509_v59  ;;  %v1511_v6 = vpop.eup %1510  ;;  %v106_v58 = vpop.f32.mrf.mxu0 }
 0x2f1   :  { %vm380_vm12 = vmor %vm378_vm11, %vm379_vm10  ;;  %v433_v12 = vadd.f32 1.0, %v1511_v6 }
 0x2f2   :  { %v375_v63 = vsub.f32 1.0, %v374_v60 }
 0x2f3   :  { %1512 = vrcp.f32 %v433_v12  ;;  %v445_v22 = vand.u32 2147483648, %v433_v12  ;;  %vm439_vm15 = vweird.f32 %v433_v12  ;;  %v443_v23 = vand.u32 2147483647, %v433_v12 }
 0x2f4   :  { %v376_v1 = vmul.f32 %v1509_v59, %v375_v63  ;;  %v481_v63 = vld [vmem:[#allocation2 + $0x10] sm:$0xff] }
 0x2f5   :  { %v446_v25 = vor.u32 1.1754944e-38, %v445_v22  ;;  %vm444_vm3 = vcmp.eq.f32.partialorder %v443_v23, 8.507059e+37 }
 0x2f6   :  { %v377_v3 = vadd.f32 %v1509_v59, %v376_v1 }
 0x2f8   :  { %v381_v10 = vsel %vm380_vm12, %v1509_v59, %v377_v3  ;;  %v107_v59 = vadd.f32 %v1757_v21, %v106_v58  ;;  %v542_v3 = vld [vmem:[#allocation3 + $0x28] sm:$0xff] }
 0x2f9   :  { %v386_v13 = vsel %vm383_vm13, %v385_v11, %v381_v10  ;;  %v1513_v16 = vpop.eup %1512 }
 0x2fa   :  { %v435_v17 = vmul.f32 %v1513_v16, %v433_v12  ;;  %vm440_vm14 = vweird.f32 %v1513_v16  ;;  %v399_v37 = vsub.f32 1.0, %v386_v13  ;;  %v405_v40 = vmul.f32 %v386_v13, %v1792_v38  ;;  %123 = vst.msk [vmem:[#allocation2 + $0x18] sm:$0xff] %vm119_vm1, %v107_v59 }
 0x2fb   :  { %vm441_vm2 = vmor %vm439_vm15, %vm440_vm14 }
 0x2fc   :  { %v436_v18 = vsub.f32 1.0, %v435_v17 }
 0x2fe   :  { %v437_v19 = vmul.f32 %v1513_v16, %v436_v18 }
 0x300   :  { %v438_v20 = vadd.f32 %v1513_v16, %v437_v19 }
 0x302   :  { %v442_v24 = vsel %vm441_vm2, %v1513_v16, %v438_v20 }
 0x303   :  { %v447_v28 = vsel %vm444_vm3, %v446_v25, %v442_v24 }
 0x304   :  { %v460_v45 = vsub.f32 1.0, %v447_v28  ;;  %v466_v47 = vmul.f32 %v447_v28, %v1797_v44 }
 0x336   :  { %v390_v14 = vpop.permute.xlu2 %389 }
 0x337   :  { %v392_v15 = vmul.f32 %v390_v14, %v386_v13 }
 0x339   :  { %394 = vrot.lane.b32.xlu1 %v392_v15, %s1593_s2 }
 0x356   :  { %v451_v26 = vpop.permute.xlu0 %450 }
 0x357   :  { %v453_v29 = vmul.f32 %v451_v26, %v447_v28 }
 0x359   :  { %455 = vrot.lane.b32.xlu2 %v453_v29, %s1593_s2 }
 0x3ab   :  { %v395_v30 = vpop.permute.xlu1 %394 }
 0x3ac   :  { %v397_v31 = vadd.f32 %v395_v30, %v347_v54 }
 0x3ae   :  { %1514 = vtanh.f32 %v397_v31 }
 0x3b3   :  { %v456_v32 = vpop.permute.xlu2 %455 }
 0x3b4   :  { %v1515_v34 = vpop.eup %1514  ;;  %v458_v35 = vadd.f32 %v456_v32, %v408_v61 }
 0x3b5   :  { %401 = vrot.lane.b32.xlu0 %v1515_v34, %s1594_s5 }
 0x3b6   :  { %1516 = vtanh.f32 %v458_v35 }
 0x3bc   :  { %v1517_v36 = vpop.eup %1516 }
 0x3bd   :  { %462 = vrot.lane.b32.xlu1 %v1517_v36, %s1594_s5 }
 0x427   :  { %v402_v39 = vpop.permute.xlu0 %401 }
 0x428   :  { %v404_v41 = vmul.f32 %v402_v39, %v399_v37 }
 0x42a   :  { %v1817_v42 = vadd.f32 %v405_v40, %v404_v41 }
 0x42c   :  { %v482_v43 = vpack.c.bf16 %v1817_v42, %v1817_v42 }
 0x42e   :  { %484 = vrot.lane.b32.xlu2 %v482_v43, %s1594_s5 }
 0x42f   :  { %v463_v46 = vpop.permute.xlu1 %462 }
 0x430   :  { %v465_v48 = vmul.f32 %v463_v46, %v460_v45 }
 0x432   :  { %v1823_v49 = vadd.f32 %v466_v47, %v465_v48 }
 0x434   :  { %v543_v50 = vpack.c.bf16 %v1823_v49, %v1823_v49 }
 0x436   :  { %545 = vrot.lane.b32.xlu0 %v543_v50, %s1594_s5 }
 0x488   :  { %v485_v51 = vpop.permute.xlu2 %484 }
 0x489   :  { %1421 = vmatmul.msk.bf16.vlgmr.msra.gmra.mxu2 %vm77_vm0, %v485_v51 }
 0x48a   :  { %897 = vmatpush.bf16.msra.mxu2 %v1679_v2 }
 0x48e   :  { %898 = vmatpush.bf16.msra.mxu2 %v1702_v8 }
 0x4a8   :  { %v546_v54 = vpop.permute.xlu0 %545 }
 0x4a9   :  { %1423 = vmatmul.msk.bf16.vlgmr.msra.gmra.mxu3 %vm77_vm0, %v546_v54 }
 0x4aa   :  { %958 = vmatpush.bf16.msra.mxu3 %v1696_v7 }
 0x4ae   :  { %959 = vmatpush.bf16.msra.mxu3 %v1708_v9 }
 0x50c   :  { %v498_v55 = vpop.f32.mrf.mxu2 }
 0x50d   :  { %v499_v56 = vadd.f32 %v1768_v27, %v498_v55 }
 0x50f   :  { %523 = vrot.lane.b32.xlu1 %v499_v56, %s1593_s2  ;;  %v502_v0 = vadd.f32 %v499_v56, %v481_v63 }
 0x511   :  { %v1422_v1 = vmul.f32 -1.442695, %v502_v0 }
 0x513   :  { %1518 = vpow2.f32 %v1422_v1 }
 0x514   :  { %v500_v57 = vpop.f32.mrf.mxu2 }
 0x519   :  { %v1519_v6 = vpop.eup %1518 }
 0x51a   :  { %v506_v10 = vadd.f32 1.0, %v1519_v6 }
 0x51c   :  { %v518_v22 = vand.u32 2147483648, %v506_v10  ;;  %vm512_vm5 = vweird.f32 %v506_v10  ;;  %v516_v23 = vand.u32 2147483647, %v506_v10 }
 0x51e   :  { %v519_v26 = vor.u32 1.1754944e-38, %v518_v22  ;;  %vm517_vm7 = vcmp.eq.f32.partialorder %v516_v23, 8.507059e+37 }
 0x52c   :  { %v559_v60 = vpop.f32.mrf.mxu3 }
 0x52d   :  { %v560_v61 = vadd.f32 %v1775_v33, %v559_v60 }
 0x52f   :  { %584 = vrot.lane.b32.xlu2 %v560_v61, %s1593_s2  ;;  %v563_v4 = vadd.f32 %v560_v61, %v542_v3 }
 0x531   :  { %v1424_v5 = vmul.f32 -1.442695, %v563_v4 }
 0x533   :  { %1520 = vpow2.f32 %v1424_v5 }
 0x534   :  { %v561_v62 = vpop.f32.mrf.mxu3  ;;  %1522 = vrcp.f32 %v506_v10 }
 0x539   :  { %v1521_v11 = vpop.eup %1520 }
 0x53a   :  { %v567_v12 = vadd.f32 1.0, %v1521_v11  ;;  %v1523_v13 = vpop.eup %1522  ;;  %v676_v11 = vld [vmem:[#allocation3 + $0x20] sm:$0xff] }
 0x53b   :  { %v508_v14 = vmul.f32 %v1523_v13, %v506_v10  ;;  %vm513_vm4 = vweird.f32 %v1523_v13 }
 0x53c   :  { %1524 = vrcp.f32 %v567_v12  ;;  %vm514_vm6 = vmor %vm512_vm5, %vm513_vm4  ;;  %v579_v32 = vand.u32 2147483648, %v567_v12  ;;  %vm573_vm9 = vweird.f32 %v567_v12  ;;  %v577_v34 = vand.u32 2147483647, %v567_v12 }
 0x53d   :  { %v509_v15 = vsub.f32 1.0, %v508_v14 }
 0x53e   :  { %v580_v36 = vor.u32 1.1754944e-38, %v579_v32  ;;  %vm578_vm11 = vcmp.eq.f32.partialorder %v577_v34, 8.507059e+37 }
 0x53f   :  { %v510_v17 = vmul.f32 %v1523_v13, %v509_v15 }
 0x541   :  { %v511_v19 = vadd.f32 %v1523_v13, %v510_v17 }
 0x542   :  { %v1525_v16 = vpop.eup %1524 }
 0x543   :  { %v569_v18 = vmul.f32 %v1525_v16, %v567_v12  ;;  %v515_v24 = vsel %vm514_vm6, %v1523_v13, %v511_v19  ;;  %vm574_vm8 = vweird.f32 %v1525_v16 }
 0x544   :  { %v520_v29 = vsel %vm517_vm7, %v519_v26, %v515_v24  ;;  %vm575_vm10 = vmor %vm573_vm9, %vm574_vm8 }
 0x545   :  { %v570_v20 = vsub.f32 1.0, %v569_v18  ;;  %v533_v50 = vsub.f32 1.0, %v520_v29  ;;  %v539_v52 = vmul.f32 %v520_v29, %v1817_v42 }
 0x547   :  { %v571_v25 = vmul.f32 %v1525_v16, %v570_v20 }
 0x549   :  { %v572_v31 = vadd.f32 %v1525_v16, %v571_v25 }
 0x54b   :  { %v576_v35 = vsel %vm575_vm10, %v1525_v16, %v572_v31 }
 0x54c   :  { %v581_v37 = vsel %vm578_vm11, %v580_v36, %v576_v35 }
 0x54d   :  { %v594_v56 = vsub.f32 1.0, %v581_v37  ;;  %v600_v58 = vmul.f32 %v581_v37, %v1823_v49 }
 0x581   :  { %v524_v28 = vpop.permute.xlu1 %523 }
 0x582   :  { %v526_v30 = vmul.f32 %v524_v28, %v520_v29 }
 0x584   :  { %528 = vrot.lane.b32.xlu0 %v526_v30, %s1593_s2 }
 0x589   :  { %v585_v39 = vpop.permute.xlu2 %584 }
 0x58a   :  { %v587_v40 = vmul.f32 %v585_v39, %v581_v37 }
 0x58c   :  { %589 = vrot.lane.b32.xlu1 %v587_v40, %s1593_s2 }
 0x5f6   :  { %v529_v41 = vpop.permute.xlu0 %528 }
 0x5f7   :  { %v531_v43 = vadd.f32 %v529_v41, %v481_v63 }
 0x5f9   :  { %1526 = vtanh.f32 %v531_v43 }
 0x5fe   :  { %v590_v45 = vpop.permute.xlu1 %589 }
 0x5ff   :  { %v1527_v46 = vpop.eup %1526  ;;  %v592_v47 = vadd.f32 %v590_v45, %v542_v3 }
 0x600   :  { %535 = vrot.lane.b32.xlu2 %v1527_v46, %s1594_s5 }
 0x601   :  { %1528 = vtanh.f32 %v592_v47 }
 0x607   :  { %v1529_v48 = vpop.eup %1528 }
 0x608   :  { %596 = vrot.lane.b32.xlu0 %v1529_v48, %s1594_s5 }
 0x65a   :  { %v536_v51 = vpop.permute.xlu2 %535 }
 0x65b   :  { %v538_v53 = vmul.f32 %v536_v51, %v533_v50 }
 0x65d   :  { %v1847_v54 = vadd.f32 %v539_v52, %v538_v53 }
 0x65f   :  { %v616_v55 = vpack.c.bf16 %v1847_v54, %v1847_v54 }
 0x661   :  { %618 = vrot.lane.b32.xlu1 %v616_v55, %s1594_s5 }
 0x67a   :  { %v597_v57 = vpop.permute.xlu0 %596 }
 0x67b   :  { %v599_v59 = vmul.f32 %v597_v57, %v594_v56 }
 0x67d   :  { %v1853_v60 = vadd.f32 %v600_v58, %v599_v59 }
 0x67f   :  { %v677_v61 = vpack.c.bf16 %v1853_v60, %v1853_v60 }
 0x681   :  { %679 = vrot.lane.b32.xlu2 %v677_v61, %s1594_s5 }
 0x6d3   :  { %v619_v62 = vpop.permute.xlu1 %618 }
 0x6d4   :  { %1427 = vmatmul.msk.bf16.vlgmr.msrb.gmra.mxu2 %vm77_vm0, %v619_v62 }
 0x6d5   :  { %1165 = vmatpush.bf16.msrb.mxu2 %v1679_v2 }
 0x6d9   :  { %1166 = vmatpush.bf16.msrb.mxu2 %v1702_v8  ;;  %v615_v8 = vld [vmem:[#allocation2 + $0x18] sm:$0xff] }
 0x6db   :  { %v680_v63 = vpop.permute.xlu2 %679 }
 0x6dc   :  { %1429 = vmatmul.msk.bf16.vlgmr.msrb.gmra.mxu3 %vm77_vm0, %v680_v63 }
 0x6dd   :  { %1225 = vmatpush.bf16.msrb.mxu3 %v1696_v7 }
 0x6e1   :  { %1226 = vmatpush.bf16.msrb.mxu3 %v1708_v9 }
 0x757   :  { %v632_v0 = vpop.f32.mrf.mxu2 }
 0x758   :  { %v633_v1 = vadd.f32 %v1768_v27, %v632_v0 }
 0x75a   :  { %657 = vrot.lane.b32.xlu0 %v633_v1, %s1593_s2  ;;  %v636_v6 = vadd.f32 %v633_v1, %v615_v8 }
 0x75c   :  { %v1428_v10 = vmul.f32 -1.442695, %v636_v6 }
 0x75e   :  { %1530 = vpow2.f32 %v1428_v10 }
 0x75f   :  { %v634_v3 = vpop.f32.mrf.mxu2  ;;  %v693_v4 = vpop.f32.mrf.mxu3 }
 0x760   :  { %v694_v5 = vadd.f32 %v1775_v33, %v693_v4  ;;  %v109_v4 = vpop.f32.mrf.mxu0 }
 0x762   :  { %718 = vrot.lane.b32.xlu1 %v694_v5, %s1593_s2  ;;  %v697_v7 = vadd.f32 %v694_v5, %v676_v11  ;;  %v110_v5 = vadd.f32 %v1757_v21, %v109_v4 }
 0x764   :  { %v1430_v12 = vmul.f32 -1.442695, %v697_v7  ;;  %v1531_v9 = vpop.eup %1530  ;;  %124 = vst.msk [vmem:[#allocation2 + $0x20] sm:$0xff] %vm119_vm1, %v110_v5 }
 0x765   :  { %v640_v13 = vadd.f32 1.0, %v1531_v9 }
 0x766   :  { %1532 = vpow2.f32 %v1430_v12 }
 0x767   :  { %v695_v2 = vpop.f32.mrf.mxu3  ;;  %1534 = vrcp.f32 %v640_v13  ;;  %v652_v25 = vand.u32 2147483648, %v640_v13  ;;  %vm646_vm13 = vweird.f32 %v640_v13  ;;  %v650_v26 = vand.u32 2147483647, %v640_v13 }
 0x768   :  { %v111_v2 = vpop.f32.mrf.mxu0 }
 0x769   :  { %v653_v30 = vor.u32 1.1754944e-38, %v652_v25  ;;  %vm651_vm15 = vcmp.eq.f32.partialorder %v650_v26, 8.507059e+37  ;;  %v810_v26 = vld [vmem:[#allocation3 + $0x18] sm:$0xff] }
 0x76c   :  { %v1533_v14 = vpop.eup %1532 }
 0x76d   :  { %v701_v15 = vadd.f32 1.0, %v1533_v14  ;;  %v1535_v16 = vpop.eup %1534 }
 0x76e   :  { %v642_v17 = vmul.f32 %v1535_v16, %v640_v13  ;;  %vm647_vm12 = vweird.f32 %v1535_v16 }
 0x76f   :  { %1536 = vrcp.f32 %v701_v15  ;;  %vm648_vm14 = vmor %vm646_vm13, %vm647_vm12  ;;  %v713_v36 = vand.u32 2147483648, %v701_v15  ;;  %vm707_vm3 = vweird.f32 %v701_v15  ;;  %v711_v37 = vand.u32 2147483647, %v701_v15 }
 0x770   :  { %v643_v18 = vsub.f32 1.0, %v642_v17  ;;  %v114_v6 = vpop.f32.mrf.mxu0 }
 0x771   :  { %v714_v40 = vor.u32 1.1754944e-38, %v713_v36  ;;  %vm712_vm5 = vcmp.eq.f32.partialorder %v711_v37, 8.507059e+37  ;;  %v115_v10 = vadd.f32 %v1757_v21, %v114_v6 }
 0x772   :  { %v644_v20 = vmul.f32 %v1535_v16, %v643_v18 }
 0x773   :  { %126 = vst.msk [vmem:[#allocation2 + $0x30] sm:$0xff] %vm119_vm1, %v115_v10 }
 0x774   :  { %v645_v23 = vadd.f32 %v1535_v16, %v644_v20 }
 0x775   :  { %v1537_v19 = vpop.eup %1536 }
 0x776   :  { %v703_v22 = vmul.f32 %v1537_v19, %v701_v15  ;;  %v649_v28 = vsel %vm648_vm14, %v1535_v16, %v645_v23  ;;  %vm708_vm2 = vweird.f32 %v1537_v19 }
 0x777   :  { %v654_v32 = vsel %vm651_vm15, %v653_v30, %v649_v28  ;;  %vm709_vm4 = vmor %vm707_vm3, %vm708_vm2 }
 0x778   :  { %v704_v24 = vsub.f32 1.0, %v703_v22  ;;  %v667_v53 = vsub.f32 1.0, %v654_v32  ;;  %v673_v56 = vmul.f32 %v654_v32, %v1847_v54  ;;  %v116_v7 = vpop.f32.mrf.mxu0 }
 0x779   :  { %v117_v12 = vadd.f32 %v1757_v21, %v116_v7 }
 0x77a   :  { %v705_v29 = vmul.f32 %v1537_v19, %v704_v24 }
 0x77b   :  { %127 = vst.msk [vmem:[#allocation2 + $0x38] sm:$0xff] %vm119_vm1, %v117_v12 }
 0x77c   :  { %v706_v35 = vadd.f32 %v1537_v19, %v705_v29 }
 0x77e   :  { %v710_v39 = vsel %vm709_vm4, %v1537_v19, %v706_v35  ;;  %v749_v19 = vld [vmem:[#allocation2 + $0x20] sm:$0xff] }
 0x77f   :  { %v715_v43 = vsel %vm712_vm5, %v714_v40, %v710_v39 }
 0x780   :  { %v728_v61 = vsub.f32 1.0, %v715_v43  ;;  %v734_v63 = vmul.f32 %v715_v43, %v1853_v60 }
 0x7cc   :  { %v658_v31 = vpop.permute.xlu0 %657 }
 0x7cd   :  { %v660_v34 = vmul.f32 %v658_v31, %v654_v32 }
 0x7cf   :  { %662 = vrot.lane.b32.xlu2 %v660_v34, %s1593_s2 }
 0x7d4   :  { %v719_v41 = vpop.permute.xlu1 %718 }
 0x7d5   :  { %v721_v45 = vmul.f32 %v719_v41, %v715_v43 }
 0x7d7   :  { %723 = vrot.lane.b32.xlu0 %v721_v45, %s1593_s2 }
 0x829   :  { %v663_v46 = vpop.permute.xlu2 %662 }
 0x82a   :  { %v665_v47 = vadd.f32 %v663_v46, %v615_v8  ;;  %v112_v8 = vadd.f32 %v1757_v21, %v111_v2 }
 0x82c   :  { %1538 = vtanh.f32 %v665_v47  ;;  %125 = vst.msk [vmem:[#allocation2 + $0x28] sm:$0xff] %vm119_vm1, %v112_v8 }
 0x832   :  { %v1539_v48 = vpop.eup %1538 }
 0x833   :  { %669 = vrot.lane.b32.xlu1 %v1539_v48, %s1594_s5 }
 0x849   :  { %v724_v50 = vpop.permute.xlu0 %723 }
 0x84a   :  { %v726_v51 = vadd.f32 %v724_v50, %v676_v11 }
 0x84c   :  { %1540 = vtanh.f32 %v726_v51 }
 0x852   :  { %v1541_v52 = vpop.eup %1540 }
 0x853   :  { %730 = vrot.lane.b32.xlu2 %v1541_v52, %s1594_s5 }
 0x8a5   :  { %v670_v55 = vpop.permute.xlu1 %669 }
 0x8a6   :  { %v672_v57 = vmul.f32 %v670_v55, %v667_v53 }
 0x8a8   :  { %v1873_v58 = vadd.f32 %v673_v56, %v672_v57 }
 0x8aa   :  { %v750_v59 = vpack.c.bf16 %v1873_v58, %v1873_v58 }
 0x8ac   :  { %752 = vrot.lane.b32.xlu0 %v750_v59, %s1594_s5 }
 0x8ad   :  { %v731_v62 = vpop.permute.xlu2 %730 }
 0x8ae   :  { %v733_v0 = vmul.f32 %v731_v62, %v728_v61 }
 0x8b0   :  { %v1879_v1 = vadd.f32 %v734_v63, %v733_v0 }
 0x8b2   :  { %v811_v3 = vpack.c.bf16 %v1879_v1, %v1879_v1 }
 0x8b4   :  { %813 = vrot.lane.b32.xlu1 %v811_v3, %s1594_s5 }
 0x91e   :  { %v753_v11 = vpop.permute.xlu0 %752 }
 0x91f   :  { %1433 = vmatmul.msk.bf16.vlgmr.msrb.gmra.mxu0 %vm77_vm0, %v753_v11 }
 0x926   :  { %v814_v9 = vpop.permute.xlu1 %813 }
 0x927   :  { %1435 = vmatmul.msk.bf16.vlgmr.msrb.gmra.mxu1 %vm77_vm0, %v814_v9 }
 0x99c   :  { %v766_v13 = vpop.f32.mrf.mxu0 }
 0x99d   :  { %v767_v14 = vadd.f32 %v1768_v27, %v766_v13 }
 0x99f   :  { %791 = vrot.lane.b32.xlu2 %v767_v14, %s1593_s2  ;;  %v770_v20 = vadd.f32 %v767_v14, %v749_v19 }
 0x9a1   :  { %v1434_v21 = vmul.f32 -1.442695, %v770_v20 }
 0x9a3   :  { %1542 = vpow2.f32 %v1434_v21 }
 0x9a4   :  { %v768_v15 = vpop.f32.mrf.mxu0  ;;  %v827_v16 = vpop.f32.mrf.mxu1 }
 0x9a5   :  { %v828_v17 = vadd.f32 %v1775_v33, %v827_v16 }
 0x9a7   :  { %852 = vrot.lane.b32.xlu0 %v828_v17, %s1593_s2  ;;  %v831_v28 = vadd.f32 %v828_v17, %v810_v26 }
 0x9a9   :  { %v1543_v22 = vpop.eup %1542  ;;  %v1436_v30 = vmul.f32 -1.442695, %v831_v28 }
 0x9aa   :  { %v774_v23 = vadd.f32 1.0, %v1543_v22 }
 0x9ac   :  { %v829_v18 = vpop.f32.mrf.mxu1  ;;  %1544 = vrcp.f32 %v774_v23  ;;  %v786_v34 = vand.u32 2147483648, %v774_v23  ;;  %vm780_vm6 = vweird.f32 %v774_v23  ;;  %v784_v35 = vand.u32 2147483647, %v774_v23 }
 0x9ad   :  { %1546 = vpow2.f32 %v1436_v30 }
 0x9ae   :  { %v787_v39 = vor.u32 1.1754944e-38, %v786_v34  ;;  %vm785_vm8 = vcmp.eq.f32.partialorder %v784_v35, 8.507059e+37 }
 0x9b2   :  { %v1545_v24 = vpop.eup %1544 }
 0x9b3   :  { %v776_v25 = vmul.f32 %v1545_v24, %v774_v23  ;;  %vm781_vm1 = vweird.f32 %v1545_v24  ;;  %v1547_v36 = vpop.eup %1546 }
 0x9b4   :  { %vm782_vm7 = vmor %vm780_vm6, %vm781_vm1  ;;  %v835_v40 = vadd.f32 1.0, %v1547_v36 }
 0x9b5   :  { %v777_v29 = vsub.f32 1.0, %v776_v25  ;;  %v883_v25 = vld [vmem:[#allocation2 + $0x28] sm:$0xff] }
 0x9b6   :  { %1548 = vrcp.f32 %v835_v40  ;;  %v847_v52 = vand.u32 2147483648, %v835_v40  ;;  %vm841_vm10 = vweird.f32 %v835_v40  ;;  %v845_v53 = vand.u32 2147483647, %v835_v40 }
 0x9b7   :  { %v778_v31 = vmul.f32 %v1545_v24, %v777_v29  ;;  %v944_v29 = vld [vmem:[#allocation3 + $0x10] sm:$0xff] }
 0x9b8   :  { %v848_v56 = vor.u32 1.1754944e-38, %v847_v52  ;;  %vm846_vm12 = vcmp.eq.f32.partialorder %v845_v53, 8.507059e+37 }
 0x9b9   :  { %v779_v32 = vadd.f32 %v1545_v24, %v778_v31 }
 0x9bb   :  { %v783_v37 = vsel %vm782_vm7, %v1545_v24, %v779_v32 }
 0x9bc   :  { %v788_v41 = vsel %vm785_vm8, %v787_v39, %v783_v37  ;;  %v1549_v46 = vpop.eup %1548 }
 0x9bd   :  { %v837_v47 = vmul.f32 %v1549_v46, %v835_v40  ;;  %vm842_vm9 = vweird.f32 %v1549_v46  ;;  %v801_v2 = vsub.f32 1.0, %v788_v41  ;;  %v807_v6 = vmul.f32 %v788_v41, %v1873_v58 }
 0x9be   :  { %vm843_vm11 = vmor %vm841_vm10, %vm842_vm9 }
 0x9bf   :  { %v838_v48 = vsub.f32 1.0, %v837_v47 }
 0x9c1   :  { %v839_v50 = vmul.f32 %v1549_v46, %v838_v48 }
 0x9c3   :  { %v840_v51 = vadd.f32 %v1549_v46, %v839_v50 }
 0x9c5   :  { %v844_v55 = vsel %vm843_vm11, %v1549_v46, %v840_v51 }
 0x9c6   :  { %v849_v59 = vsel %vm846_vm12, %v848_v56, %v844_v55 }
 0x9c7   :  { %v862_v12 = vsub.f32 1.0, %v849_v59  ;;  %v868_v13 = vmul.f32 %v849_v59, %v1879_v1 }
 0x9f9   :  { %v792_v43 = vpop.permute.xlu2 %791 }
 0x9fa   :  { %v794_v45 = vmul.f32 %v792_v43, %v788_v41 }
 0x9fc   :  { %796 = vrot.lane.b32.xlu1 %v794_v45, %s1593_s2 }
 0xa19   :  { %v853_v57 = vpop.permute.xlu0 %852 }
 0xa1a   :  { %v855_v61 = vmul.f32 %v853_v57, %v849_v59 }
 0xa1c   :  { %857 = vrot.lane.b32.xlu2 %v855_v61, %s1593_s2 }
 0xa6e   :  { %v797_v62 = vpop.permute.xlu1 %796 }
 0xa6f   :  { %v799_v63 = vadd.f32 %v797_v62, %v749_v19 }
 0xa71   :  { %1550 = vtanh.f32 %v799_v63 }
 0xa76   :  { %v858_v0 = vpop.permute.xlu2 %857 }
 0xa77   :  { %v1551_v3 = vpop.eup %1550  ;;  %v860_v4 = vadd.f32 %v858_v0, %v810_v26 }
 0xa78   :  { %803 = vrot.lane.b32.xlu0 %v1551_v3, %s1594_s5 }
 0xa79   :  { %1552 = vtanh.f32 %v860_v4 }
 0xa7f   :  { %v1553_v5 = vpop.eup %1552 }
 0xa80   :  { %864 = vrot.lane.b32.xlu1 %v1553_v5, %s1594_s5 }
 0xaea   :  { %v804_v8 = vpop.permute.xlu0 %803 }
 0xaeb   :  { %v806_v10 = vmul.f32 %v804_v8, %v801_v2 }
 0xaed   :  { %v1903_v11 = vadd.f32 %v807_v6, %v806_v10 }
 0xaef   :  { %v884_v7 = vpack.c.bf16 %v1903_v11, %v1903_v11 }
 0xaf1   :  { %886 = vrot.lane.b32.xlu2 %v884_v7, %s1594_s5 }
 0xaf2   :  { %v865_v9 = vpop.permute.xlu1 %864 }
 0xaf3   :  { %v867_v14 = vmul.f32 %v865_v9, %v862_v12 }
 0xaf5   :  { %v1909_v15 = vadd.f32 %v868_v13, %v867_v14 }
 0xaf7   :  { %v945_v16 = vpack.c.bf16 %v1909_v15, %v1909_v15 }
 0xaf9   :  { %947 = vrot.lane.b32.xlu0 %v945_v16, %s1594_s5 }
 0xb4b   :  { %v887_v17 = vpop.permute.xlu2 %886 }
 0xb4c   :  { %1439 = vmatmul.msk.bf16.vlgmr.msra.gmra.mxu2 %vm77_vm0, %v887_v17 }
 0xb6b   :  { %v948_v18 = vpop.permute.xlu0 %947 }
 0xb6c   :  { %1441 = vmatmul.msk.bf16.vlgmr.msra.gmra.mxu3 %vm77_vm0, %v948_v18 }
 0xbcf   :  { %v900_v19 = vpop.f32.mrf.mxu2 }
 0xbd0   :  { %v901_v20 = vadd.f32 %v1768_v27, %v900_v19 }
 0xbd2   :  { %925 = vrot.lane.b32.xlu1 %v901_v20, %s1593_s2  ;;  %v904_v26 = vadd.f32 %v901_v20, %v883_v25 }
 0xbd4   :  { %v1440_v28 = vmul.f32 -1.442695, %v904_v26  ;;  %v1941_v26 = vld [vmem:[%s2104_s4] ss:$0 sm:$0xff] }
 0xbd6   :  { %1554 = vpow2.f32 %v1440_v28 }
 0xbd7   :  { %v902_v21 = vpop.f32.mrf.mxu2 }
 0xbdc   :  { %v1555_v32 = vpop.eup %1554 }
 0xbdd   :  { %v908_v34 = vadd.f32 1.0, %v1555_v32 }
 0xbdf   :  { %v920_v46 = vand.u32 2147483648, %v908_v34  ;;  %vm914_vm14 = vweird.f32 %v908_v34  ;;  %v918_v47 = vand.u32 2147483647, %v908_v34 }
 0xbe1   :  { %v921_v51 = vor.u32 1.1754944e-38, %v920_v46  ;;  %vm919_vm2 = vcmp.eq.f32.partialorder %v918_v47, 8.507059e+37 }
 0xbef   :  { %v961_v22 = vpop.f32.mrf.mxu3 }
 0xbf0   :  { %v962_v23 = vadd.f32 %v1775_v33, %v961_v22 }
 0xbf2   :  { %986 = vrot.lane.b32.xlu2 %v962_v23, %s1593_s2  ;;  %v965_v30 = vadd.f32 %v962_v23, %v944_v29 }
 0xbf4   :  { %v1442_v31 = vmul.f32 -1.442695, %v965_v30 }
 0xbf6   :  { %1556 = vpow2.f32 %v1442_v31  ;;  %v1948_v31 = vld [vmem:[%s2105_s8] ss:$0 sm:$0xff] }
 0xbf7   :  { %v963_v24 = vpop.f32.mrf.mxu3  ;;  %1558 = vrcp.f32 %v908_v34 }
 0xbfc   :  { %v1557_v27 = vpop.eup %1556 }
 0xbfd   :  { %v969_v35 = vadd.f32 1.0, %v1557_v27  ;;  %v1559_v36 = vpop.eup %1558  ;;  %v1017_v27 = vld [vmem:[#allocation2 + $0x30] sm:$0xff] }
 0xbfe   :  { %v910_v37 = vmul.f32 %v1559_v36, %v908_v34  ;;  %vm915_vm13 = vweird.f32 %v1559_v36 }
 0xbff   :  { %1560 = vrcp.f32 %v969_v35  ;;  %vm916_vm15 = vmor %vm914_vm14, %vm915_vm13  ;;  %v981_v57 = vand.u32 2147483648, %v969_v35  ;;  %vm975_vm4 = vweird.f32 %v969_v35  ;;  %v979_v59 = vand.u32 2147483647, %v969_v35 }
 0xc00   :  { %v911_v33 = vsub.f32 1.0, %v910_v37  ;;  %v1078_v37 = vld [vmem:[#allocation3 + $0x8] sm:$0xff] }
 0xc01   :  { %v982_v62 = vor.u32 1.1754944e-38, %v981_v57  ;;  %vm980_vm1 = vcmp.eq.f32.partialorder %v979_v59, 8.507059e+37 }
 0xc02   :  { %v912_v40 = vmul.f32 %v1559_v36, %v911_v33 }
 0xc04   :  { %v913_v43 = vadd.f32 %v1559_v36, %v912_v40 }
 0xc05   :  { %v1561_v39 = vpop.eup %1560 }
 0xc06   :  { %v971_v41 = vmul.f32 %v1561_v39, %v969_v35  ;;  %v917_v48 = vsel %vm916_vm15, %v1559_v36, %v913_v43  ;;  %vm976_vm3 = vweird.f32 %v1561_v39 }
 0xc07   :  { %v922_v53 = vsel %vm919_vm2, %v921_v51, %v917_v48  ;;  %vm977_vm5 = vmor %vm975_vm4, %vm976_vm3 }
 0xc08   :  { %v972_v45 = vsub.f32 1.0, %v971_v41  ;;  %v935_v7 = vsub.f32 1.0, %v922_v53  ;;  %v941_v9 = vmul.f32 %v922_v53, %v1903_v11 }
 0xc0a   :  { %v973_v50 = vmul.f32 %v1561_v39, %v972_v45 }
 0xc0c   :  { %v974_v56 = vadd.f32 %v1561_v39, %v973_v50 }
 0xc0e   :  { %v978_v61 = vsel %vm977_vm5, %v1561_v39, %v974_v56 }
 0xc0f   :  { %v983_v63 = vsel %vm980_vm1, %v982_v62, %v978_v61 }
 0xc10   :  { %v996_v17 = vsub.f32 1.0, %v983_v63  ;;  %v1002_v19 = vmul.f32 %v983_v63, %v1909_v15 }
 0xc44   :  { %v926_v52 = vpop.permute.xlu1 %925 }
 0xc45   :  { %v928_v55 = vmul.f32 %v926_v52, %v922_v53 }
 0xc47   :  { %930 = vrot.lane.b32.xlu0 %v928_v55, %s1593_s2 }
 0xc4c   :  { %v987_v0 = vpop.permute.xlu2 %986 }
 0xc4d   :  { %v989_v3 = vmul.f32 %v987_v0, %v983_v63 }
 0xc4f   :  { %991 = vrot.lane.b32.xlu1 %v989_v3, %s1593_s2 }
 0xcb9   :  { %v931_v4 = vpop.permute.xlu0 %930 }
 0xcba   :  { %v933_v5 = vadd.f32 %v931_v4, %v883_v25 }
 0xcbc   :  { %1562 = vtanh.f32 %v933_v5 }
 0xcc1   :  { %v992_v2 = vpop.permute.xlu1 %991 }
 0xcc2   :  { %v1563_v8 = vpop.eup %1562  ;;  %v994_v6 = vadd.f32 %v992_v2, %v944_v29 }
 0xcc3   :  { %937 = vrot.lane.b32.xlu2 %v1563_v8, %s1594_s5 }
 0xcc4   :  { %1564 = vtanh.f32 %v994_v6 }
 0xcca   :  { %v1565_v10 = vpop.eup %1564 }
 0xccb   :  { %998 = vrot.lane.b32.xlu0 %v1565_v10, %s1594_s5 }
 0xd1d   :  { %v938_v12 = vpop.permute.xlu2 %937 }
 0xd1e   :  { %v940_v13 = vmul.f32 %v938_v12, %v935_v7 }
 0xd20   :  { %v1925_v14 = vadd.f32 %v941_v9, %v940_v13 }
 0xd22   :  { %v1018_v16 = vpack.c.bf16 %v1925_v14, %v1925_v14 }
 0xd24   :  { %1020 = vrot.lane.b32.xlu1 %v1018_v16, %s1594_s5 }
 0xd3d   :  { %v999_v18 = vpop.permute.xlu0 %998 }
 0xd3e   :  { %v1001_v20 = vmul.f32 %v999_v18, %v996_v17 }
 0xd40   :  { %v1931_v21 = vadd.f32 %v1002_v19, %v1001_v20 }
 0xd42   :  { %v1079_v22 = vpack.c.bf16 %v1931_v21, %v1931_v21 }
 0xd44   :  { %1081 = vrot.lane.b32.xlu2 %v1079_v22, %s1594_s5 }
 0xd96   :  { %v1021_v23 = vpop.permute.xlu1 %1020 }
 0xd97   :  { %1445 = vmatmul.msk.bf16.vlgmr.msra.gmra.mxu0 %vm77_vm0, %v1021_v23 }
 0xd9e   :  { %v1082_v24 = vpop.permute.xlu2 %1081 }
 0xd9f   :  { %1447 = vmatmul.msk.bf16.vlgmr.msra.gmra.mxu1 %vm77_vm0, %v1082_v24 }
 0xe14   :  { %v1034_v25 = vpop.f32.mrf.mxu0 }
 0xe15   :  { %v1035_v28 = vadd.f32 %v1941_v26, %v1034_v25 }
 0xe17   :  { %1059 = vrot.lane.b32.xlu0 %v1035_v28, %s1593_s2  ;;  %v1038_v35 = vadd.f32 %v1035_v28, %v1017_v27 }
 0xe19   :  { %v1446_v36 = vmul.f32 -1.442695, %v1038_v35 }
 0xe1b   :  { %1566 = vpow2.f32 %v1446_v36 }
 0xe1c   :  { %v1036_v29 = vpop.f32.mrf.mxu0  ;;  %v1095_v30 = vpop.f32.mrf.mxu1 }
 0xe1d   :  { %v1096_v32 = vadd.f32 %v1948_v31, %v1095_v30 }
 0xe1f   :  { %1120 = vrot.lane.b32.xlu1 %v1096_v32, %s1593_s2  ;;  %v1099_v33 = vadd.f32 %v1096_v32, %v1078_v37 }
 0xe21   :  { %v1448_v39 = vmul.f32 -1.442695, %v1099_v33  ;;  %v1567_v40 = vpop.eup %1566 }
 0xe22   :  { %v1042_v41 = vadd.f32 1.0, %v1567_v40 }
 0xe23   :  { %1568 = vpow2.f32 %v1448_v39 }
 0xe24   :  { %v1097_v34 = vpop.f32.mrf.mxu1  ;;  %1570 = vrcp.f32 %v1042_v41  ;;  %v1054_v56 = vand.u32 2147483648, %v1042_v41  ;;  %vm1048_vm7 = vweird.f32 %v1042_v41  ;;  %v1052_v57 = vand.u32 2147483647, %v1042_v41 }
 0xe26   :  { %v1055_v62 = vor.u32 1.1754944e-38, %v1054_v56  ;;  %vm1053_vm9 = vcmp.eq.f32.partialorder %v1052_v57, 8.507059e+37 }
 0xe29   :  { %v1569_v43 = vpop.eup %1568 }
 0xe2a   :  { %v1103_v45 = vadd.f32 1.0, %v1569_v43  ;;  %v1571_v46 = vpop.eup %1570 }
 0xe2b   :  { %v1044_v47 = vmul.f32 %v1571_v46, %v1042_v41  ;;  %vm1049_vm6 = vweird.f32 %v1571_v46 }
 0xe2c   :  { %1572 = vrcp.f32 %v1103_v45  ;;  %vm1050_vm8 = vmor %vm1048_vm7, %vm1049_vm6  ;;  %v1115_v5 = vand.u32 2147483648, %v1103_v45  ;;  %vm1109_vm11 = vweird.f32 %v1103_v45  ;;  %v1113_v2 = vand.u32 2147483647, %v1103_v45 }
 0xe2d   :  { %v1045_v48 = vsub.f32 1.0, %v1044_v47 }
 0xe2e   :  { %v1116_v6 = vor.u32 1.1754944e-38, %v1115_v5  ;;  %vm1114_vm13 = vcmp.eq.f32.partialorder %v1113_v2, 8.507059e+37 }
 0xe2f   :  { %v1046_v51 = vmul.f32 %v1571_v46, %v1045_v48 }
 0xe31   :  { %v1047_v53 = vadd.f32 %v1571_v46, %v1046_v51 }
 0xe32   :  { %v1573_v50 = vpop.eup %1572 }
 0xe33   :  { %v1105_v52 = vmul.f32 %v1573_v50, %v1103_v45  ;;  %v1051_v59 = vsel %vm1050_vm8, %v1571_v46, %v1047_v53  ;;  %vm1110_vm10 = vweird.f32 %v1573_v50  ;;  %v1151_v46 = vld [vmem:[#allocation2 + $0x38] sm:$0xff] }
 0xe34   :  { %v1056_v0 = vsel %vm1053_vm9, %v1055_v62, %v1051_v59  ;;  %vm1111_vm12 = vmor %vm1109_vm11, %vm1110_vm10 }
 0xe35   :  { %v1106_v55 = vsub.f32 1.0, %v1105_v52  ;;  %v1069_v20 = vsub.f32 1.0, %v1056_v0  ;;  %v1075_v23 = vmul.f32 %v1056_v0, %v1925_v14 }
 0xe37   :  { %v1107_v61 = vmul.f32 %v1573_v50, %v1106_v55  ;;  %v1211_v55 = vld [vmem:[#allocation3] sm:$0xff] }
 0xe39   :  { %v1108_v4 = vadd.f32 %v1573_v50, %v1107_v61 }
 0xe3b   :  { %v1112_v8 = vsel %vm1111_vm12, %v1573_v50, %v1108_v4 }
 0xe3c   :  { %v1117_v7 = vsel %vm1114_vm13, %v1116_v6, %v1112_v8 }
 0xe3d   :  { %v1130_v29 = vsub.f32 1.0, %v1117_v7  ;;  %v1136_v32 = vmul.f32 %v1117_v7, %v1931_v21 }
 0xe89   :  { %v1060_v63 = vpop.permute.xlu0 %1059 }
 0xe8a   :  { %v1062_v3 = vmul.f32 %v1060_v63, %v1056_v0 }
 0xe8c   :  { %1064 = vrot.lane.b32.xlu2 %v1062_v3, %s1593_s2 }
 0xe91   :  { %v1121_v10 = vpop.permute.xlu1 %1120 }
 0xe92   :  { %v1123_v12 = vmul.f32 %v1121_v10, %v1117_v7 }
 0xe94   :  { %1125 = vrot.lane.b32.xlu0 %v1123_v12, %s1593_s2 }
 0xee6   :  { %v1065_v9 = vpop.permute.xlu2 %1064 }
 0xee7   :  { %v1067_v13 = vadd.f32 %v1065_v9, %v1017_v27 }
 0xee9   :  { %1574 = vtanh.f32 %v1067_v13 }
 0xeef   :  { %v1575_v16 = vpop.eup %1574 }
 0xef0   :  { %1071 = vrot.lane.b32.xlu1 %v1575_v16, %s1594_s5 }
 0xf06   :  { %v1126_v17 = vpop.permute.xlu0 %1125 }
 0xf07   :  { %v1128_v18 = vadd.f32 %v1126_v17, %v1078_v37 }
 0xf09   :  { %1576 = vtanh.f32 %v1128_v18 }
 0xf0f   :  { %v1577_v19 = vpop.eup %1576 }
 0xf10   :  { %1132 = vrot.lane.b32.xlu2 %v1577_v19, %s1594_s5 }
 0xf62   :  { %v1072_v22 = vpop.permute.xlu1 %1071 }
 0xf63   :  { %v1074_v24 = vmul.f32 %v1072_v22, %v1069_v20 }
 0xf65   :  { %v1957_v25 = vadd.f32 %v1075_v23, %v1074_v24 }
 0xf67   :  { %v1152_v28 = vpack.c.bf16 %v1957_v25, %v1957_v25 }
 0xf69   :  { %1154 = vrot.lane.b32.xlu0 %v1152_v28, %s1594_s5 }
 0xf6a   :  { %v1133_v30 = vpop.permute.xlu2 %1132 }
 0xf6b   :  { %v1135_v34 = vmul.f32 %v1133_v30, %v1130_v29 }
 0xf6d   :  { %v1963_v27 = vadd.f32 %v1136_v32, %v1135_v34 }
 0xf6f   :  { %v1212_v35 = vpack.c.bf16 %v1963_v27, %v1963_v27 }
 0xf71   :  { %1214 = vrot.lane.b32.xlu1 %v1212_v35, %s1594_s5 }
 0xfdb   :  { %v1155_v36 = vpop.permute.xlu0 %1154 }
 0xfdc   :  { %1451 = vmatmul.msk.bf16.vlgmr.msrb.gmra.mxu2 %vm77_vm0, %v1155_v36 }
 0xfe3   :  { %v1215_v37 = vpop.permute.xlu1 %1214 }
 0xfe4   :  { %1453 = vmatmul.msk.bf16.vlgmr.msrb.gmra.mxu3 %vm77_vm0, %v1215_v37 }
0x105f   :  { %v1168_v33 = vpop.f32.mrf.mxu2 }
0x1060   :  { %v1169_v39 = vadd.f32 %v1941_v26, %v1168_v33 }
0x1062   :  { %1193 = vrot.lane.b32.xlu2 %v1169_v39, %s1593_s2  ;;  %v1172_v47 = vadd.f32 %v1169_v39, %v1151_v46 }
0x1064   :  { %v1452_v48 = vmul.f32 -1.442695, %v1172_v47 }
0x1066   :  { %1578 = vpow2.f32 %v1452_v48 }
0x1067   :  { %v1170_v40 = vpop.f32.mrf.mxu2  ;;  %v1228_v41 = vpop.f32.mrf.mxu3 }
0x1068   :  { %v1229_v43 = vadd.f32 %v1948_v31, %v1228_v41 }
0x106a   :  { %1253 = vrot.lane.b32.xlu0 %v1229_v43, %s1593_s2  ;;  %v1232_v26 = vadd.f32 %v1229_v43, %v1211_v55  ;;  %v1485_v43 = vld [vmem:[%s2107_s10 + $0x8] sm:$0xff] }
0x106b   :  { %1316 = vmatpush.bf16.msrb.mxu0 %v1485_v43 }
0x106c   :  { %v1579_v50 = vpop.eup %1578  ;;  %v1454_v57 = vmul.f32 -1.442695, %v1232_v26 }
0x106d   :  { %v1176_v51 = vadd.f32 1.0, %v1579_v50 }
0x106f   :  { %v1230_v45 = vpop.f32.mrf.mxu3  ;;  %1580 = vrcp.f32 %v1176_v51  ;;  %v1188_v31 = vand.u32 2147483648, %v1176_v51  ;;  %vm1182_vm15 = vweird.f32 %v1176_v51  ;;  %v1186_v62 = vand.u32 2147483647, %v1176_v51 }
0x1070   :  { %1582 = vpow2.f32 %v1454_v57 }
0x1071   :  { %v1189_v3 = vor.u32 1.1754944e-38, %v1188_v31  ;;  %vm1187_vm3 = vcmp.eq.f32.partialorder %v1186_v62, 8.507059e+37 }
0x1075   :  { %v1581_v52 = vpop.eup %1580 }
0x1076   :  { %v1178_v53 = vmul.f32 %v1581_v52, %v1176_v51  ;;  %vm1183_vm14 = vweird.f32 %v1581_v52  ;;  %v1583_v63 = vpop.eup %1582 }
0x1077   :  { %vm1184_vm2 = vmor %vm1182_vm15, %vm1183_vm14  ;;  %v1236_v4 = vadd.f32 1.0, %v1583_v63 }
0x1078   :  { %v1179_v56 = vsub.f32 1.0, %v1178_v53 }
0x1079   :  { %1584 = vrcp.f32 %v1236_v4  ;;  %v1248_v13 = vand.u32 2147483648, %v1236_v4  ;;  %vm1242_vm5 = vweird.f32 %v1236_v4  ;;  %v1246_v16 = vand.u32 2147483647, %v1236_v4 }
0x107a   :  { %v1180_v59 = vmul.f32 %v1581_v52, %v1179_v56 }
0x107b   :  { %v1249_v18 = vor.u32 1.1754944e-38, %v1248_v13  ;;  %vm1247_vm6 = vcmp.eq.f32.partialorder %v1246_v16, 8.507059e+37 }
0x107c   :  { %v1181_v61 = vadd.f32 %v1581_v52, %v1180_v59 }
0x107e   :  { %v1185_v0 = vsel %vm1184_vm2, %v1581_v52, %v1181_v61  ;;  %v1493_v61 = vld [vmem:[%s2110_s11] ss:$0 sm:$0xff] }
0x107f   :  { %v1190_v5 = vsel %vm1187_vm3, %v1189_v3, %v1185_v0  ;;  %v1585_v6 = vpop.eup %1584 }
0x1080   :  { %v1238_v10 = vmul.f32 %v1585_v6, %v1236_v4  ;;  %vm1243_vm4 = vweird.f32 %v1585_v6  ;;  %v1203_v34 = vsub.f32 1.0, %v1190_v5  ;;  %v1209_v36 = vmul.f32 %v1190_v5, %v1957_v25 }
0x1081   :  { %vm1244_vm1 = vmor %vm1242_vm5, %vm1243_vm4 }
0x1082   :  { %v1239_v7 = vsub.f32 1.0, %v1238_v10 }
0x1084   :  { %v1240_v12 = vmul.f32 %v1585_v6, %v1239_v7 }
0x1086   :  { %v1241_v9 = vadd.f32 %v1585_v6, %v1240_v12 }
0x1088   :  { %v1245_v17 = vsel %vm1244_vm1, %v1585_v6, %v1241_v9 }
0x1089   :  { %v1250_v20 = vsel %vm1247_vm6, %v1249_v18, %v1245_v17 }
0x108a   :  { %v1269_v40 = vmul.f32 %v1250_v20, %v1963_v27 }
0x10bc   :  { %v1194_v2 = vpop.permute.xlu2 %1193 }
0x10bd   :  { %v1196_v8 = vmul.f32 %v1194_v2, %v1190_v5 }
0x10bf   :  { %1198 = vrot.lane.b32.xlu1 %v1196_v8, %s1593_s2 }
0x10dc   :  { %v1254_v19 = vpop.permute.xlu0 %1253 }
0x10dd   :  { %v1256_v22 = vmul.f32 %v1254_v19, %v1250_v20 }
0x10df   :  { %1258 = vrot.lane.b32.xlu2 %v1256_v22, %s1593_s2 }
0x1131   :  { %v1199_v23 = vpop.permute.xlu1 %1198 }
0x1132   :  { %v1201_v24 = vadd.f32 %v1199_v23, %v1151_v46 }
0x1134   :  { %1586 = vtanh.f32 %v1201_v24 }
0x1139   :  { %v1259_v28 = vpop.permute.xlu2 %1258 }
0x113a   :  { %v1587_v29 = vpop.eup %1586  ;;  %v1261_v30 = vadd.f32 %v1259_v28, %v1211_v55 }
0x113b   :  { %1205 = vrot.lane.b32.xlu0 %v1587_v29, %s1594_s5 }
0x113c   :  { %1588 = vtanh.f32 %v1261_v30 }
0x1142   :  { %v1589_v32 = vpop.eup %1588 }
0x1143   :  { %1265 = vrot.lane.b32.xlu1 %v1589_v32, %s1594_s5 }
0x114b   :  { %336 = vrot.lane.b32.xlu1 %v1792_v38, %s1594_s5  ;;  %v1263_v38 = vsub.f32 1.0, %v1250_v20 }
0x1153   :  { %475 = vrot.lane.b32.xlu1 %v1823_v49, %s1594_s5 }
0x115b   :  { %737 = vrot.lane.b32.xlu1 %v1873_v58, %s1594_s5 }
0x1163   :  { %877 = vrot.lane.b32.xlu1 %v1909_v15, %s1594_s5 }
0x116b   :  { %1139 = vrot.lane.b32.xlu1 %v1957_v25, %s1594_s5 }
0x11ad   :  { %v1206_v35 = vpop.permute.xlu0 %1205 }
0x11ae   :  { %v1208_v37 = vmul.f32 %v1206_v35, %v1203_v34 }
0x11b0   :  { %v1210_v33 = vadd.f32 %v1209_v36, %v1208_v37 }
0x11b2   :  { %v1282_v39 = vpack.c.bf16 %v1210_v33, %v1210_v33 }
0x11b4   :  { %1324 = vrot.lane.b32.xlu0 %v1282_v39, %s1594_s5 }
0x11b5   :  { %v1266_v49 = vpop.permute.xlu1 %1265 }
0x11b6   :  { %v1268_v58 = vmul.f32 %v1266_v49, %v1263_v38 }
0x11b8   :  { %v1270_v41 = vadd.f32 %v1269_v40, %v1268_v58 }
0x11ba   :  { %1278 = vrot.lane.b32.xlu1 %v1270_v41, %s1594_s5  ;;  %v1287_v15 = vpack.c.bf16 %v1270_v41, %v1270_v41 }
0x11bc   :  { %469 = vrot.lane.b32.xlu0 %v1817_v42, %s1594_s5  ;;  %1293 = vrot.lane.b32.xlu2 %v1287_v15, %s1594_s5  ;;  %v1484_v42 = vld [vmem:[%s2107_s10] sm:$0xff] }
0x11bd   :  { %v337_v25 = vpop.permute.xlu1 %336  ;;  %1317 = vmatpush.bf16.msrb.mxu0 %v1484_v42 }
0x11be   :  { %339 = vst.msk [vmem:[%s2106_s12] sm:$0xff] %vm77_vm0, %v337_v25 }
0x11c4   :  { %609 = vrot.lane.b32.xlu0 %v1853_v60, %s1594_s5  ;;  %341 = vrot.lane.b32.xlu2 %v1797_v44, %s1594_s5 }
0x11c5   :  { %v476_v45 = vpop.permute.xlu1 %475 }
0x11c6   :  { %1420 = vst.msk [vmem:[%s2108_s13 + $0x30] sm:$0xff] %vm77_vm0, %v476_v45 }
0x11cc   :  { %871 = vrot.lane.b32.xlu0 %v1903_v11, %s1594_s5  ;;  %603 = vrot.lane.b32.xlu2 %v1847_v54, %s1594_s5  ;;  %v1482_v11 = vld [vmem:[%s2109_s9] sm:$0xff] }
0x11cd   :  { %v738_v44 = vpop.permute.xlu1 %737 }
0x11ce   :  { %1431 = vst.msk [vmem:[%s2106_s12 + $0x18] sm:$0xff] %vm77_vm0, %v738_v44 }
0x11d4   :  { %1011 = vrot.lane.b32.xlu0 %v1931_v21, %s1594_s5  ;;  %743 = vrot.lane.b32.xlu2 %v1879_v1, %s1594_s5  ;;  %v1483_v1 = vld [vmem:[%s2109_s9 + $0x8] sm:$0xff] }
0x11d5   :  { %v878_v60 = vpop.permute.xlu1 %877  ;;  %1347 = vmatpush.bf16.msrb.mxu1 %v1483_v1 }
0x11d6   :  { %1438 = vst.msk [vmem:[%s2108_s13 + $0x18] sm:$0xff] %vm77_vm0, %v878_v60 }
0x11d9   :  { %1348 = vmatpush.bf16.msrb.mxu1 %v1482_v11 }
0x11dc   :  { %1272 = vrot.lane.b32.xlu0 %v1210_v33, %s1594_s5  ;;  %1005 = vrot.lane.b32.xlu2 %v1925_v14, %s1594_s5 }
0x11dd   :  { %v1140_v54 = vpop.permute.xlu1 %1139 }
0x11de   :  { %1449 = vst.msk [vmem:[%s2106_s12 + $0x30] sm:$0xff] %vm77_vm0, %v1140_v54 }
0x11e4   :  { %1145 = vrot.lane.b32.xlu2 %v1963_v27, %s1594_s5 }
0x1216   :  { %v1294_v14 = vpop.permute.xlu2 %1293 }
0x1217   :  { %1464 = vmatmul.msk.bf16.vlgmr.msrb.gmra.mxu0 %vm77_vm0, %v1294_v14 }
0x121e   :  { %v342_v21 = vpop.permute.xlu2 %341 }
0x121f   :  { %1414 = vst.msk [vmem:[%s2108_s13 + $0x38] sm:$0xff] %vm77_vm0, %v342_v21 }
0x1226   :  { %v1325_v27 = vpop.permute.xlu0 %1324  ;;  %v604_v46 = vpop.permute.xlu2 %603 }
0x1227   :  { %1425 = vst.msk [vmem:[%s2106_s12 + $0x10] sm:$0xff] %vm77_vm0, %v604_v46  ;;  %1473 = vmatmul.msk.bf16.vlgmr.msrb.gmra.mxu1 %vm77_vm0, %v1325_v27 }
0x122c   :  { %v1279_v47 = vpop.permute.xlu1 %1278 }
0x122d   :  { %1281 = vst.msk [vmem:[%s2108_s13] sm:$0xff] %vm77_vm0, %v1279_v47 }
0x122e   :  { %v470_v48 = vpop.permute.xlu0 %469  ;;  %v744_v50 = vpop.permute.xlu2 %743 }
0x122f   :  { %1419 = vst.msk [vmem:[%s2106_s12 + $0x8] sm:$0xff] %vm77_vm0, %v470_v48 }
0x1230   :  { %1432 = vst.msk [vmem:[%s2108_s13 + $0x20] sm:$0xff] %vm77_vm0, %v744_v50 }
0x1236   :  { %v610_v51 = vpop.permute.xlu0 %609  ;;  %v1006_v52 = vpop.permute.xlu2 %1005 }
0x1237   :  { %1426 = vst.msk [vmem:[%s2108_s13 + $0x28] sm:$0xff] %vm77_vm0, %v610_v51 }
0x1238   :  { %1443 = vst.msk [vmem:[%s2106_s12 + $0x28] sm:$0xff] %vm77_vm0, %v1006_v52 }
0x123e   :  { %v872_v53 = vpop.permute.xlu0 %871  ;;  %v1146_v55 = vpop.permute.xlu2 %1145 }
0x123f   :  { %1437 = vst.msk [vmem:[%s2106_s12 + $0x20] sm:$0xff] %vm77_vm0, %v872_v53 }
0x1240   :  { %1450 = vst.msk [vmem:[%s2108_s13 + $0x8] sm:$0xff] %vm77_vm0, %v1146_v55 }
0x1246   :  { %v1012_v26 = vpop.permute.xlu0 %1011 }
0x1247   :  { %1444 = vst.msk [vmem:[%s2108_s13 + $0x10] sm:$0xff] %vm77_vm0, %v1012_v26 }
0x124e   :  { %v1273_v56 = vpop.permute.xlu0 %1272 }
0x124f   :  { %1455 = vst.msk [vmem:[%s2106_s12 + $0x38] sm:$0xff] %vm77_vm0, %v1273_v56 }
0x1294   :  { %v1319_v57 = vpop.f32.mrf.mxu0 }
0x129c   :  { %v1321_v59 = vpop.f32.mrf.mxu0 }
0x12a4   :  { %v1350_v31 = vpop.f32.mrf.mxu1 }
0x12a5   :  { %v1351_v62 = vadd.f32 %v1350_v31, %v1319_v57 }
0x12a7   :  { %v1358_v63 = vadd.f32 %v1493_v61, %v1351_v62 }
0x12a9   :  { %1359 = vst.msk [vmem:[%s2111_s14] sm:$0xff] %vm77_vm0, %v1358_v63 }
0x12ac   :  { %v1352_v0 = vpop.f32.mrf.mxu1 }

// kernel: seq2seq_forward.3
= control target key start
LH: loop header
LB: loop body
LE: loop exit
PB: predicated region body
PF: predicated region fallthrough
CT: control target
= control target key end

     0   :  { %vm61_vm0 = vcmask 261120   ;;  %s1067_s22 = smov 32   ;;  %vm194_vm1 = vcmask 523264   ;;  %s1068_s24 = smov 64   ;;  %s1501_s3 = inlined_call_operand.vmem [shape: bf16[32,32], index: 3, kind: input, shape index: {}]   ;;  %s1502_s2 = inlined_call_operand.vmem [shape: f32[8,32], index: 2, kind: input, shape index: {}]   ;;  %s1503_s4 = inlined_call_operand.vmem [shape: f32[1,32], index: 4, kind: input, shape index: {}]   ;;  %s1504_s5 = inlined_call_operand.vmem [shape: bf16[32,192], index: 5, kind: input, shape index: {}]   ;;  %s1505_s0 = inlined_call_operand.vmem [shape: f32[56,32], index: 0, kind: input, shape index: {}]   ;;  %s1506_s6 = inlined_call_operand.vmem [shape: bf16[64,192], index: 6, kind: input, shape index: {}]   ;;  %s1507_s7 = inlined_call_operand.vmem [shape: f32[1,192], index: 7, kind: input, shape index: {}]   ;;  %s1508_s1 = inlined_call_operand.vmem [shape: f32[8,32], index: 1, kind: input, shape index: {}]   ;;  %s1509_s8 = inlined_call_operand.vmem [shape: f32[1,192], index: 8, kind: input, shape index: {}]   ;;  %s1510_s9 = inlined_call_operand.vmem [shape: bf16[64,64], index: 9, kind: input, shape index: {}]   ;;  %s1511_s10 = inlined_call_operand.vmem [shape: f32[1,64], index: 10, kind: input, shape index: {}]   ;;  %s1512_s11 = inlined_call_operand.vmem [shape: f32[64,64], index: 11, kind: output, shape index: {}]  }
   0x1   :  { %v999_v0 = vld [vmem:[%s1501_s3 + $0x8] sm:$0xff]  ;;  %v998_v1 = vld [vmem:[%s1501_s3] sm:$0xff]  ;;  %v1002_v4 = vld [vmem:[%s1504_s5 + $0x14] sm:$0xf] }
   0x2   :  { %71 = vmatpush.bf16.msra.mxu0 %v999_v0  ;;  %v39_v2 = vld [vmem:[%s1502_s2] sm:$0xff]  ;;  %v913_v5 = vld [vmem:[%s1504_s5 + $0x18] sm:$0xf0]  ;;  %v905_v8 = vld [vmem:[%s1504_s5 + $0x8] sm:$0xf0] }
   0x3   :  { %v40_v3 = vpack.c.bf16 %v39_v2, %v39_v2  ;;  %v1000_v6 = vld [vmem:[%s1504_s5 + $0x4] sm:$0xf]  ;;  %v916_v7 = vor.u32 %v1002_v4, %v913_v5  ;;  %v85_v10 = vld [vmem:[%s1505_s0 + $0x8] sm:$0xff]  ;;  %v911_v11 = vld [vmem:[%s1504_s5 + $0x10] sm:$0xf] }
   0x4   :  { %v84_v9 = vld [vmem:[%s1505_s0] sm:$0xff]  ;;  %v1003_v12 = vld [vmem:[%s1504_s5 + $0x14] sm:$0xf0]  ;;  %v908_v14 = vor.u32 %v1000_v6, %v905_v8  ;;  %v1001_v16 = vld [vmem:[%s1504_s5 + $0x4] sm:$0xf0] }
   0x5   :  { %v903_v13 = vld [vmem:[%s1504_s5] sm:$0xf]  ;;  %171 = vmatpush.bf16.msra.mxu2 %v916_v7  ;;  %v912_v15 = vor.u32 %v1003_v12, %v911_v11  ;;  %v951_v17 = vld [vmem:[%s1506_s6 + $0x30] sm:$0xf]  ;;  %v1011_v18 = vld [vmem:[%s1506_s6 + $0x34] sm:$0xf0]  ;;  %v91_v23 = vpack.c.bf16 %v85_v10, %v84_v9 }
   0x6   :  { %72 = vmatpush.bf16.msra.mxu0 %v998_v1  ;;  %v1176_v19 = vor.u32 %v1011_v18, %v951_v17  ;;  %v904_v20 = vor.u32 %v1001_v16, %v903_v13  ;;  %v943_v21 = vld [vmem:[%s1506_s6 + $0x20] sm:$0xf]  ;;  %v1009_v22 = vld [vmem:[%s1506_s6 + $0x24] sm:$0xf0]  ;;  %v935_v25 = vld [vmem:[%s1506_s6 + $0x10] sm:$0xf] }
   0x7   :  { %143 = vmatpush.bf16.msra.mxu1 %v912_v15  ;;  %v1186_v24 = vor.u32 %v1009_v22, %v943_v21  ;;  %v1007_v26 = vld [vmem:[%s1506_s6 + $0x14] sm:$0xf0]  ;;  %v1010_v27 = vld [vmem:[%s1506_s6 + $0x34] sm:$0xf]  ;;  %v953_v29 = vld [vmem:[%s1506_s6 + $0x38] sm:$0xf0] }
   0x8   :  { %353 = vmatpush.bf16.msra.mxu3 %v1176_v19  ;;  %v1201_v28 = vor.u32 %v1007_v26, %v935_v25  ;;  %v1206_v30 = vor.u32 %v1010_v27, %v953_v29  ;;  %v86_v31 = vld [vmem:[%s1505_s0 + $0x10] sm:$0xff]  ;;  %v87_v32 = vld [vmem:[%s1505_s0 + $0x18] sm:$0xff]  ;;  %v1023_v33 = vld [vmem:[%s1503_s4] ss:$0 sm:$0xff] }
   0x9   :  { %900 = vmatmul.msk.bf16.vlgmr.msra.gmra.mxu0 %vm61_vm0, %v40_v3  ;;  %172 = vmatpush.bf16.msra.mxu2 %v908_v14  ;;  %v92_v34 = vpack.c.bf16 %v87_v32, %v86_v31  ;;  %v927_v37 = vld [vmem:[%s1506_s6] sm:$0xf]  ;;  %v1005_v38 = vld [vmem:[%s1506_s6 + $0x4] sm:$0xf0]  ;;  %v1008_v39 = vld [vmem:[%s1506_s6 + $0x24] sm:$0xf] }
   0xa   :  { %366 = vmatpush.bf16.msrb.mxu0 %v1206_v30  ;;  %v1232_v40 = vor.u32 %v1005_v38, %v927_v37  ;;  %v945_v41 = vld [vmem:[%s1506_s6 + $0x28] sm:$0xf0]  ;;  %v1006_v42 = vld [vmem:[%s1506_s6 + $0x14] sm:$0xf]  ;;  %v937_v43 = vld [vmem:[%s1506_s6 + $0x18] sm:$0xf0] }
   0xb   :  { %144 = vmatpush.bf16.msra.mxu1 %v904_v20  ;;  %v1243_v44 = vor.u32 %v1008_v39, %v945_v41  ;;  %v1248_v46 = vor.u32 %v1006_v42, %v937_v43  ;;  %v88_v47 = vld [vmem:[%s1505_s0 + $0x20] sm:$0xff]  ;;  %v89_v48 = vld [vmem:[%s1505_s0 + $0x28] sm:$0xff]  ;;  %v90_v50 = vld [vmem:[%s1505_s0 + $0x30] sm:$0xff] }
   0xc   :  { %921 = vmatmul.msk.bf16.vlgmr.msra.gmra.mxu2 %vm61_vm0, %v91_v23  ;;  %354 = vmatpush.bf16.msra.mxu3 %v1186_v24  ;;  %v93_v49 = vpack.c.bf16 %v89_v48, %v88_v47  ;;  %v94_v51 = vpack.c.bf16 %v90_v50, %v90_v50  ;;  %v1004_v52 = vld [vmem:[%s1506_s6 + $0x4] sm:$0xf]  ;;  %v929_v53 = vld [vmem:[%s1506_s6 + $0x8] sm:$0xf0]  ;;  %v99_v55 = vld [vmem:[%s1507_s7] sm:$0x3] }
   0xd   :  { %275 = vmatpush.bf16.msrb.mxu2 %v1176_v19  ;;  %v1279_v54 = vor.u32 %v1004_v52, %v929_v53  ;;  %v101_v56 = vperm.slane %v99_v55, 0  ;;  %v102_v58 = vperm.slane %v99_v55, 1  ;;  %v78_v60 = vld [vmem:[%s1508_s1] sm:$0xff] }
   0xe   :  { %917 = vmatmul.msk.bf16.vlgmr.msra.gmra.mxu1 %vm61_vm0, %v91_v23  ;;  %367 = vmatpush.bf16.msrb.mxu0 %v1243_v44 }
   0xf   :  { %288 = vmatpush.bf16.msrb.mxu1 %v1206_v30 }
  0x10   :  { %355 = vmatpush.bf16.msra.mxu3 %v1201_v28 }
  0x11   :  { %276 = vmatpush.bf16.msrb.mxu2 %v1186_v24 }
  0x12   :  { %368 = vmatpush.bf16.msrb.mxu0 %v1248_v46 }
  0x13   :  { %289 = vmatpush.bf16.msrb.mxu1 %v1243_v44 }
  0x14   :  { %356 = vmatpush.bf16.msra.mxu3 %v1232_v40 }
  0x15   :  { %277 = vmatpush.bf16.msrb.mxu2 %v1201_v28 }
  0x16   :  { %369 = vmatpush.bf16.msrb.mxu0 %v1279_v54 }
  0x17   :  { %290 = vmatpush.bf16.msrb.mxu1 %v1248_v46 }
  0x18   :  { %428 = vmatpush.bf16.msrb.mxu3 %v1176_v19 }
  0x19   :  { %278 = vmatpush.bf16.msrb.mxu2 %v1232_v40 }
  0x1a   :  { %441 = vmatpush.bf16.msra.mxu0 %v1206_v30 }
  0x1b   :  { %291 = vmatpush.bf16.msrb.mxu1 %v1279_v54 }
  0x1c   :  { %922 = vmatmul.msk.bf16.gmra.mxu2 %vm61_vm0, %v92_v34  ;;  %429 = vmatpush.bf16.msrb.mxu3 %v1186_v24 }
  0x1d   :  { %591 = vmatpush.bf16.msra.mxu2 %v1206_v30 }
  0x1e   :  { %918 = vmatmul.msk.bf16.gmra.mxu1 %vm61_vm0, %v92_v34  ;;  %442 = vmatpush.bf16.msra.mxu0 %v1243_v44 }
  0x1f   :  { %578 = vmatpush.bf16.msra.mxu1 %v1176_v19 }
  0x20   :  { %430 = vmatpush.bf16.msrb.mxu3 %v1201_v28 }
  0x21   :  { %592 = vmatpush.bf16.msra.mxu2 %v1243_v44 }
  0x22   :  { %443 = vmatpush.bf16.msra.mxu0 %v1248_v46 }
  0x23   :  { %579 = vmatpush.bf16.msra.mxu1 %v1186_v24 }
  0x24   :  { %431 = vmatpush.bf16.msrb.mxu3 %v1232_v40 }
  0x25   :  { %593 = vmatpush.bf16.msra.mxu2 %v1248_v46 }
  0x26   :  { %444 = vmatpush.bf16.msra.mxu0 %v1279_v54 }
  0x27   :  { %580 = vmatpush.bf16.msra.mxu1 %v1201_v28 }
  0x29   :  { %594 = vmatpush.bf16.msra.mxu2 %v1279_v54 }
  0x2b   :  { %581 = vmatpush.bf16.msra.mxu1 %v1232_v40 }
  0x2c   :  { %923 = vmatmul.msk.bf16.gmra.mxu2 %vm61_vm0, %v93_v49 }
  0x2e   :  { %919 = vmatmul.msk.bf16.gmra.mxu1 %vm61_vm0, %v93_v49 }
  0x3c   :  { %924 = vmatmul.msk.bf16.gmra.mxu2 %vm61_vm0, %v94_v51 }
  0x3e   :  { %920 = vmatmul.msk.bf16.gmra.mxu1 %vm61_vm0, %v94_v51 }
  0x86   :  { %v74_v35 = vpop.f32.mrf.mxu0 }
  0x87   :  { %v75_v36 = vadd.f32 %v1023_v33, %v74_v35  ;;  %v216_v33 = vld [vmem:[%s1509_s8] sm:$0x3] }
  0x88   :  { %v1332_v34 = vperm.slane %v216_v33, 0  ;;  %v1335_v50 = vperm.slane %v216_v33, 1 }
  0x89   :  { %80 = vrot.lane.b32.xlu0 %v75_v36, %s1067_s22 }
  0x8b   :  { %v146_v57 = vpop.f32.mrf.mxu1 }
  0x8c   :  { %v147_v59 = vadd.f32 %v146_v57, %v101_v56 }
  0x8e   :  { %v76_v45 = vpop.f32.mrf.mxu0 }
  0x8f   :  { %v174_v62 = vpop.f32.mrf.mxu2 }
  0x90   :  { %v175_v0 = vadd.f32 %v174_v62, %v102_v58 }
  0x92   :  { %195 = vst.msk [vmem:[#allocation2 + $0x8] sm:$0xff] %vm194_vm1, %v175_v0 }
  0x93   :  { %v148_v2 = vpop.f32.mrf.mxu1 }
  0x94   :  { %v1303_v3 = vadd.f32 %v148_v2, %v101_v56 }
  0x97   :  { %v176_v4 = vpop.f32.mrf.mxu2 }
  0x98   :  { %v177_v5 = vadd.f32 %v176_v4, %v102_v58 }
  0x9a   :  { %197 = vst.msk [vmem:[#allocation2 + $0x18] sm:$0xff] %vm194_vm1, %v177_v5 }
  0x9b   :  { %v151_v6 = vpop.f32.mrf.mxu1 }
  0x9c   :  { %v1310_v7 = vadd.f32 %v151_v6, %v101_v56 }
  0x9f   :  { %v179_v8 = vpop.f32.mrf.mxu2 }
  0xa0   :  { %v180_v9 = vadd.f32 %v179_v8, %v102_v58 }
  0xa2   :  { %199 = vst.msk [vmem:[#allocation2 + $0x28] sm:$0xff] %vm194_vm1, %v180_v9 }
  0xa3   :  { %v153_v10 = vpop.f32.mrf.mxu1 }
  0xa4   :  { %v1317_v11 = vadd.f32 %v153_v10, %v101_v56 }
  0xa7   :  { %v181_v12 = vpop.f32.mrf.mxu2 }
  0xa8   :  { %v182_v13 = vadd.f32 %v181_v12, %v102_v58 }
  0xaa   :  { %201 = vst.msk [vmem:[#allocation2 + $0x38] sm:$0xff] %vm194_vm1, %v182_v13 }
  0xab   :  { %v156_v14 = vpop.f32.mrf.mxu1 }
  0xac   :  { %v1320_v15 = vadd.f32 %v156_v14, %v101_v56 }
  0xaf   :  { %v184_v16 = vpop.f32.mrf.mxu2 }
  0xb0   :  { %v185_v17 = vadd.f32 %v184_v16, %v102_v58 }
  0xb2   :  { %203 = vst.msk [vmem:[#allocation2 + $0x48] sm:$0xff] %vm194_vm1, %v185_v17 }
  0xb3   :  { %v158_v18 = vpop.f32.mrf.mxu1 }
  0xb4   :  { %v1323_v20 = vadd.f32 %v158_v18, %v101_v56 }
  0xb7   :  { %v186_v21 = vpop.f32.mrf.mxu2 }
  0xb8   :  { %v187_v22 = vadd.f32 %v186_v21, %v102_v58 }
  0xba   :  { %205 = vst.msk [vmem:[#allocation2 + $0x58] sm:$0xff] %vm194_vm1, %v187_v22 }
  0xbb   :  { %v161_v23 = vpop.f32.mrf.mxu1 }
  0xbc   :  { %v1326_v25 = vadd.f32 %v161_v23, %v101_v56 }
  0xbf   :  { %v189_v26 = vpop.f32.mrf.mxu2 }
  0xc0   :  { %v190_v27 = vadd.f32 %v189_v26, %v102_v58 }
  0xc2   :  { %207 = vst.msk [vmem:[#allocation2 + $0x68] sm:$0xff] %vm194_vm1, %v190_v27 }
  0xc3   :  { %v163_v29 = vpop.f32.mrf.mxu1 }
  0xc7   :  { %v191_v31 = vpop.f32.mrf.mxu2 }
  0xfb   :  { %v81_v61 = vpop.permute.xlu0 %80 }
  0xfc   :  { %v83_v63 = vsel %vm61_vm0, %v78_v60, %v81_v61  ;;  %v221_v60 = vld [vmem:[#allocation2 + $0x8] sm:$0xff] }
  0xfd   :  { %327 = vrot.lane.b32.xlu1 %v83_v63, %s1068_s24  ;;  %v222_v1 = vpack.c.bf16 %v83_v63, %v83_v63 }
  0xff   :  { %957 = vmatmul.msk.bf16.vlgmr.msrb.gmra.mxu2 %vm194_vm1, %v222_v1  ;;  %958 = vmatmul.msk.bf16.vlgmr.msrb.gmra.mxu1 %vm194_vm1, %v222_v1 }
 0x100   :  { %728 = vmatpush.bf16.msrb.mxu1 %v1176_v19  ;;  %741 = vmatpush.bf16.msrb.mxu2 %v1206_v30 }
 0x104   :  { %729 = vmatpush.bf16.msrb.mxu1 %v1186_v24  ;;  %742 = vmatpush.bf16.msrb.mxu2 %v1243_v44 }
 0x108   :  { %730 = vmatpush.bf16.msrb.mxu1 %v1201_v28  ;;  %743 = vmatpush.bf16.msrb.mxu2 %v1248_v46 }
 0x10c   :  { %731 = vmatpush.bf16.msrb.mxu1 %v1232_v40  ;;  %744 = vmatpush.bf16.msrb.mxu2 %v1279_v54 }
 0x16f   :  { %v328_v0 = vpop.permute.xlu1 %327 }
 0x17c   :  { %v293_v32 = vpop.f32.mrf.mxu1 }
 0x17d   :  { %v294_v56 = vadd.f32 %v293_v32, %v1335_v50 }
 0x182   :  { %v280_v35 = vpop.f32.mrf.mxu2 }
 0x183   :  { %v281_v36 = vadd.f32 %v280_v35, %v1332_v34 }
 0x184   :  { %v295_v37 = vpop.f32.mrf.mxu1 }
 0x185   :  { %v297_v38 = vadd.f32 %v281_v36, %v147_v59 }
 0x187   :  { %v959_v39 = vmul.f32 -1.442695, %v297_v38  ;;  %v341_v38 = vld [vmem:[#allocation2 + $0x18] sm:$0xff] }
 0x189   :  { %1025 = vpow2.f32 %v959_v39 }
 0x18a   :  { %v282_v41 = vpop.f32.mrf.mxu2 }
 0x18f   :  { %v1026_v42 = vpop.eup %1025 }
 0x190   :  { %v301_v43 = vadd.f32 1.0, %v1026_v42 }
 0x192   :  { %1027 = vrcp.f32 %v301_v43  ;;  %v313_v49 = vand.u32 2147483648, %v301_v43  ;;  %v311_v52 = vand.u32 2147483647, %v301_v43  ;;  %vm307_vm3 = vweird.f32 %v301_v43 }
 0x194   :  { %v314_v55 = vor.u32 1.1754944e-38, %v313_v49  ;;  %vm312_vm5 = vcmp.eq.f32.partialorder %v311_v52, 8.507059e+37 }
 0x198   :  { %v1028_v45 = vpop.eup %1027 }
 0x199   :  { %v303_v47 = vmul.f32 %v1028_v45, %v301_v43  ;;  %vm308_vm2 = vweird.f32 %v1028_v45 }
 0x19a   :  { %vm309_vm4 = vmor %vm307_vm3, %vm308_vm2 }
 0x19b   :  { %v304_v48 = vsub.f32 1.0, %v303_v47 }
 0x19d   :  { %v305_v51 = vmul.f32 %v1028_v45, %v304_v48 }
 0x19f   :  { %v306_v53 = vadd.f32 %v1028_v45, %v305_v51 }
 0x1a1   :  { %v310_v57 = vsel %vm309_vm4, %v1028_v45, %v306_v53 }
 0x1a2   :  { %v315_v58 = vsel %vm312_vm5, %v314_v55, %v310_v57 }
 0x1a3   :  { %v317_v59 = vmul.f32 %v315_v58, %v294_v56  ;;  %v320_v63 = vsub.f32 1.0, %v315_v58  ;;  %v330_v2 = vmul.f32 %v328_v0, %v315_v58 }
 0x1a5   :  { %v318_v61 = vadd.f32 %v317_v59, %v221_v60 }
 0x1a7   :  { %1029 = vtanh.f32 %v318_v61 }
 0x1ad   :  { %v1030_v62 = vpop.eup %1029 }
 0x1ae   :  { %322 = vrot.lane.b32.xlu0 %v1030_v62, %s1068_s24 }
 0x220   :  { %v323_v1 = vpop.permute.xlu0 %322 }
 0x221   :  { %v325_v4 = vmul.f32 %v323_v1, %v320_v63  ;;  %v416_v1 = vld [vmem:[#allocation2 + $0x28] sm:$0xff] }
 0x223   :  { %v1339_v5 = vadd.f32 %v330_v2, %v325_v4 }
 0x225   :  { %v342_v6 = vpack.c.bf16 %v1339_v5, %v1339_v5 }
 0x227   :  { %344 = vrot.lane.b32.xlu1 %v342_v6, %s1068_s24 }
 0x299   :  { %v345_v8 = vpop.permute.xlu1 %344 }
 0x29a   :  { %960 = vmatmul.msk.bf16.vlgmr.msra.gmra.mxu3 %vm194_vm1, %v345_v8  ;;  %961 = vmatmul.msk.bf16.vlgmr.msrb.gmra.mxu0 %vm194_vm1, %v345_v8 }
 0x29b   :  { %503 = vmatpush.bf16.msra.mxu3 %v1176_v19  ;;  %516 = vmatpush.bf16.msrb.mxu0 %v1206_v30 }
 0x29f   :  { %504 = vmatpush.bf16.msra.mxu3 %v1186_v24  ;;  %517 = vmatpush.bf16.msrb.mxu0 %v1243_v44 }
 0x2a3   :  { %505 = vmatpush.bf16.msra.mxu3 %v1201_v28  ;;  %518 = vmatpush.bf16.msrb.mxu0 %v1248_v46 }
 0x2a7   :  { %506 = vmatpush.bf16.msra.mxu3 %v1232_v40  ;;  %519 = vmatpush.bf16.msrb.mxu0 %v1279_v54 }
 0x317   :  { %v371_v9 = vpop.f32.mrf.mxu0 }
 0x318   :  { %v372_v35 = vadd.f32 %v371_v9, %v1335_v50 }
 0x31d   :  { %v358_v10 = vpop.f32.mrf.mxu3 }
 0x31e   :  { %v359_v12 = vadd.f32 %v358_v10, %v1332_v34 }
 0x31f   :  { %v373_v13 = vpop.f32.mrf.mxu0 }
 0x320   :  { %v375_v14 = vadd.f32 %v359_v12, %v1303_v3 }
 0x322   :  { %v962_v16 = vmul.f32 -1.442695, %v375_v14 }
 0x324   :  { %1031 = vpow2.f32 %v962_v16 }
 0x325   :  { %v360_v17 = vpop.f32.mrf.mxu3 }
 0x32a   :  { %v1032_v18 = vpop.eup %1031 }
 0x32b   :  { %v379_v21 = vadd.f32 1.0, %v1032_v18 }
 0x32d   :  { %1033 = vrcp.f32 %v379_v21  ;;  %v391_v27 = vand.u32 2147483648, %v379_v21  ;;  %v389_v31 = vand.u32 2147483647, %v379_v21  ;;  %vm385_vm7 = vweird.f32 %v379_v21 }
 0x32f   :  { %v392_v33 = vor.u32 1.1754944e-38, %v391_v27  ;;  %vm390_vm9 = vcmp.eq.f32.partialorder %v389_v31, 8.507059e+37 }
 0x333   :  { %v1034_v22 = vpop.eup %1033 }
 0x334   :  { %v381_v23 = vmul.f32 %v1034_v22, %v379_v21  ;;  %vm386_vm6 = vweird.f32 %v1034_v22 }
 0x335   :  { %vm387_vm8 = vmor %vm385_vm7, %vm386_vm6 }
 0x336   :  { %v382_v26 = vsub.f32 1.0, %v381_v23 }
 0x338   :  { %v383_v29 = vmul.f32 %v1034_v22, %v382_v26 }
 0x33a   :  { %v384_v32 = vadd.f32 %v1034_v22, %v383_v29 }
 0x33c   :  { %v388_v3 = vsel %vm387_vm8, %v1034_v22, %v384_v32 }
 0x33d   :  { %v393_v36 = vsel %vm390_vm9, %v392_v33, %v388_v3 }
 0x33e   :  { %v395_v37 = vmul.f32 %v393_v36, %v372_v35  ;;  %v398_v42 = vsub.f32 1.0, %v393_v36  ;;  %v404_v45 = vmul.f32 %v393_v36, %v1339_v5 }
 0x340   :  { %v396_v39 = vadd.f32 %v395_v37, %v341_v38 }
 0x342   :  { %1035 = vtanh.f32 %v396_v39 }
 0x348   :  { %v1036_v41 = vpop.eup %1035 }
 0x349   :  { %400 = vrot.lane.b32.xlu2 %v1036_v41, %s1068_s24 }
 0x3a3   :  { %v401_v43 = vpop.permute.xlu2 %400 }
 0x3a4   :  { %v403_v47 = vmul.f32 %v401_v43, %v398_v42  ;;  %v491_v43 = vld [vmem:[#allocation2 + $0x38] sm:$0xff] }
 0x3a6   :  { %v1359_v48 = vadd.f32 %v404_v45, %v403_v47 }
 0x3a8   :  { %v417_v49 = vpack.c.bf16 %v1359_v48, %v1359_v48 }
 0x3aa   :  { %419 = vrot.lane.b32.xlu2 %v417_v49, %s1068_s24 }
 0x404   :  { %v420_v51 = vpop.permute.xlu2 %419 }
 0x405   :  { %963 = vmatmul.msk.bf16.vlgmr.msrb.gmra.mxu3 %vm194_vm1, %v420_v51  ;;  %964 = vmatmul.msk.bf16.vlgmr.msra.gmra.mxu0 %vm194_vm1, %v420_v51 }
 0x406   :  { %653 = vmatpush.bf16.msrb.mxu3 %v1176_v19  ;;  %666 = vmatpush.bf16.msra.mxu0 %v1206_v30 }
 0x40a   :  { %654 = vmatpush.bf16.msrb.mxu3 %v1186_v24  ;;  %667 = vmatpush.bf16.msra.mxu0 %v1243_v44 }
 0x40e   :  { %655 = vmatpush.bf16.msrb.mxu3 %v1201_v28  ;;  %668 = vmatpush.bf16.msra.mxu0 %v1248_v46 }
 0x412   :  { %656 = vmatpush.bf16.msrb.mxu3 %v1232_v40  ;;  %669 = vmatpush.bf16.msra.mxu0 %v1279_v54 }
 0x482   :  { %v446_v52 = vpop.f32.mrf.mxu0 }
 0x483   :  { %v447_v62 = vadd.f32 %v446_v52, %v1335_v50 }
 0x488   :  { %v433_v53 = vpop.f32.mrf.mxu3 }
 0x489   :  { %v434_v55 = vadd.f32 %v433_v53, %v1332_v34 }
 0x48a   :  { %v448_v56 = vpop.f32.mrf.mxu0 }
 0x48b   :  { %v450_v19 = vadd.f32 %v434_v55, %v1310_v7 }
 0x48d   :  { %v965_v30 = vmul.f32 -1.442695, %v450_v19 }
 0x48f   :  { %1037 = vpow2.f32 %v965_v30 }
 0x490   :  { %v435_v24 = vpop.f32.mrf.mxu3 }
 0x495   :  { %v1038_v57 = vpop.eup %1037 }
 0x496   :  { %v454_v44 = vadd.f32 1.0, %v1038_v57 }
 0x498   :  { %1039 = vrcp.f32 %v454_v44  ;;  %v466_v59 = vand.u32 2147483648, %v454_v44  ;;  %v464_v54 = vand.u32 2147483647, %v454_v44  ;;  %vm460_vm11 = vweird.f32 %v454_v44 }
 0x49a   :  { %v467_v61 = vor.u32 1.1754944e-38, %v466_v59  ;;  %vm465_vm13 = vcmp.eq.f32.partialorder %v464_v54, 8.507059e+37 }
 0x49e   :  { %v1040_v28 = vpop.eup %1039 }
 0x49f   :  { %v456_v58 = vmul.f32 %v1040_v28, %v454_v44  ;;  %vm461_vm10 = vweird.f32 %v1040_v28 }
 0x4a0   :  { %vm462_vm12 = vmor %vm460_vm11, %vm461_vm10 }
 0x4a1   :  { %v457_v46 = vsub.f32 1.0, %v456_v58 }
 0x4a3   :  { %v458_v40 = vmul.f32 %v1040_v28, %v457_v46 }
 0x4a5   :  { %v459_v60 = vadd.f32 %v1040_v28, %v458_v40 }
 0x4a7   :  { %v463_v7 = vsel %vm462_vm12, %v1040_v28, %v459_v60 }
 0x4a8   :  { %v468_v63 = vsel %vm465_vm13, %v467_v61, %v463_v7 }
 0x4a9   :  { %v470_v0 = vmul.f32 %v468_v63, %v447_v62  ;;  %v473_v6 = vsub.f32 1.0, %v468_v63  ;;  %v479_v9 = vmul.f32 %v468_v63, %v1359_v48 }
 0x4ab   :  { %v471_v2 = vadd.f32 %v470_v0, %v416_v1 }
 0x4ad   :  { %1041 = vtanh.f32 %v471_v2 }
 0x4b3   :  { %v1042_v4 = vpop.eup %1041 }
 0x4b4   :  { %475 = vrot.lane.b32.xlu0 %v1042_v4, %s1068_s24 }
 0x526   :  { %v476_v8 = vpop.permute.xlu0 %475 }
 0x527   :  { %v478_v10 = vmul.f32 %v476_v8, %v473_v6  ;;  %v566_v8 = vld [vmem:[#allocation2 + $0x48] sm:$0xff] }
 0x529   :  { %v1379_v12 = vadd.f32 %v479_v9, %v478_v10 }
 0x52b   :  { %v492_v13 = vpack.c.bf16 %v1379_v12, %v1379_v12 }
 0x52d   :  { %494 = vrot.lane.b32.xlu1 %v492_v13, %s1068_s24 }
 0x59f   :  { %v495_v14 = vpop.permute.xlu1 %494 }
 0x5a0   :  { %966 = vmatmul.msk.bf16.vlgmr.msra.gmra.mxu3 %vm194_vm1, %v495_v14  ;;  %967 = vmatmul.msk.bf16.vlgmr.msrb.gmra.mxu0 %vm194_vm1, %v495_v14 }
 0x61d   :  { %v521_v16 = vpop.f32.mrf.mxu0 }
 0x61e   :  { %v522_v39 = vadd.f32 %v521_v16, %v1335_v50 }
 0x623   :  { %v508_v17 = vpop.f32.mrf.mxu3 }
 0x624   :  { %v509_v18 = vadd.f32 %v508_v17, %v1332_v34 }
 0x625   :  { %v523_v21 = vpop.f32.mrf.mxu0 }
 0x626   :  { %v525_v22 = vadd.f32 %v509_v18, %v1317_v11 }
 0x628   :  { %v968_v23 = vmul.f32 -1.442695, %v525_v22 }
 0x62a   :  { %1043 = vpow2.f32 %v968_v23 }
 0x62b   :  { %v510_v26 = vpop.f32.mrf.mxu3 }
 0x630   :  { %v1044_v27 = vpop.eup %1043 }
 0x631   :  { %v529_v29 = vadd.f32 1.0, %v1044_v27 }
 0x633   :  { %1045 = vrcp.f32 %v529_v29  ;;  %v541_v35 = vand.u32 2147483648, %v529_v29  ;;  %v539_v36 = vand.u32 2147483647, %v529_v29  ;;  %vm535_vm15 = vweird.f32 %v529_v29 }
 0x635   :  { %v542_v38 = vor.u32 1.1754944e-38, %v541_v35  ;;  %vm540_vm2 = vcmp.eq.f32.partialorder %v539_v36, 8.507059e+37 }
 0x639   :  { %v1046_v31 = vpop.eup %1045 }
 0x63a   :  { %v531_v32 = vmul.f32 %v1046_v31, %v529_v29  ;;  %vm536_vm14 = vweird.f32 %v1046_v31 }
 0x63b   :  { %vm537_vm0 = vmor %vm535_vm15, %vm536_vm14 }
 0x63c   :  { %v532_v33 = vsub.f32 1.0, %v531_v32 }
 0x63e   :  { %v533_v3 = vmul.f32 %v1046_v31, %v532_v33 }
 0x640   :  { %v534_v37 = vadd.f32 %v1046_v31, %v533_v3 }
 0x642   :  { %v538_v11 = vsel %vm537_vm0, %v1046_v31, %v534_v37 }
 0x643   :  { %v543_v41 = vsel %vm540_vm2, %v542_v38, %v538_v11 }
 0x644   :  { %v545_v42 = vmul.f32 %v543_v41, %v522_v39  ;;  %v548_v49 = vsub.f32 1.0, %v543_v41  ;;  %v554_v52 = vmul.f32 %v543_v41, %v1379_v12 }
 0x646   :  { %v546_v45 = vadd.f32 %v545_v42, %v491_v43 }
 0x648   :  { %1047 = vtanh.f32 %v546_v45 }
 0x64e   :  { %v1048_v47 = vpop.eup %1047 }
 0x64f   :  { %550 = vrot.lane.b32.xlu2 %v1048_v47, %s1068_s24 }
 0x6a9   :  { %v551_v51 = vpop.permute.xlu2 %550 }
 0x6aa   :  { %v553_v53 = vmul.f32 %v551_v51, %v548_v49  ;;  %v641_v51 = vld [vmem:[#allocation2 + $0x58] sm:$0xff] }
 0x6ac   :  { %v1391_v55 = vadd.f32 %v554_v52, %v553_v53 }
 0x6ae   :  { %v567_v56 = vpack.c.bf16 %v1391_v55, %v1391_v55 }
 0x6b0   :  { %569 = vrot.lane.b32.xlu0 %v567_v56, %s1068_s24 }
 0x722   :  { %v570_v19 = vpop.permute.xlu0 %569 }
 0x723   :  { %969 = vmatmul.msk.bf16.vlgmr.msra.gmra.mxu1 %vm194_vm1, %v570_v19  ;;  %970 = vmatmul.msk.bf16.vlgmr.msra.gmra.mxu2 %vm194_vm1, %v570_v19 }
 0x7a0   :  { %v583_v30 = vpop.f32.mrf.mxu1 }
 0x7a1   :  { %v584_v24 = vadd.f32 %v583_v30, %v1332_v34 }
 0x7a3   :  { %v600_v57 = vadd.f32 %v584_v24, %v1320_v15 }
 0x7a5   :  { %v971_v44 = vmul.f32 -1.442695, %v600_v57 }
 0x7a6   :  { %v596_v28 = vpop.f32.mrf.mxu2 }
 0x7a7   :  { %1049 = vpow2.f32 %v971_v44  ;;  %v597_v15 = vadd.f32 %v596_v28, %v1335_v50 }
 0x7a8   :  { %v585_v58 = vpop.f32.mrf.mxu1 }
 0x7a9   :  { %v1015_v58 = vld [vmem:[%s1510_s9 + $0x18] sm:$0xff] }
 0x7aa   :  { %1016 = vmatpush.bf16.msra.mxu3 %v1015_v58  ;;  %851 = vmatpush.bf16.msrb.mxu0 %v1015_v58 }
 0x7ad   :  { %v1050_v46 = vpop.eup %1049 }
 0x7ae   :  { %v604_v59 = vadd.f32 1.0, %v1050_v46  ;;  %v598_v40 = vpop.f32.mrf.mxu2  ;;  %v1014_v46 = vld [vmem:[%s1510_s9 + $0x10] sm:$0xff] }
 0x7af   :  { %1017 = vmatpush.bf16.msra.mxu3 %v1014_v46  ;;  %852 = vmatpush.bf16.msrb.mxu0 %v1014_v46  ;;  %v1012_v40 = vld [vmem:[%s1510_s9] sm:$0xff] }
 0x7b0   :  { %1051 = vrcp.f32 %v604_v59  ;;  %v616_v62 = vand.u32 2147483648, %v604_v59  ;;  %v614_v63 = vand.u32 2147483647, %v604_v59  ;;  %vm610_vm4 = vweird.f32 %v604_v59 }
 0x7b2   :  { %v617_v1 = vor.u32 1.1754944e-38, %v616_v62  ;;  %vm615_vm6 = vcmp.eq.f32.partialorder %v614_v63, 8.507059e+37 }
 0x7b6   :  { %v1052_v54 = vpop.eup %1051 }
 0x7b7   :  { %v606_v60 = vmul.f32 %v1052_v54, %v604_v59  ;;  %vm611_vm3 = vweird.f32 %v1052_v54  ;;  %v1013_v59 = vld [vmem:[%s1510_s9 + $0x8] sm:$0xff] }
 0x7b8   :  { %vm612_vm5 = vmor %vm610_vm4, %vm611_vm3  ;;  %1018 = vmatpush.bf16.msra.mxu3 %v1013_v59  ;;  %853 = vmatpush.bf16.msrb.mxu0 %v1013_v59 }
 0x7b9   :  { %v607_v61 = vsub.f32 1.0, %v606_v60 }
 0x7bb   :  { %v608_v7 = vmul.f32 %v1052_v54, %v607_v61 }
 0x7bc   :  { %1019 = vmatpush.bf16.msra.mxu3 %v1012_v40  ;;  %854 = vmatpush.bf16.msrb.mxu0 %v1012_v40 }
 0x7bd   :  { %v609_v0 = vadd.f32 %v1052_v54, %v608_v7 }
 0x7bf   :  { %v613_v2 = vsel %vm612_vm5, %v1052_v54, %v609_v0 }
 0x7c0   :  { %v618_v4 = vsel %vm615_vm6, %v617_v1, %v613_v2 }
 0x7c1   :  { %v620_v6 = vmul.f32 %v618_v4, %v597_v15  ;;  %v623_v13 = vsub.f32 1.0, %v618_v4  ;;  %v629_v16 = vmul.f32 %v618_v4, %v1391_v55  ;;  %v1069_v4 = vmov 0.0  }
 0x7c2   :  { %787 = vst.msk [vmem:[%s1512_s11] sm:$0xff] %vm194_vm1, %v1069_v4 }
 0x7c3   :  { %v621_v9 = vadd.f32 %v620_v6, %v566_v8 }
 0x7c5   :  { %1053 = vtanh.f32 %v621_v9 }
 0x7cb   :  { %v1054_v10 = vpop.eup %1053 }
 0x7cc   :  { %625 = vrot.lane.b32.xlu1 %v1054_v10, %s1068_s24 }
 0x83e   :  { %v626_v14 = vpop.permute.xlu1 %625 }
 0x83f   :  { %v628_v17 = vmul.f32 %v626_v14, %v623_v13 }
 0x841   :  { %v630_v18 = vadd.f32 %v629_v16, %v628_v17 }
 0x843   :  { %v642_v21 = vpack.c.bf16 %v630_v18, %v630_v18 }
 0x845   :  { %644 = vrot.lane.b32.xlu2 %v642_v21, %s1068_s24 }
 0x89f   :  { %v645_v22 = vpop.permute.xlu2 %644 }
 0x8a0   :  { %972 = vmatmul.msk.bf16.vlgmr.msrb.gmra.mxu3 %vm194_vm1, %v645_v22  ;;  %973 = vmatmul.msk.bf16.vlgmr.msra.gmra.mxu0 %vm194_vm1, %v645_v22 }
 0x91d   :  { %v671_v23 = vpop.f32.mrf.mxu0 }
 0x91e   :  { %v672_v45 = vadd.f32 %v671_v23, %v1335_v50 }
 0x923   :  { %v658_v26 = vpop.f32.mrf.mxu3 }
 0x924   :  { %v659_v27 = vadd.f32 %v658_v26, %v1332_v34 }
 0x925   :  { %v673_v29 = vpop.f32.mrf.mxu0 }
 0x926   :  { %v675_v31 = vadd.f32 %v659_v27, %v1323_v20 }
 0x928   :  { %v974_v32 = vmul.f32 -1.442695, %v675_v31 }
 0x92a   :  { %1055 = vpow2.f32 %v974_v32 }
 0x92b   :  { %v660_v33 = vpop.f32.mrf.mxu3 }
 0x930   :  { %v1056_v35 = vpop.eup %1055 }
 0x931   :  { %v679_v3 = vadd.f32 1.0, %v1056_v35 }
 0x933   :  { %1057 = vrcp.f32 %v679_v3  ;;  %v691_v39 = vand.u32 2147483648, %v679_v3  ;;  %v689_v41 = vand.u32 2147483647, %v679_v3  ;;  %vm685_vm8 = vweird.f32 %v679_v3 }
 0x935   :  { %v692_v43 = vor.u32 1.1754944e-38, %v691_v39  ;;  %vm690_vm10 = vcmp.eq.f32.partialorder %v689_v41, 8.507059e+37 }
 0x939   :  { %v1058_v36 = vpop.eup %1057 }
 0x93a   :  { %v681_v37 = vmul.f32 %v1058_v36, %v679_v3  ;;  %vm686_vm7 = vweird.f32 %v1058_v36  ;;  %v716_v3 = vld [vmem:[#allocation2 + $0x68] sm:$0xff] }
 0x93b   :  { %vm687_vm9 = vmor %vm685_vm8, %vm686_vm7 }
 0x93c   :  { %v682_v38 = vsub.f32 1.0, %v681_v37 }
 0x93e   :  { %v683_v11 = vmul.f32 %v1058_v36, %v682_v38 }
 0x940   :  { %v684_v42 = vadd.f32 %v1058_v36, %v683_v11 }
 0x942   :  { %v688_v20 = vsel %vm687_vm9, %v1058_v36, %v684_v42 }
 0x943   :  { %v693_v47 = vsel %vm690_vm10, %v692_v43, %v688_v20 }
 0x944   :  { %v695_v49 = vmul.f32 %v693_v47, %v672_v45  ;;  %v698_v56 = vsub.f32 1.0, %v693_v47  ;;  %v704_v30 = vmul.f32 %v693_v47, %v630_v18 }
 0x946   :  { %v696_v52 = vadd.f32 %v695_v49, %v641_v51 }
 0x948   :  { %1059 = vtanh.f32 %v696_v52 }
 0x94e   :  { %v1060_v53 = vpop.eup %1059 }
 0x94f   :  { %700 = vrot.lane.b32.xlu0 %v1060_v53, %s1068_s24 }
 0x957   :  { %632 = vrot.lane.b32.xlu0 %v630_v18, %s1068_s24 }
 0x95f   :  { %407 = vrot.lane.b32.xlu0 %v1359_v48, %s1068_s24 }
 0x967   :  { %557 = vrot.lane.b32.xlu0 %v1391_v55, %s1068_s24 }
 0x9c1   :  { %v701_v19 = vpop.permute.xlu0 %700 }
 0x9c2   :  { %v703_v24 = vmul.f32 %v701_v19, %v698_v56 }
 0x9c4   :  { %v1415_v57 = vadd.f32 %v704_v30, %v703_v24 }
 0x9c6   :  { %v717_v44 = vpack.c.bf16 %v1415_v57, %v1415_v57 }
 0x9c8   :  { %719 = vrot.lane.b32.xlu1 %v717_v44, %s1068_s24 }
 0x9c9   :  { %v633_v28 = vpop.permute.xlu0 %632 }
 0x9ca   :  { %636 = vst.msk [vmem:[#allocation3 + $0x20] sm:$0xff] %vm194_vm1, %v633_v28 }
 0x9d0   :  { %707 = vrot.lane.b32.xlu1 %v1415_v57, %s1068_s24 }
 0x9d1   :  { %v408_v48 = vpop.permute.xlu0 %407  ;;  %v792_v61 = vld [vmem:[#allocation3 + $0x20] sm:$0xff] }
 0x9d2   :  { %411 = vst.msk [vmem:[#allocation3 + $0x8] sm:$0xff] %vm194_vm1, %v408_v48 }
 0x9d9   :  { %v558_v55 = vpop.permute.xlu0 %557  ;;  %v789_v20 = vld [vmem:[#allocation3 + $0x8] sm:$0xff] }
 0x9da   :  { %561 = vst.msk [vmem:[#allocation3 + $0x18] sm:$0xff] %vm194_vm1, %v558_v55 }
 0x9e1   :  { %v791_v47 = vld [vmem:[#allocation3 + $0x18] sm:$0xff] }
 0xa3a   :  { %v720_v54 = vpop.permute.xlu1 %719 }
 0xa3b   :  { %975 = vmatmul.msk.bf16.vlgmr.msrb.gmra.mxu1 %vm194_vm1, %v720_v54  ;;  %976 = vmatmul.msk.bf16.vlgmr.msrb.gmra.mxu2 %vm194_vm1, %v720_v54 }
 0xa42   :  { %v708_v60 = vpop.permute.xlu1 %707 }
 0xa43   :  { %711 = vst.msk [vmem:[#allocation3 + $0x28] sm:$0xff] %vm194_vm1, %v708_v60 }
 0xa4a   :  { %v793_v62 = vld [vmem:[#allocation3 + $0x28] sm:$0xff] }
 0xa4b   :  { %v797_v7 = vpack.c.bf16 %v793_v62, %v792_v61 }
 0xa4d   :  { %996 = vmatmul.msk.bf16.vlgmr.msra.gmra.mxu3 %vm194_vm1, %v797_v7 }
 0xab8   :  { %v733_v63 = vpop.f32.mrf.mxu1 }
 0xab9   :  { %v734_v0 = vadd.f32 %v733_v63, %v1332_v34  ;;  %v1450_v34 = vld [vmem:[%s1511_s10] ss:$0 sm:$0xff] }
 0xabb   :  { %v750_v1 = vadd.f32 %v734_v0, %v1326_v25 }
 0xabd   :  { %v977_v15 = vmul.f32 -1.442695, %v750_v1 }
 0xabe   :  { %v746_v2 = vpop.f32.mrf.mxu2 }
 0xabf   :  { %1061 = vpow2.f32 %v977_v15  ;;  %v747_v27 = vadd.f32 %v746_v2, %v1335_v50 }
 0xac0   :  { %v735_v6 = vpop.f32.mrf.mxu1 }
 0xac5   :  { %v1062_v8 = vpop.eup %1061 }
 0xac6   :  { %v754_v9 = vadd.f32 1.0, %v1062_v8  ;;  %v748_v10 = vpop.f32.mrf.mxu2 }
 0xac8   :  { %1063 = vrcp.f32 %v754_v9  ;;  %v766_v18 = vand.u32 2147483648, %v754_v9  ;;  %v764_v22 = vand.u32 2147483647, %v754_v9  ;;  %vm760_vm12 = vweird.f32 %v754_v9 }
 0xaca   :  { %v767_v26 = vor.u32 1.1754944e-38, %v766_v18  ;;  %vm765_vm14 = vcmp.eq.f32.partialorder %v764_v22, 8.507059e+37 }
 0xace   :  { %v1064_v25 = vpop.eup %1063 }
 0xacf   :  { %v756_v13 = vmul.f32 %v1064_v25, %v754_v9  ;;  %vm761_vm11 = vweird.f32 %v1064_v25 }
 0xad0   :  { %v866_v14 = vpop.f32.mrf.mxu3  ;;  %vm762_vm13 = vmor %vm760_vm12, %vm761_vm11 }
 0xad1   :  { %v757_v16 = vsub.f32 1.0, %v756_v13  ;;  %v867_v17 = vadd.f32 %v1450_v34, %v866_v14 }
 0xad3   :  { %v758_v21 = vmul.f32 %v1064_v25, %v757_v16  ;;  %879 = vst.msk [vmem:[%s1512_s11 + $0x28] sm:$0xff] %vm194_vm1, %v867_v17 }
 0xad5   :  { %v759_v23 = vadd.f32 %v1064_v25, %v758_v21 }
 0xad7   :  { %v763_v29 = vsel %vm762_vm13, %v1064_v25, %v759_v23 }
 0xad8   :  { %v768_v31 = vsel %vm765_vm14, %v767_v26, %v763_v29  ;;  %v868_v32 = vpop.f32.mrf.mxu3 }
 0xad9   :  { %v770_v33 = vmul.f32 %v768_v31, %v747_v27  ;;  %v869_v35 = vadd.f32 %v1450_v34, %v868_v32  ;;  %v773_v50 = vsub.f32 1.0, %v768_v31  ;;  %v779_v39 = vmul.f32 %v768_v31, %v1415_v57 }
 0xadb   :  { %v771_v36 = vadd.f32 %v770_v33, %v716_v3  ;;  %880 = vst.msk [vmem:[%s1512_s11 + $0x30] sm:$0xff] %vm194_vm1, %v869_v35 }
 0xadd   :  { %1065 = vtanh.f32 %v771_v36 }
 0xae3   :  { %v1066_v37 = vpop.eup %1065 }
 0xae4   :  { %775 = vrot.lane.b32.xlu2 %v1066_v37, %s1068_s24 }
 0xaec   :  { %333 = vrot.lane.b32.xlu2 %v1339_v5, %s1068_s24 }
 0xaf4   :  { %482 = vrot.lane.b32.xlu2 %v1379_v12, %s1068_s24 }
 0xb3e   :  { %v776_v38 = vpop.permute.xlu2 %775 }
 0xb3f   :  { %v778_v11 = vmul.f32 %v776_v38, %v773_v50 }
 0xb41   :  { %v780_v41 = vadd.f32 %v779_v39, %v778_v11 }
 0xb43   :  { %782 = vrot.lane.b32.xlu1 %v780_v41, %s1068_s24 }
 0xb46   :  { %v334_v42 = vpop.permute.xlu2 %333 }
 0xb47   :  { %336 = vst.msk [vmem:[#allocation3] sm:$0xff] %vm194_vm1, %v334_v42 }
 0xb4e   :  { %v483_v43 = vpop.permute.xlu2 %482  ;;  %v788_v45 = vld [vmem:[#allocation3] sm:$0xff] }
 0xb4f   :  { %486 = vst.msk [vmem:[#allocation3 + $0x10] sm:$0xff] %vm194_vm1, %v483_v43  ;;  %v795_v5 = vpack.c.bf16 %v789_v20, %v788_v45 }
 0xb51   :  { %994 = vmatmul.msk.bf16.vlgmr.msrb.gmra.mxu0 %vm194_vm1, %v795_v5 }
 0xb56   :  { %v790_v12 = vld [vmem:[#allocation3 + $0x10] sm:$0xff] }
 0xb57   :  { %v796_v49 = vpack.c.bf16 %v791_v47, %v790_v12 }
 0xb61   :  { %995 = vmatmul.msk.bf16.gmra.mxu0 %vm194_vm1, %v796_v49 }
 0xbb5   :  { %v783_v51 = vpop.permute.xlu1 %782 }
 0xbb6   :  { %786 = vst.msk [vmem:[#allocation3 + $0x30] sm:$0xff] %vm194_vm1, %v783_v51 }
 0xbbd   :  { %v794_v52 = vld [vmem:[#allocation3 + $0x30] sm:$0xff] }
 0xbbe   :  { %v798_v53 = vpack.c.bf16 %v794_v52, %v794_v52 }
 0xbc0   :  { %997 = vmatmul.msk.bf16.gmra.mxu3 %vm194_vm1, %v798_v53 }
 0xbce   :  { %v856_v56 = vpop.f32.mrf.mxu0 }
 0xbcf   :  { %v857_v19 = vadd.f32 %v1450_v34, %v856_v56 }
 0xbd1   :  { %875 = vst.msk [vmem:[%s1512_s11 + $0x8] sm:$0xff] %vm194_vm1, %v857_v19 }
 0xbd6   :  { %v858_v30 = vpop.f32.mrf.mxu0 }
 0xbd7   :  { %v859_v24 = vadd.f32 %v1450_v34, %v858_v30 }
 0xbd9   :  { %876 = vst.msk [vmem:[%s1512_s11 + $0x10] sm:$0xff] %vm194_vm1, %v859_v24 }
 0xbde   :  { %v861_v57 = vpop.f32.mrf.mxu0 }
 0xbdf   :  { %v862_v44 = vadd.f32 %v1450_v34, %v861_v57 }
 0xbe1   :  { %877 = vst.msk [vmem:[%s1512_s11 + $0x18] sm:$0xff] %vm194_vm1, %v862_v44 }
 0xbe6   :  { %v863_v28 = vpop.f32.mrf.mxu0 }
 0xbe7   :  { %v864_v48 = vadd.f32 %v1450_v34, %v863_v28 }
 0xbe9   :  { %878 = vst.msk [vmem:[%s1512_s11 + $0x20] sm:$0xff] %vm194_vm1, %v864_v48 }
 0xc43   :  { %v871_v55 = vpop.f32.mrf.mxu3 }
 0xc44   :  { %v872_v58 = vadd.f32 %v1450_v34, %v871_v55 }
 0xc46   :  { %881 = vst.msk [vmem:[%s1512_s11 + $0x38] sm:$0xff] %vm194_vm1, %v872_v58 }
 0xc4b   :  { %v873_v46 = vpop.f32.mrf.mxu3 }

</bundles_post_ra>
